<compile_context>
chip_gen: v5e
topology: v5e:2x2
jax: 0.10.0
libtpu: 0.0.40
codegen_flags: <defaults>
</compile_context>

<pallas_src>
import functools

import jax
import jax.numpy as jnp
from jax.experimental import pallas as pl
from jax.experimental.pallas import tpu as pltpu


# ----------------- fused matmul + BatchNorm(+residual)(+ReLU) kernels -----------------

def _mm_bn_kernel(a_ref, b_ref, o_ref, *, eps, relu, n_groups):
    """o = relu?(BN(a @ b)); BN stats per output column over all rows.

    For n_groups > 1 (deconv pixel taps) columns are laid out as (tap, channel) and
    the statistics are additionally reduced over the n_groups taps of each channel.
    All stats use a centered two-pass variance (no cancellation).
    """
    acc = jnp.dot(a_ref[...], b_ref[...], preferred_element_type=jnp.float32)
    m, nn = acc.shape
    if n_groups > 1:
        c = nn // n_groups
        cnt = float(m * n_groups)
        s1 = jnp.sum(acc, axis=0, keepdims=True)
        mean_g = sum(s1[:, t * c:(t + 1) * c] for t in range(n_groups)) / cnt
        ss = jnp.zeros_like(mean_g)
        for t in range(n_groups):
            d = acc[:, t * c:(t + 1) * c] - mean_g
            ss = ss + jnp.sum(d * d, axis=0, keepdims=True)
        inv_g = jax.lax.rsqrt(ss / cnt + eps)
        for t in range(n_groups):
            yt = (acc[:, t * c:(t + 1) * c] - mean_g) * inv_g
            if relu:
                yt = jnp.maximum(yt, 0.0)
            o_ref[:, t * c:(t + 1) * c] = yt.astype(o_ref.dtype)
    else:
        mean = jnp.mean(acc, axis=0, keepdims=True)
        cent = acc - mean
        var = jnp.mean(cent * cent, axis=0, keepdims=True)  # biased (PyTorch BN fwd)
        y = cent * jax.lax.rsqrt(var + eps)
        if relu:
            y = jnp.maximum(y, 0.0)
        o_ref[...] = y.astype(o_ref.dtype)


def _mm_bn_res_kernel(a_ref, b_ref, r_ref, o_ref, *, eps, relu):
    """o = relu?(BN(a @ b) + r); residual arrives bf16 and is upcast in-kernel."""
    acc = jnp.dot(a_ref[...], b_ref[...], preferred_element_type=jnp.float32)
    mean = jnp.mean(acc, axis=0, keepdims=True)
    cent = acc - mean
    var = jnp.mean(cent * cent, axis=0, keepdims=True)
    y = cent * jax.lax.rsqrt(var + eps) + r_ref[...].astype(jnp.float32)
    if relu:
        y = jnp.maximum(y, 0.0)
    o_ref[...] = y.astype(o_ref.dtype)


def fused_matmul_bn(a, b, *, residual=None, relu=False, n_groups=1, eps=1e-5,
                    out_dtype=jnp.bfloat16):
    """[M,K] @ [K,N] with BatchNorm(+residual)(+ReLU) fused into the epilogue.

    Single-shot K (no k grid axis, no accumulator scratch), full-M blocks (exact batch
    stats).  N is tiled into lane-dense 128-wide blocks when possible (never for
    grouped stats, which need all taps in one block).  Operands/outputs are bf16;
    accumulation and BN math stay f32 inside the kernel.
    """
    M, K = a.shape
    K2, N = b.shape
    assert K == K2
    a_bf = a if a.dtype == jnp.bfloat16 else a.astype(jnp.bfloat16)
    b_bf = b if b.dtype == jnp.bfloat16 else b.astype(jnp.bfloat16)

    if n_groups > 1 or N % 128 != 0:
        tn = N
    else:
        tn = 128
    grid_n = N // tn

    # A is revisited on every grid step (constant index map): single-buffer it so the
    # full-M operand is not double-buffered in VMEM (matters most on v7x's 64 MiB).
    a_spec = pl.BlockSpec((M, K), lambda j: (0, 0), pipeline_mode=pl.Buffered(1))
    in_specs = [a_spec, pl.BlockSpec((K, tn), lambda j: (0, j))]
    args = [a_bf, b_bf]
    if residual is not None:
        assert n_groups == 1
        r_bf = residual if residual.dtype == jnp.bfloat16 else residual.astype(jnp.bfloat16)
        in_specs.append(pl.BlockSpec((M, tn), lambda j: (0, j)))
        args.append(r_bf)
        kern = functools.partial(_mm_bn_res_kernel, eps=eps, relu=relu)
    else:
        kern = functools.partial(_mm_bn_kernel, eps=eps, relu=relu, n_groups=n_groups)

    return pl.pallas_call(
        kern,
        out_shape=jax.ShapeDtypeStruct((M, N), out_dtype),
        grid_spec=pltpu.PrefetchScalarGridSpec(
            num_scalar_prefetch=0,
            grid=(grid_n,),
            in_specs=in_specs,
            out_specs=pl.BlockSpec((M, tn), lambda j: (0, j)),
        ),
        compiler_params=pltpu.CompilerParams(
            dimension_semantics=("parallel",),
            vmem_limit_bytes=32 * 1024 * 1024),
    )(*args)


# --------------------------------- layout glue (XLA) ---------------------------------

def _im2col3x3(x):
    """x: [N,H,W,C] -> [N*H*W, 9*C] patches, (kh,kw,cin) column order; stride 1, pad 1.

    Runs in the activation dtype (bf16), so the patch tensor is half the bytes of the
    old f32 path.
    # TODO(synk): fuse the 9 taps into a single pallas_call (shifted accumulating
    # matmuls) so the patch tensor is never materialized in HBM.
    """
    n, h, w, c = x.shape
    xp = jnp.pad(x, ((0, 0), (1, 1), (1, 1), (0, 0)))
    cols = [xp[:, kh:kh + h, kw:kw + w, :] for kh in range(3) for kw in range(3)]
    return jnp.concatenate(cols, axis=-1).reshape(n * h * w, 9 * c)


def _pad_to(x, axis, size):
    pad = [(0, 0)] * x.ndim
    pad[axis] = (0, size - x.shape[axis])
    return jnp.pad(x, pad)


# ----------------------------------- Bottleneck --------------------------------------

@functools.partial(jax.jit, static_argnames=("stride",))
def bottleneck_forward(x_nchw, weights, stride):
    """de_resnet Bottleneck forward.  x_nchw: [N, Cin, H, W] -> [N, planes*4, H', W']."""
    x = jnp.transpose(x_nchw, (0, 2, 3, 1))                      # NCHW -> NHWC
    n, h, w, cin = x.shape
    x_bf = x.reshape(n * h * w, cin).astype(jnp.bfloat16)        # cast once; reused below
    wp = weights["w1"].shape[1]                                  # padded bottleneck width
    outc = weights["w3"].shape[1]

    # conv1 (1x1) + bn1 + relu                                    -> bf16 [M, wp]
    h1 = fused_matmul_bn(x_bf, weights["w1"], relu=True)

    # conv2 + bn2 + relu
    if stride == 2:
        # ConvTranspose2d k=2 s=2 with BN stats grouped over the 4 (di,dj) pixel taps.
        # Columns are (di,dj,cout), so [M, 4*wp] reshapes (pure view) to [4M, wp] rows
        # ordered (n,h,w,di,dj); the 2x2 spatial interleave is folded into the final
        # NHWC->NCHW transpose.
        y = fused_matmul_bn(h1, weights["w2"], relu=True, n_groups=4)      # [M, 4*wp]
        h2_2d = y.reshape(n * h * w * 4, wp)
        rows_interleaved = True
    else:
        patches = _im2col3x3(h1.reshape(n, h, w, wp))                      # [M, 9*wp] bf16
        h2_2d = fused_matmul_bn(patches, weights["w2"], relu=True)         # [M, wp] bf16
        rows_interleaved = False

    # identity branch (de_resnet upsample = deconv2x2 + BN when stride == 2)
    if "up_w" in weights:
        yi = fused_matmul_bn(x_bf, weights["up_w"], relu=False, n_groups=4)  # [M, 4*outc]
        identity = yi.reshape(n * h * w * 4, outc)                           # same row order
    else:
        identity = x_bf                                                      # cin == outc

    # conv3 (1x1) + bn3 + identity add + relu, fused; f32 final output
    out2d = fused_matmul_bn(h2_2d, weights["w3"], residual=identity, relu=True,
                            out_dtype=jnp.float32)

    if rows_interleaved:
        out = out2d.reshape(n, h, w, 2, 2, outc)
        out = jnp.transpose(out, (0, 5, 1, 3, 2, 4)).reshape(n, outc, 2 * h, 2 * w)
    else:
        out = jnp.transpose(out2d.reshape(n, h, w, outc), (0, 3, 1, 2))
    return out


def init_bottleneck(key, inplanes, planes, stride, base_width=64, groups=1):
    """Kaiming-normal-ish deterministic init.

    Weights are pre-reshaped to matmul layout, zero-padded so the bottleneck `width`
    is a multiple of 128 lanes (padded BN columns normalize to exactly 0, so the
    result is unchanged), and pre-cast to bf16 once here.
    """
    expansion = 4
    width = int(planes * (base_width / 64.0)) * groups
    outc = planes * expansion
    wp = ((width + 127) // 128) * 128          # lane-dense padded bottleneck width
    k1, k2, k3, k4 = jax.random.split(key, 4)
    p = {}

    # conv1x1(inplanes -> width): torch weight [width, inplanes, 1, 1] -> [inplanes, wp]
    std = (2.0 / inplanes) ** 0.5
    w1 = jnp.transpose(std * jax.random.normal(k1, (width, inplanes), jnp.float32))
    p["w1"] = _pad_to(w1, 1, wp).astype(jnp.bfloat16)

    if stride == 2:
        # deconv2x2(width -> width): torch [width, width, 2, 2] -> [wp, 4*wp], cols (di,dj,cout)
        std = (2.0 / (width * 4)) ** 0.5
        w2 = std * jax.random.normal(k2, (width, width, 2, 2), jnp.float32)
        w2 = jnp.transpose(w2, (0, 2, 3, 1))                      # [cin, kh, kw, cout]
        w2 = _pad_to(_pad_to(w2, 0, wp), 3, wp)
        p["w2"] = w2.reshape(wp, 4 * wp).astype(jnp.bfloat16)
    else:
        # conv3x3(width -> width): torch [width, width, 3, 3] -> [9*wp, wp], rows (kh,kw,cin)
        std = (2.0 / (width * 9)) ** 0.5
        w2 = std * jax.random.normal(k2, (width, width, 3, 3), jnp.float32)
        w2 = jnp.transpose(w2, (2, 3, 1, 0))                      # [kh, kw, cin, cout]
        w2 = _pad_to(_pad_to(w2, 2, wp), 3, wp)
        p["w2"] = w2.reshape(9 * wp, wp).astype(jnp.bfloat16)

    # conv1x1(width -> outc): torch [outc, width] -> [wp, outc]
    std = (2.0 / width) ** 0.5
    w3 = jnp.transpose(std * jax.random.normal(k3, (outc, width), jnp.float32))
    p["w3"] = _pad_to(w3, 0, wp).astype(jnp.bfloat16)

    if stride != 1 or inplanes != outc:
        # de_resnet upsample: deconv2x2(inplanes -> outc, stride=2) + BN
        assert stride == 2  # TODO(synk): conv1x1-style upsample for stride==1 channel change
        std = (2.0 / (inplanes * 4)) ** 0.5
        up = std * jax.random.normal(k4, (inplanes, outc, 2, 2), jnp.float32)
        up = jnp.transpose(up, (0, 2, 3, 1)).reshape(inplanes, 4 * outc)
        p["up_w"] = up.astype(jnp.bfloat16)
    return p


if __name__ == "__main__":
    key = jax.random.PRNGKey(0)
    kb1, kb2, kx = jax.random.split(key, 3)

    inplanes, planes = 128, 32                         # width = 32 (padded to 128 lanes)
    blk1 = init_bottleneck(kb1, inplanes, planes, stride=2)     # deconv2x2 path + upsample
    blk2 = init_bottleneck(kb2, planes * 4, planes, stride=1)   # conv3x3 path, plain identity

    x = jax.random.normal(kx, (2, inplanes, 8, 8), jnp.float32)

    y1 = bottleneck_forward(x, blk1, stride=2)   # [2, 128, 16, 16]
    y2 = bottleneck_forward(y1, blk2, stride=1)  # [2, 128, 16, 16]
    jax.block_until_ready(y2)

    assert y1.shape == (2, planes * 4, 16, 16), y1.shape
    assert y2.shape == (2, planes * 4, 16, 16), y2.shape
    assert bool(jnp.all(jnp.isfinite(y2)))
    print("KERNEL_OK")
</pallas_src>

<mosaic_0001>
module attributes {stable_mosaic.version = 11 : i64} {
  func.func @_mm_bn_kernel(%arg0: i32, %arg1: memref<128x128xbf16, #tpu.memory_space<vmem>>, %arg2: memref<128x512xbf16, #tpu.memory_space<vmem>>, %arg3: memref<128x512xbf16, #tpu.memory_space<vmem>>) attributes {dimension_semantics = [#tpu.dimension_semantics<parallel>], iteration_bounds = array<i64: 1>, scalar_prefetch = 0 : i64, scratch_operands = 0 : i64, tpu.core_type = #tpu.core_type<tc>, window_params = [{pipeline_mode = #tpu.pipeline_mode<synchronous>, transform_indices = @transform_0, window_bounds = array<i64: 128, 128>}, {transform_indices = @transform_1, window_bounds = array<i64: 128, 512>}, {transform_indices = @transform_2, window_bounds = array<i64: 128, 512>}]} {
    %c0 = arith.constant 0 : index
    %c0_0 = arith.constant 0 : index
    %0 = vector.load %arg1[%c0, %c0_0] : memref<128x128xbf16, #tpu.memory_space<vmem>>, vector<128x128xbf16>
    %c0_1 = arith.constant 0 : index
    %c0_2 = arith.constant 0 : index
    %1 = vector.load %arg2[%c0_1, %c0_2] : memref<128x512xbf16, #tpu.memory_space<vmem>>, vector<128x512xbf16>
    %cst = arith.constant dense<0.000000e+00> : vector<128x512xf32>
    %2 = tpu.matmul %0, %1, %cst {dimension_numbers = #tpu.dot_dimension_numbers<[1], [0], [0], [1], [0, 0, 1, 1], [], []>} : vector<128x128xbf16>, vector<128x512xbf16>, vector<128x512xf32> -> vector<128x512xf32>
    %cst_3 = arith.constant dense<0.000000e+00> : vector<512xf32>
    %3 = vector.multi_reduction <add>, %2, %cst_3 [0] : vector<128x512xf32> to vector<512xf32>
    %4 = vector.shape_cast %3 : vector<512xf32> to vector<1x512xf32>
    %5 = vector.extract_strided_slice %4 {offsets = [0, 0], sizes = [1, 128], strides = [1, 1]} : vector<1x512xf32> to vector<1x128xf32>
    %cst_4 = arith.constant 0.000000e+00 : f32
    %6 = vector.broadcast %cst_4 : f32 to vector<1x128xf32>
    %7 = arith.addf %6, %5 : vector<1x128xf32>
    %8 = vector.extract_strided_slice %4 {offsets = [0, 128], sizes = [1, 128], strides = [1, 1]} : vector<1x512xf32> to vector<1x128xf32>
    %9 = arith.addf %7, %8 : vector<1x128xf32>
    %10 = vector.extract_strided_slice %4 {offsets = [0, 256], sizes = [1, 128], strides = [1, 1]} : vector<1x512xf32> to vector<1x128xf32>
    %11 = arith.addf %9, %10 : vector<1x128xf32>
    %12 = vector.extract_strided_slice %4 {offsets = [0, 384], sizes = [1, 128], strides = [1, 1]} : vector<1x512xf32> to vector<1x128xf32>
    %13 = arith.addf %11, %12 : vector<1x128xf32>
    %cst_5 = arith.constant 5.120000e+02 : f32
    %14 = vector.broadcast %cst_5 : f32 to vector<1x128xf32>
    %15 = arith.divf %13, %14 : vector<1x128xf32>
    %cst_6 = arith.constant 0.000000e+00 : f32
    %16 = vector.broadcast %cst_6 : f32 to vector<1x128xf32>
    %17 = vector.extract_strided_slice %2 {offsets = [0, 0], sizes = [128, 128], strides = [1, 1]} : vector<128x512xf32> to vector<128x128xf32>
    %18 = vector.broadcast %15 : vector<1x128xf32> to vector<128x128xf32>
    %19 = arith.subf %17, %18 : vector<128x128xf32>
    %20 = arith.mulf %19, %19 : vector<128x128xf32>
    %cst_7 = arith.constant dense<0.000000e+00> : vector<128xf32>
    %21 = vector.multi_reduction <add>, %20, %cst_7 [0] : vector<128x128xf32> to vector<128xf32>
    %22 = vector.shape_cast %21 : vector<128xf32> to vector<1x128xf32>
    %23 = arith.addf %16, %22 : vector<1x128xf32>
    %24 = vector.extract_strided_slice %2 {offsets = [0, 128], sizes = [128, 128], strides = [1, 1]} : vector<128x512xf32> to vector<128x128xf32>
    %25 = vector.broadcast %15 : vector<1x128xf32> to vector<128x128xf32>
    %26 = arith.subf %24, %25 : vector<128x128xf32>
    %27 = arith.mulf %26, %26 : vector<128x128xf32>
    %cst_8 = arith.constant dense<0.000000e+00> : vector<128xf32>
    %28 = vector.multi_reduction <add>, %27, %cst_8 [0] : vector<128x128xf32> to vector<128xf32>
    %29 = vector.shape_cast %28 : vector<128xf32> to vector<1x128xf32>
    %30 = arith.addf %23, %29 : vector<1x128xf32>
    %31 = vector.extract_strided_slice %2 {offsets = [0, 256], sizes = [128, 128], strides = [1, 1]} : vector<128x512xf32> to vector<128x128xf32>
    %32 = vector.broadcast %15 : vector<1x128xf32> to vector<128x128xf32>
    %33 = arith.subf %31, %32 : vector<128x128xf32>
    %34 = arith.mulf %33, %33 : vector<128x128xf32>
    %cst_9 = arith.constant dense<0.000000e+00> : vector<128xf32>
    %35 = vector.multi_reduction <add>, %34, %cst_9 [0] : vector<128x128xf32> to vector<128xf32>
    %36 = vector.shape_cast %35 : vector<128xf32> to vector<1x128xf32>
    %37 = arith.addf %30, %36 : vector<1x128xf32>
    %38 = vector.extract_strided_slice %2 {offsets = [0, 384], sizes = [128, 128], strides = [1, 1]} : vector<128x512xf32> to vector<128x128xf32>
    %39 = vector.broadcast %15 : vector<1x128xf32> to vector<128x128xf32>
    %40 = arith.subf %38, %39 : vector<128x128xf32>
    %41 = arith.mulf %40, %40 : vector<128x128xf32>
    %cst_10 = arith.constant dense<0.000000e+00> : vector<128xf32>
    %42 = vector.multi_reduction <add>, %41, %cst_10 [0] : vector<128x128xf32> to vector<128xf32>
    %43 = vector.shape_cast %42 : vector<128xf32> to vector<1x128xf32>
    %44 = arith.addf %37, %43 : vector<1x128xf32>
    %cst_11 = arith.constant 5.120000e+02 : f32
    %45 = vector.broadcast %cst_11 : f32 to vector<1x128xf32>
    %46 = arith.divf %44, %45 : vector<1x128xf32>
    %cst_12 = arith.constant 9.99999974E-6 : f32
    %47 = vector.broadcast %cst_12 : f32 to vector<1x128xf32>
    %48 = arith.addf %46, %47 : vector<1x128xf32>
    %49 = math.rsqrt %48 : vector<1x128xf32>
    %50 = vector.extract_strided_slice %2 {offsets = [0, 0], sizes = [128, 128], strides = [1, 1]} : vector<128x512xf32> to vector<128x128xf32>
    %51 = vector.broadcast %15 : vector<1x128xf32> to vector<128x128xf32>
    %52 = arith.subf %50, %51 : vector<128x128xf32>
    %53 = vector.broadcast %49 : vector<1x128xf32> to vector<128x128xf32>
    %54 = arith.mulf %52, %53 : vector<128x128xf32>
    %55 = arith.truncf %54 : vector<128x128xf32> to vector<128x128xbf16>
    %c0_13 = arith.constant 0 : index
    %c0_14 = arith.constant 0 : index
    %56 = vector.load %arg3[%c0_13, %c0_14] : memref<128x512xbf16, #tpu.memory_space<vmem>>, vector<128x128xbf16>
    tpu.vector_store %arg3[%c0_13, %c0_14], %55 {strides = array<i32>} : memref<128x512xbf16, #tpu.memory_space<vmem>>, vector<128x128xbf16>,
    %57 = vector.extract_strided_slice %2 {offsets = [0, 128], sizes = [128, 128], strides = [1, 1]} : vector<128x512xf32> to vector<128x128xf32>
    %58 = vector.broadcast %15 : vector<1x128xf32> to vector<128x128xf32>
    %59 = arith.subf %57, %58 : vector<128x128xf32>
    %60 = vector.broadcast %49 : vector<1x128xf32> to vector<128x128xf32>
    %61 = arith.mulf %59, %60 : vector<128x128xf32>
    %62 = arith.truncf %61 : vector<128x128xf32> to vector<128x128xbf16>
    %c0_15 = arith.constant 0 : index
    %c128 = arith.constant 128 : index
    %63 = vector.load %arg3[%c0_15, %c128] : memref<128x512xbf16, #tpu.memory_space<vmem>>, vector<128x128xbf16>
    tpu.vector_store %arg3[%c0_15, %c128], %62 {strides = array<i32>} : memref<128x512xbf16, #tpu.memory_space<vmem>>, vector<128x128xbf16>,
    %64 = vector.extract_strided_slice %2 {offsets = [0, 256], sizes = [128, 128], strides = [1, 1]} : vector<128x512xf32> to vector<128x128xf32>
    %65 = vector.broadcast %15 : vector<1x128xf32> to vector<128x128xf32>
    %66 = arith.subf %64, %65 : vector<128x128xf32>
    %67 = vector.broadcast %49 : vector<1x128xf32> to vector<128x128xf32>
    %68 = arith.mulf %66, %67 : vector<128x128xf32>
    %69 = arith.truncf %68 : vector<128x128xf32> to vector<128x128xbf16>
    %c0_16 = arith.constant 0 : index
    %c256 = arith.constant 256 : index
    %70 = vector.load %arg3[%c0_16, %c256] : memref<128x512xbf16, #tpu.memory_space<vmem>>, vector<128x128xbf16>
    tpu.vector_store %arg3[%c0_16, %c256], %69 {strides = array<i32>} : memref<128x512xbf16, #tpu.memory_space<vmem>>, vector<128x128xbf16>,
    %71 = vector.extract_strided_slice %2 {offsets = [0, 384], sizes = [128, 128], strides = [1, 1]} : vector<128x512xf32> to vector<128x128xf32>
    %72 = vector.broadcast %15 : vector<1x128xf32> to vector<128x128xf32>
    %73 = arith.subf %71, %72 : vector<128x128xf32>
    %74 = vector.broadcast %49 : vector<1x128xf32> to vector<128x128xf32>
    %75 = arith.mulf %73, %74 : vector<128x128xf32>
    %76 = arith.truncf %75 : vector<128x128xf32> to vector<128x128xbf16>
    %c0_17 = arith.constant 0 : index
    %c384 = arith.constant 384 : index
    %77 = vector.load %arg3[%c0_17, %c384] : memref<128x512xbf16, #tpu.memory_space<vmem>>, vector<128x128xbf16>
    tpu.vector_store %arg3[%c0_17, %c384], %76 {strides = array<i32>} : memref<128x512xbf16, #tpu.memory_space<vmem>>, vector<128x128xbf16>,
    return
  }
  func.func @transform_0(%arg0: i32) -> (i32, i32) {
    %c0_i32 = arith.constant 0 : i32
    %c0_i32_0 = arith.constant 0 : i32
    %c0_i32_1 = arith.constant 0 : i32
    return %c0_i32, %c0_i32_0 : i32, i32
  }
  func.func @transform_1(%arg0: i32) -> (i32, i32) {
    %c0_i32 = arith.constant 0 : i32
    %c0_i32_0 = arith.constant 0 : i32
    return %c0_i32, %arg0 : i32, i32
  }
  func.func @transform_2(%arg0: i32) -> (i32, i32) {
    %c0_i32 = arith.constant 0 : i32
    %c0_i32_0 = arith.constant 0 : i32
    return %c0_i32, %arg0 : i32, i32
  }
}

module attributes {stable_mosaic.version = 11 : i64} {
  func.func @_mm_bn_kernel(%arg0: i32, %arg1: memref<128x128xbf16, #tpu.memory_space<vmem>>, %arg2: memref<128x128xbf16, #tpu.memory_space<vmem>>, %arg3: memref<128x128xbf16, #tpu.memory_space<vmem>>) attributes {dimension_semantics = [#tpu.dimension_semantics<parallel>], iteration_bounds = array<i64: 1>, scalar_prefetch = 0 : i64, scratch_operands = 0 : i64, tpu.core_type = #tpu.core_type<tc>, window_params = [{pipeline_mode = #tpu.pipeline_mode<synchronous>, transform_indices = @transform_0, window_bounds = array<i64: 128, 128>}, {transform_indices = @transform_1, window_bounds = array<i64: 128, 128>}, {transform_indices = @transform_2, window_bounds = array<i64: 128, 128>}]} {
    %c0 = arith.constant 0 : index
    %c0_0 = arith.constant 0 : index
    %0 = vector.load %arg1[%c0, %c0_0] : memref<128x128xbf16, #tpu.memory_space<vmem>>, vector<128x128xbf16>
    %c0_1 = arith.constant 0 : index
    %c0_2 = arith.constant 0 : index
    %1 = vector.load %arg2[%c0_1, %c0_2] : memref<128x128xbf16, #tpu.memory_space<vmem>>, vector<128x128xbf16>
    %cst = arith.constant dense<0.000000e+00> : vector<128x128xf32>
    %2 = tpu.matmul %0, %1, %cst {dimension_numbers = #tpu.dot_dimension_numbers<[1], [0], [0], [1], [0, 0, 1, 1], [], []>} : vector<128x128xbf16>, vector<128x128xbf16>, vector<128x128xf32> -> vector<128x128xf32>
    %cst_3 = arith.constant dense<0.000000e+00> : vector<128xf32>
    %3 = vector.multi_reduction <add>, %2, %cst_3 [0] : vector<128x128xf32> to vector<128xf32>
    %4 = vector.shape_cast %3 : vector<128xf32> to vector<1x128xf32>
    %cst_4 = arith.constant 1.280000e+02 : f32
    %5 = vector.broadcast %cst_4 : f32 to vector<1x128xf32>
    %6 = arith.divf %4, %5 : vector<1x128xf32>
    %7 = vector.broadcast %6 : vector<1x128xf32> to vector<128x128xf32>
    %8 = arith.subf %2, %7 : vector<128x128xf32>
    %9 = arith.mulf %8, %8 : vector<128x128xf32>
    %cst_5 = arith.constant dense<0.000000e+00> : vector<128xf32>
    %10 = vector.multi_reduction <add>, %9, %cst_5 [0] : vector<128x128xf32> to vector<128xf32>
    %11 = vector.shape_cast %10 : vector<128xf32> to vector<1x128xf32>
    %cst_6 = arith.constant 1.280000e+02 : f32
    %12 = vector.broadcast %cst_6 : f32 to vector<1x128xf32>
    %13 = arith.divf %11, %12 : vector<1x128xf32>
    %cst_7 = arith.constant 9.99999974E-6 : f32
    %14 = vector.broadcast %cst_7 : f32 to vector<1x128xf32>
    %15 = arith.addf %13, %14 : vector<1x128xf32>
    %16 = math.rsqrt %15 : vector<1x128xf32>
    %17 = vector.broadcast %16 : vector<1x128xf32> to vector<128x128xf32>
    %18 = arith.mulf %8, %17 : vector<128x128xf32>
    %cst_8 = arith.constant 0.000000e+00 : f32
    %19 = vector.broadcast %cst_8 : f32 to vector<128x128xf32>
    %20 = arith.maximumf %18, %19 : vector<128x128xf32>
    %21 = arith.truncf %20 : vector<128x128xf32> to vector<128x128xbf16>
    %c0_9 = arith.constant 0 : index
    %c0_10 = arith.constant 0 : index
    %22 = vector.load %arg3[%c0_9, %c0_10] : memref<128x128xbf16, #tpu.memory_space<vmem>>, vector<128x128xbf16>
    tpu.vector_store %arg3[%c0_9, %c0_10], %21 {strides = array<i32>} : memref<128x128xbf16, #tpu.memory_space<vmem>>, vector<128x128xbf16>,
    return
  }
  func.func @transform_0(%arg0: i32) -> (i32, i32) {
    %c0_i32 = arith.constant 0 : i32
    %c0_i32_0 = arith.constant 0 : i32
    %c0_i32_1 = arith.constant 0 : i32
    return %c0_i32, %c0_i32_0 : i32, i32
  }
  func.func @transform_1(%arg0: i32) -> (i32, i32) {
    %c0_i32 = arith.constant 0 : i32
    %c0_i32_0 = arith.constant 0 : i32
    return %c0_i32, %arg0 : i32, i32
  }
  func.func @transform_2(%arg0: i32) -> (i32, i32) {
    %c0_i32 = arith.constant 0 : i32
    %c0_i32_0 = arith.constant 0 : i32
    return %c0_i32, %arg0 : i32, i32
  }
}

module attributes {stable_mosaic.version = 11 : i64} {
  func.func @_mm_bn_res_kernel(%arg0: i32, %arg1: memref<512x128xbf16, #tpu.memory_space<vmem>>, %arg2: memref<128x128xbf16, #tpu.memory_space<vmem>>, %arg3: memref<512x128xbf16, #tpu.memory_space<vmem>>, %arg4: memref<512x128xf32, #tpu.memory_space<vmem>>) attributes {dimension_semantics = [#tpu.dimension_semantics<parallel>], iteration_bounds = array<i64: 1>, scalar_prefetch = 0 : i64, scratch_operands = 0 : i64, tpu.core_type = #tpu.core_type<tc>, window_params = [{pipeline_mode = #tpu.pipeline_mode<synchronous>, transform_indices = @transform_0, window_bounds = array<i64: 512, 128>}, {transform_indices = @transform_1, window_bounds = array<i64: 128, 128>}, {transform_indices = @transform_2, window_bounds = array<i64: 512, 128>}, {transform_indices = @transform_3, window_bounds = array<i64: 512, 128>}]} {
    %c0 = arith.constant 0 : index
    %c0_0 = arith.constant 0 : index
    %0 = vector.load %arg1[%c0, %c0_0] : memref<512x128xbf16, #tpu.memory_space<vmem>>, vector<512x128xbf16>
    %c0_1 = arith.constant 0 : index
    %c0_2 = arith.constant 0 : index
    %1 = vector.load %arg2[%c0_1, %c0_2] : memref<128x128xbf16, #tpu.memory_space<vmem>>, vector<128x128xbf16>
    %cst = arith.constant dense<0.000000e+00> : vector<512x128xf32>
    %2 = tpu.matmul %0, %1, %cst {dimension_numbers = #tpu.dot_dimension_numbers<[1], [0], [0], [1], [0, 0, 1, 1], [], []>} : vector<512x128xbf16>, vector<128x128xbf16>, vector<512x128xf32> -> vector<512x128xf32>
    %cst_3 = arith.constant dense<0.000000e+00> : vector<128xf32>
    %3 = vector.multi_reduction <add>, %2, %cst_3 [0] : vector<512x128xf32> to vector<128xf32>
    %4 = vector.shape_cast %3 : vector<128xf32> to vector<1x128xf32>
    %cst_4 = arith.constant 5.120000e+02 : f32
    %5 = vector.broadcast %cst_4 : f32 to vector<1x128xf32>
    %6 = arith.divf %4, %5 : vector<1x128xf32>
    %7 = vector.broadcast %6 : vector<1x128xf32> to vector<512x128xf32>
    %8 = arith.subf %2, %7 : vector<512x128xf32>
    %9 = arith.mulf %8, %8 : vector<512x128xf32>
    %cst_5 = arith.constant dense<0.000000e+00> : vector<128xf32>
    %10 = vector.multi_reduction <add>, %9, %cst_5 [0] : vector<512x128xf32> to vector<128xf32>
    %11 = vector.shape_cast %10 : vector<128xf32> to vector<1x128xf32>
    %cst_6 = arith.constant 5.120000e+02 : f32
    %12 = vector.broadcast %cst_6 : f32 to vector<1x128xf32>
    %13 = arith.divf %11, %12 : vector<1x128xf32>
    %cst_7 = arith.constant 9.99999974E-6 : f32
    %14 = vector.broadcast %cst_7 : f32 to vector<1x128xf32>
    %15 = arith.addf %13, %14 : vector<1x128xf32>
    %16 = math.rsqrt %15 : vector<1x128xf32>
    %17 = vector.broadcast %16 : vector<1x128xf32> to vector<512x128xf32>
    %18 = arith.mulf %8, %17 : vector<512x128xf32>
    %c0_8 = arith.constant 0 : index
    %c0_9 = arith.constant 0 : index
    %19 = vector.load %arg3[%c0_8, %c0_9] : memref<512x128xbf16, #tpu.memory_space<vmem>>, vector<512x128xbf16>
    %20 = arith.extf %19 : vector<512x128xbf16> to vector<512x128xf32>
    %21 = arith.addf %18, %20 : vector<512x128xf32>
    %cst_10 = arith.constant 0.000000e+00 : f32
    %22 = vector.broadcast %cst_10 : f32 to vector<512x128xf32>
    %23 = arith.maximumf %21, %22 : vector<512x128xf32>
    %c0_11 = arith.constant 0 : index
    %c0_12 = arith.constant 0 : index
    %24 = vector.load %arg4[%c0_11, %c0_12] : memref<512x128xf32, #tpu.memory_space<vmem>>, vector<512x128xf32>
    tpu.vector_store %arg4[%c0_11, %c0_12], %23 {strides = array<i32>} : memref<512x128xf32, #tpu.memory_space<vmem>>, vector<512x128xf32>,
    return
  }
  func.func @transform_0(%arg0: i32) -> (i32, i32) {
    %c0_i32 = arith.constant 0 : i32
    %c0_i32_0 = arith.constant 0 : i32
    %c0_i32_1 = arith.constant 0 : i32
    return %c0_i32, %c0_i32_0 : i32, i32
  }
  func.func @transform_1(%arg0: i32) -> (i32, i32) {
    %c0_i32 = arith.constant 0 : i32
    %c0_i32_0 = arith.constant 0 : i32
    return %c0_i32, %arg0 : i32, i32
  }
  func.func @transform_2(%arg0: i32) -> (i32, i32) {
    %c0_i32 = arith.constant 0 : i32
    %c0_i32_0 = arith.constant 0 : i32
    return %c0_i32, %arg0 : i32, i32
  }
  func.func @transform_3(%arg0: i32) -> (i32, i32) {
    %c0_i32 = arith.constant 0 : i32
    %c0_i32_0 = arith.constant 0 : i32
    return %c0_i32, %arg0 : i32, i32
  }
}

module attributes {stable_mosaic.version = 11 : i64} {
  func.func @_mm_bn_kernel(%arg0: i32, %arg1: memref<128x128xbf16, #tpu.memory_space<vmem>>, %arg2: memref<128x512xbf16, #tpu.memory_space<vmem>>, %arg3: memref<128x512xbf16, #tpu.memory_space<vmem>>) attributes {dimension_semantics = [#tpu.dimension_semantics<parallel>], iteration_bounds = array<i64: 1>, scalar_prefetch = 0 : i64, scratch_operands = 0 : i64, tpu.core_type = #tpu.core_type<tc>, window_params = [{pipeline_mode = #tpu.pipeline_mode<synchronous>, transform_indices = @transform_0, window_bounds = array<i64: 128, 128>}, {transform_indices = @transform_1, window_bounds = array<i64: 128, 512>}, {transform_indices = @transform_2, window_bounds = array<i64: 128, 512>}]} {
    %c0 = arith.constant 0 : index
    %c0_0 = arith.constant 0 : index
    %0 = vector.load %arg1[%c0, %c0_0] : memref<128x128xbf16, #tpu.memory_space<vmem>>, vector<128x128xbf16>
    %c0_1 = arith.constant 0 : index
    %c0_2 = arith.constant 0 : index
    %1 = vector.load %arg2[%c0_1, %c0_2] : memref<128x512xbf16, #tpu.memory_space<vmem>>, vector<128x512xbf16>
    %cst = arith.constant dense<0.000000e+00> : vector<128x512xf32>
    %2 = tpu.matmul %0, %1, %cst {dimension_numbers = #tpu.dot_dimension_numbers<[1], [0], [0], [1], [0, 0, 1, 1], [], []>} : vector<128x128xbf16>, vector<128x512xbf16>, vector<128x512xf32> -> vector<128x512xf32>
    %cst_3 = arith.constant dense<0.000000e+00> : vector<512xf32>
    %3 = vector.multi_reduction <add>, %2, %cst_3 [0] : vector<128x512xf32> to vector<512xf32>
    %4 = vector.shape_cast %3 : vector<512xf32> to vector<1x512xf32>
    %5 = vector.extract_strided_slice %4 {offsets = [0, 0], sizes = [1, 128], strides = [1, 1]} : vector<1x512xf32> to vector<1x128xf32>
    %cst_4 = arith.constant 0.000000e+00 : f32
    %6 = vector.broadcast %cst_4 : f32 to vector<1x128xf32>
    %7 = arith.addf %6, %5 : vector<1x128xf32>
    %8 = vector.extract_strided_slice %4 {offsets = [0, 128], sizes = [1, 128], strides = [1, 1]} : vector<1x512xf32> to vector<1x128xf32>
    %9 = arith.addf %7, %8 : vector<1x128xf32>
    %10 = vector.extract_strided_slice %4 {offsets = [0, 256], sizes = [1, 128], strides = [1, 1]} : vector<1x512xf32> to vector<1x128xf32>
    %11 = arith.addf %9, %10 : vector<1x128xf32>
    %12 = vector.extract_strided_slice %4 {offsets = [0, 384], sizes = [1, 128], strides = [1, 1]} : vector<1x512xf32> to vector<1x128xf32>
    %13 = arith.addf %11, %12 : vector<1x128xf32>
    %cst_5 = arith.constant 5.120000e+02 : f32
    %14 = vector.broadcast %cst_5 : f32 to vector<1x128xf32>
    %15 = arith.divf %13, %14 : vector<1x128xf32>
    %cst_6 = arith.constant 0.000000e+00 : f32
    %16 = vector.broadcast %cst_6 : f32 to vector<1x128xf32>
    %17 = vector.extract_strided_slice %2 {offsets = [0, 0], sizes = [128, 128], strides = [1, 1]} : vector<128x512xf32> to vector<128x128xf32>
    %18 = vector.broadcast %15 : vector<1x128xf32> to vector<128x128xf32>
    %19 = arith.subf %17, %18 : vector<128x128xf32>
    %20 = arith.mulf %19, %19 : vector<128x128xf32>
    %cst_7 = arith.constant dense<0.000000e+00> : vector<128xf32>
    %21 = vector.multi_reduction <add>, %20, %cst_7 [0] : vector<128x128xf32> to vector<128xf32>
    %22 = vector.shape_cast %21 : vector<128xf32> to vector<1x128xf32>
    %23 = arith.addf %16, %22 : vector<1x128xf32>
    %24 = vector.extract_strided_slice %2 {offsets = [0, 128], sizes = [128, 128], strides = [1, 1]} : vector<128x512xf32> to vector<128x128xf32>
    %25 = vector.broadcast %15 : vector<1x128xf32> to vector<128x128xf32>
    %26 = arith.subf %24, %25 : vector<128x128xf32>
    %27 = arith.mulf %26, %26 : vector<128x128xf32>
    %cst_8 = arith.constant dense<0.000000e+00> : vector<128xf32>
    %28 = vector.multi_reduction <add>, %27, %cst_8 [0] : vector<128x128xf32> to vector<128xf32>
    %29 = vector.shape_cast %28 : vector<128xf32> to vector<1x128xf32>
    %30 = arith.addf %23, %29 : vector<1x128xf32>
    %31 = vector.extract_strided_slice %2 {offsets = [0, 256], sizes = [128, 128], strides = [1, 1]} : vector<128x512xf32> to vector<128x128xf32>
    %32 = vector.broadcast %15 : vector<1x128xf32> to vector<128x128xf32>
    %33 = arith.subf %31, %32 : vector<128x128xf32>
    %34 = arith.mulf %33, %33 : vector<128x128xf32>
    %cst_9 = arith.constant dense<0.000000e+00> : vector<128xf32>
    %35 = vector.multi_reduction <add>, %34, %cst_9 [0] : vector<128x128xf32> to vector<128xf32>
    %36 = vector.shape_cast %35 : vector<128xf32> to vector<1x128xf32>
    %37 = arith.addf %30, %36 : vector<1x128xf32>
    %38 = vector.extract_strided_slice %2 {offsets = [0, 384], sizes = [128, 128], strides = [1, 1]} : vector<128x512xf32> to vector<128x128xf32>
    %39 = vector.broadcast %15 : vector<1x128xf32> to vector<128x128xf32>
    %40 = arith.subf %38, %39 : vector<128x128xf32>
    %41 = arith.mulf %40, %40 : vector<128x128xf32>
    %cst_10 = arith.constant dense<0.000000e+00> : vector<128xf32>
    %42 = vector.multi_reduction <add>, %41, %cst_10 [0] : vector<128x128xf32> to vector<128xf32>
    %43 = vector.shape_cast %42 : vector<128xf32> to vector<1x128xf32>
    %44 = arith.addf %37, %43 : vector<1x128xf32>
    %cst_11 = arith.constant 5.120000e+02 : f32
    %45 = vector.broadcast %cst_11 : f32 to vector<1x128xf32>
    %46 = arith.divf %44, %45 : vector<1x128xf32>
    %cst_12 = arith.constant 9.99999974E-6 : f32
    %47 = vector.broadcast %cst_12 : f32 to vector<1x128xf32>
    %48 = arith.addf %46, %47 : vector<1x128xf32>
    %49 = math.rsqrt %48 : vector<1x128xf32>
    %50 = vector.extract_strided_slice %2 {offsets = [0, 0], sizes = [128, 128], strides = [1, 1]} : vector<128x512xf32> to vector<128x128xf32>
    %51 = vector.broadcast %15 : vector<1x128xf32> to vector<128x128xf32>
    %52 = arith.subf %50, %51 : vector<128x128xf32>
    %53 = vector.broadcast %49 : vector<1x128xf32> to vector<128x128xf32>
    %54 = arith.mulf %52, %53 : vector<128x128xf32>
    %cst_13 = arith.constant 0.000000e+00 : f32
    %55 = vector.broadcast %cst_13 : f32 to vector<128x128xf32>
    %56 = arith.maximumf %54, %55 : vector<128x128xf32>
    %57 = arith.truncf %56 : vector<128x128xf32> to vector<128x128xbf16>
    %c0_14 = arith.constant 0 : index
    %c0_15 = arith.constant 0 : index
    %58 = vector.load %arg3[%c0_14, %c0_15] : memref<128x512xbf16, #tpu.memory_space<vmem>>, vector<128x128xbf16>
    tpu.vector_store %arg3[%c0_14, %c0_15], %57 {strides = array<i32>} : memref<128x512xbf16, #tpu.memory_space<vmem>>, vector<128x128xbf16>,
    %59 = vector.extract_strided_slice %2 {offsets = [0, 128], sizes = [128, 128], strides = [1, 1]} : vector<128x512xf32> to vector<128x128xf32>
    %60 = vector.broadcast %15 : vector<1x128xf32> to vector<128x128xf32>
    %61 = arith.subf %59, %60 : vector<128x128xf32>
    %62 = vector.broadcast %49 : vector<1x128xf32> to vector<128x128xf32>
    %63 = arith.mulf %61, %62 : vector<128x128xf32>
    %cst_16 = arith.constant 0.000000e+00 : f32
    %64 = vector.broadcast %cst_16 : f32 to vector<128x128xf32>
    %65 = arith.maximumf %63, %64 : vector<128x128xf32>
    %66 = arith.truncf %65 : vector<128x128xf32> to vector<128x128xbf16>
    %c0_17 = arith.constant 0 : index
    %c128 = arith.constant 128 : index
    %67 = vector.load %arg3[%c0_17, %c128] : memref<128x512xbf16, #tpu.memory_space<vmem>>, vector<128x128xbf16>
    tpu.vector_store %arg3[%c0_17, %c128], %66 {strides = array<i32>} : memref<128x512xbf16, #tpu.memory_space<vmem>>, vector<128x128xbf16>,
    %68 = vector.extract_strided_slice %2 {offsets = [0, 256], sizes = [128, 128], strides = [1, 1]} : vector<128x512xf32> to vector<128x128xf32>
    %69 = vector.broadcast %15 : vector<1x128xf32> to vector<128x128xf32>
    %70 = arith.subf %68, %69 : vector<128x128xf32>
    %71 = vector.broadcast %49 : vector<1x128xf32> to vector<128x128xf32>
    %72 = arith.mulf %70, %71 : vector<128x128xf32>
    %cst_18 = arith.constant 0.000000e+00 : f32
    %73 = vector.broadcast %cst_18 : f32 to vector<128x128xf32>
    %74 = arith.maximumf %72, %73 : vector<128x128xf32>
    %75 = arith.truncf %74 : vector<128x128xf32> to vector<128x128xbf16>
    %c0_19 = arith.constant 0 : index
    %c256 = arith.constant 256 : index
    %76 = vector.load %arg3[%c0_19, %c256] : memref<128x512xbf16, #tpu.memory_space<vmem>>, vector<128x128xbf16>
    tpu.vector_store %arg3[%c0_19, %c256], %75 {strides = array<i32>} : memref<128x512xbf16, #tpu.memory_space<vmem>>, vector<128x128xbf16>,
    %77 = vector.extract_strided_slice %2 {offsets = [0, 384], sizes = [128, 128], strides = [1, 1]} : vector<128x512xf32> to vector<128x128xf32>
    %78 = vector.broadcast %15 : vector<1x128xf32> to vector<128x128xf32>
    %79 = arith.subf %77, %78 : vector<128x128xf32>
    %80 = vector.broadcast %49 : vector<1x128xf32> to vector<128x128xf32>
    %81 = arith.mulf %79, %80 : vector<128x128xf32>
    %cst_20 = arith.constant 0.000000e+00 : f32
    %82 = vector.broadcast %cst_20 : f32 to vector<128x128xf32>
    %83 = arith.maximumf %81, %82 : vector<128x128xf32>
    %84 = arith.truncf %83 : vector<128x128xf32> to vector<128x128xbf16>
    %c0_21 = arith.constant 0 : index
    %c384 = arith.constant 384 : index
    %85 = vector.load %arg3[%c0_21, %c384] : memref<128x512xbf16, #tpu.memory_space<vmem>>, vector<128x128xbf16>
    tpu.vector_store %arg3[%c0_21, %c384], %84 {strides = array<i32>} : memref<128x512xbf16, #tpu.memory_space<vmem>>, vector<128x128xbf16>,
    return
  }
  func.func @transform_0(%arg0: i32) -> (i32, i32) {
    %c0_i32 = arith.constant 0 : i32
    %c0_i32_0 = arith.constant 0 : i32
    %c0_i32_1 = arith.constant 0 : i32
    return %c0_i32, %c0_i32_0 : i32, i32
  }
  func.func @transform_1(%arg0: i32) -> (i32, i32) {
    %c0_i32 = arith.constant 0 : i32
    %c0_i32_0 = arith.constant 0 : i32
    return %c0_i32, %arg0 : i32, i32
  }
  func.func @transform_2(%arg0: i32) -> (i32, i32) {
    %c0_i32 = arith.constant 0 : i32
    %c0_i32_0 = arith.constant 0 : i32
    return %c0_i32, %arg0 : i32, i32
  }
}

</mosaic_0001>

<bundles_post_ra>
// kernel: bottleneck_forward.4
= control target key start
LH: loop header
LB: loop body
LE: loop exit
PB: predicated region body
PF: predicated region fallthrough
CT: control target
= control target key end

     0   :  { %v506_v37 = vmov 128.0   ;;  %s627_s1 = inlined_call_operand.vmem [shape: bf16[128,128], index: 1, kind: input, shape index: {}]   ;;  %s628_s0 = inlined_call_operand.vmem [shape: bf16[128,128], index: 0, kind: input, shape index: {}]   ;;  %s629_s2 = inlined_call_operand.vmem [shape: bf16[128,128], index: 2, kind: output, shape index: {}]  }
   0x1   :  { %v429_v0 = vld [vmem:[%s627_s1 + $0x38] sm:$0xff]  ;;  %v428_v1 = vld [vmem:[%s627_s1 + $0x30] sm:$0xff]  ;;  %v427_v2 = vld [vmem:[%s627_s1 + $0x28] sm:$0xff]  ;;  %502 = vrcp.f32 %v506_v37 }
   0x2   :  { %139 = vmatpush.bf16.msra.mxu0 %v429_v0  ;;  %477 = vmatpush.bf16.msra.mxu1 %v429_v0  ;;  %v426_v3 = vld [vmem:[%s627_s1 + $0x20] sm:$0xff]  ;;  %v425_v4 = vld [vmem:[%s627_s1 + $0x18] sm:$0xff]  ;;  %v424_v5 = vld [vmem:[%s627_s1 + $0x10] sm:$0xff] }
   0x3   :  { %478 = vmatpush.bf16.msra.mxu2 %v429_v0  ;;  %479 = vmatpush.bf16.msra.mxu3 %v429_v0  ;;  %v423_v6 = vld [vmem:[%s627_s1 + $0x8] sm:$0xff]  ;;  %v422_v7 = vld [vmem:[%s627_s1] sm:$0xff]  ;;  %v416_v9 = vld [vmem:[%s628_s0 + $0x10] sm:$0xff] }
   0x4   :  { %v414_v8 = vld [vmem:[%s628_s0] sm:$0xff]  ;;  %v420_v11 = vld [vmem:[%s628_s0 + $0x30] sm:$0xff]  ;;  %v415_v12 = vld [vmem:[%s628_s0 + $0x8] sm:$0xff] }
   0x5   :  { %v418_v10 = vld [vmem:[%s628_s0 + $0x20] sm:$0xff]  ;;  %v417_v13 = vld [vmem:[%s628_s0 + $0x18] sm:$0xff]  ;;  %v419_v14 = vld [vmem:[%s628_s0 + $0x28] sm:$0xff] }
   0x6   :  { %140 = vmatpush.bf16.msra.mxu0 %v428_v1  ;;  %480 = vmatpush.bf16.msra.mxu1 %v428_v1  ;;  %v421_v15 = vld [vmem:[%s628_s0 + $0x38] sm:$0xff] }
   0x7   :  { %481 = vmatpush.bf16.msra.mxu2 %v428_v1  ;;  %482 = vmatpush.bf16.msra.mxu3 %v428_v1  ;;  %v503_v42 = vpop.eup %502 }
   0x8   :  { %v210_v45 = vmul.f32 128.0, %v503_v42  ;;  %vm214_vm0 = vweird.f32 %v503_v42 }
   0xa   :  { %141 = vmatpush.bf16.msra.mxu0 %v427_v2  ;;  %483 = vmatpush.bf16.msra.mxu1 %v427_v2  ;;  %v211_v49 = vsub.f32 1.0, %v210_v45 }
   0xb   :  { %484 = vmatpush.bf16.msra.mxu2 %v427_v2  ;;  %485 = vmatpush.bf16.msra.mxu3 %v427_v2 }
   0xc   :  { %v212_v52 = vmul.f32 %v503_v42, %v211_v49 }
   0xe   :  { %142 = vmatpush.bf16.msra.mxu0 %v426_v3  ;;  %486 = vmatpush.bf16.msra.mxu1 %v426_v3  ;;  %v213_v55 = vadd.f32 %v503_v42, %v212_v52 }
   0xf   :  { %487 = vmatpush.bf16.msra.mxu2 %v426_v3  ;;  %488 = vmatpush.bf16.msra.mxu3 %v426_v3 }
  0x10   :  { %v215_v58 = vsel %vm214_vm0, %v503_v42, %v213_v55 }
  0x12   :  { %143 = vmatpush.bf16.msra.mxu0 %v425_v4  ;;  %489 = vmatpush.bf16.msra.mxu1 %v425_v4 }
  0x13   :  { %490 = vmatpush.bf16.msra.mxu2 %v425_v4  ;;  %491 = vmatpush.bf16.msra.mxu3 %v425_v4 }
  0x16   :  { %144 = vmatpush.bf16.msra.mxu0 %v424_v5  ;;  %492 = vmatpush.bf16.msra.mxu1 %v424_v5 }
  0x17   :  { %493 = vmatpush.bf16.msra.mxu2 %v424_v5  ;;  %494 = vmatpush.bf16.msra.mxu3 %v424_v5 }
  0x1a   :  { %145 = vmatpush.bf16.msra.mxu0 %v423_v6  ;;  %495 = vmatpush.bf16.msra.mxu1 %v423_v6 }
  0x1b   :  { %496 = vmatpush.bf16.msra.mxu2 %v423_v6  ;;  %497 = vmatpush.bf16.msra.mxu3 %v423_v6 }
  0x1e   :  { %146 = vmatpush.bf16.msra.mxu0 %v422_v7  ;;  %498 = vmatpush.bf16.msra.mxu1 %v422_v7 }
  0x1f   :  { %499 = vmatpush.bf16.msra.mxu2 %v422_v7  ;;  %500 = vmatpush.bf16.msra.mxu3 %v422_v7 }
  0x21   :  { %147 = vmatmul.bf16.vlgmr.msra.gmra.mxu0 %v414_v8  ;;  %157 = vmatmul.bf16.vlgmr.msra.gmra.mxu1 %v416_v9 }
  0x22   :  { %167 = vmatmul.bf16.vlgmr.msra.gmra.mxu2 %v418_v10  ;;  %177 = vmatmul.bf16.vlgmr.msra.gmra.mxu3 %v420_v11 }
  0x31   :  { %152 = vmatmul.bf16.gmra.mxu0 %v415_v12  ;;  %162 = vmatmul.bf16.gmra.mxu1 %v417_v13 }
  0x32   :  { %172 = vmatmul.bf16.gmra.mxu2 %v419_v14  ;;  %182 = vmatmul.bf16.gmra.mxu3 %v421_v15 }
  0x9e   :  { %v148_v16 = vpop.f32.mrf.mxu0  ;;  %v158_v17 = vpop.f32.mrf.mxu1 }
  0xa5   :  { %v168_v19 = vpop.f32.mrf.mxu2  ;;  %v570_v22 = vpop.f32.mrf.mxu3 }
  0xa6   :  { %v150_v18 = vpop.f32.mrf.mxu0  ;;  %v160_v20 = vpop.f32.mrf.mxu1 }
  0xa7   :  { %v188_v24 = vadd.f32 %v150_v18, %v148_v16 }
  0xad   :  { %v170_v23 = vpop.f32.mrf.mxu2  ;;  %v572_v30 = vpop.f32.mrf.mxu3 }
  0xae   :  { %v153_v21 = vpop.f32.mrf.mxu0  ;;  %v163_v25 = vpop.f32.mrf.mxu1 }
  0xaf   :  { %v189_v26 = vadd.f32 %v188_v24, %v153_v21 }
  0xb5   :  { %v173_v32 = vpop.f32.mrf.mxu2  ;;  %v183_v39 = vpop.f32.mrf.mxu3 }
  0xb6   :  { %v155_v27 = vpop.f32.mrf.mxu0  ;;  %v165_v34 = vpop.f32.mrf.mxu1 }
  0xb7   :  { %v190_v28 = vadd.f32 %v189_v26, %v155_v27 }
  0xb9   :  { %v191_v29 = vadd.f32 %v190_v28, %v158_v17 }
  0xbb   :  { %v192_v31 = vadd.f32 %v191_v29, %v160_v20 }
  0xbd   :  { %v193_v33 = vadd.f32 %v192_v31, %v163_v25  ;;  %v175_v41 = vpop.f32.mrf.mxu2  ;;  %v185_v48 = vpop.f32.mrf.mxu3 }
  0xbf   :  { %v194_v35 = vadd.f32 %v193_v33, %v165_v34 }
  0xc1   :  { %v195_v36 = vadd.f32 %v194_v35, %v168_v19 }
  0xc3   :  { %v196_v38 = vadd.f32 %v195_v36, %v170_v23 }
  0xc5   :  { %v197_v40 = vadd.f32 %v196_v38, %v173_v32 }
  0xc7   :  { %v198_v43 = vadd.f32 %v197_v40, %v175_v41 }
  0xc9   :  { %v199_v44 = vadd.f32 %v198_v43, %v570_v22 }
  0xcb   :  { %v200_v46 = vadd.f32 %v199_v44, %v572_v30 }
  0xcd   :  { %v201_v47 = vadd.f32 %v200_v46, %v183_v39 }
  0xcf   :  { %v202_v50 = vadd.f32 %v201_v47, %v185_v48 }
  0xd1   :  { %v203_v51 = vrot.slane %v202_v50, 4 }
  0xd3   :  { %v204_v53 = vadd.f32 %v203_v51, %v202_v50 }
  0xd5   :  { %v205_v54 = vrot.slane %v204_v53, 2 }
  0xd7   :  { %v206_v56 = vadd.f32 %v205_v54, %v204_v53 }
  0xd9   :  { %v207_v57 = vrot.slane %v206_v56, 1 }
  0xdb   :  { %v208_v59 = vadd.f32 %v207_v57, %v206_v56 }
  0xdd   :  { %v216_v60 = vmul.f32 %v215_v58, %v208_v59 }
  0xdf   :  { %v576_v61 = vsub.f32 %v148_v16, %v216_v60  ;;  %v578_v62 = vsub.f32 %v150_v18, %v216_v60  ;;  %v580_v63 = vsub.f32 %v153_v21, %v216_v60  ;;  %v586_v2 = vsub.f32 %v155_v27, %v216_v60 }
  0xe0   :  { %v588_v3 = vsub.f32 %v158_v17, %v216_v60  ;;  %v222_v6 = vsub.f32 %v160_v20, %v216_v60  ;;  %v223_v9 = vsub.f32 %v163_v25, %v216_v60  ;;  %v224_v12 = vsub.f32 %v165_v34, %v216_v60 }
  0xe1   :  { %v233_v0 = vmul.f32 %v576_v61, %v576_v61  ;;  %v234_v1 = vmul.f32 %v578_v62, %v578_v62  ;;  %v235_v4 = vmul.f32 %v580_v63, %v580_v63  ;;  %v236_v7 = vmul.f32 %v586_v2, %v586_v2 }
  0xe2   :  { %v237_v10 = vmul.f32 %v588_v3, %v588_v3  ;;  %v238_v13 = vmul.f32 %v222_v6, %v222_v6  ;;  %v225_v15 = vsub.f32 %v168_v19, %v216_v60  ;;  %v239_v16 = vmul.f32 %v223_v9, %v223_v9 }
  0xe3   :  { %v249_v5 = vadd.f32 %v234_v1, %v233_v0  ;;  %v226_v18 = vsub.f32 %v170_v23, %v216_v60  ;;  %v240_v21 = vmul.f32 %v224_v12, %v224_v12  ;;  %v227_v26 = vsub.f32 %v173_v32, %v216_v60 }
  0xe4   :  { %v241_v20 = vmul.f32 %v225_v15, %v225_v15  ;;  %v228_v28 = vsub.f32 %v175_v41, %v216_v60  ;;  %v229_v25 = vsub.f32 %v570_v22, %v216_v60  ;;  %v230_v34 = vsub.f32 %v572_v30, %v216_v60 }
  0xe5   :  { %v250_v8 = vadd.f32 %v249_v5, %v235_v4  ;;  %v242_v29 = vmul.f32 %v226_v18, %v226_v18  ;;  %v243_v33 = vmul.f32 %v227_v26, %v227_v26  ;;  %v231_v19 = vsub.f32 %v183_v39, %v216_v60 }
  0xe6   :  { %v244_v36 = vmul.f32 %v228_v28, %v228_v28  ;;  %v245_v38 = vmul.f32 %v229_v25, %v229_v25  ;;  %v232_v23 = vsub.f32 %v185_v48, %v216_v60  ;;  %v246_v42 = vmul.f32 %v230_v34, %v230_v34 }
  0xe7   :  { %v251_v11 = vadd.f32 %v250_v8, %v236_v7  ;;  %v247_v32 = vmul.f32 %v231_v19, %v231_v19 }
  0xe8   :  { %v248_v45 = vmul.f32 %v232_v23, %v232_v23 }
  0xe9   :  { %v252_v14 = vadd.f32 %v251_v11, %v237_v10 }
  0xeb   :  { %v253_v17 = vadd.f32 %v252_v14, %v238_v13 }
  0xed   :  { %v254_v24 = vadd.f32 %v253_v17, %v239_v16 }
  0xef   :  { %v255_v27 = vadd.f32 %v254_v24, %v240_v21 }
  0xf1   :  { %v256_v31 = vadd.f32 %v255_v27, %v241_v20 }
  0xf3   :  { %v257_v35 = vadd.f32 %v256_v31, %v242_v29 }
  0xf5   :  { %v258_v37 = vadd.f32 %v257_v35, %v243_v33 }
  0xf7   :  { %v259_v40 = vadd.f32 %v258_v37, %v244_v36 }
  0xf9   :  { %v260_v43 = vadd.f32 %v259_v40, %v245_v38 }
  0xfb   :  { %v261_v44 = vadd.f32 %v260_v43, %v246_v42 }
  0xfd   :  { %v262_v41 = vadd.f32 %v261_v44, %v247_v32 }
  0xff   :  { %v263_v46 = vadd.f32 %v262_v41, %v248_v45 }
 0x101   :  { %v264_v47 = vrot.slane %v263_v46, 4 }
 0x103   :  { %v265_v49 = vadd.f32 %v264_v47, %v263_v46 }
 0x105   :  { %v266_v22 = vrot.slane %v265_v49, 2 }
 0x107   :  { %v267_v50 = vadd.f32 %v266_v22, %v265_v49 }
 0x109   :  { %v268_v51 = vrot.slane %v267_v50, 1 }
 0x10b   :  { %v269_v52 = vadd.f32 %v268_v51, %v267_v50 }
 0x10d   :  { %v270_v30 = vmul.f32 %v269_v52, %v215_v58 }
 0x10f   :  { %v271_v53 = vadd.f32 1e-05, %v270_v30 }
 0x111   :  { %504 = vrsqrt.f32 %v271_v53  ;;  %vm278_vm2 = vweird.f32 %v271_v53 }
 0x117   :  { %v505_v39 = vpop.eup %504 }
 0x118   :  { %v273_v54 = vmul.f32 %v505_v39, %v271_v53  ;;  %vm279_vm1 = vweird.f32 %v505_v39 }
 0x119   :  { %vm280_vm3 = vmor %vm278_vm2, %vm279_vm1 }
 0x11a   :  { %v274_v55 = vmul.f32 %v505_v39, %v273_v54 }
 0x11c   :  { %v275_v48 = vmul.f32 0.5, %v274_v55 }
 0x11e   :  { %v276_v56 = vsub.f32 1.5, %v275_v48 }
 0x120   :  { %v277_v57 = vmul.f32 %v505_v39, %v276_v56 }
 0x122   :  { %v281_v59 = vsel %vm280_vm3, %v505_v39, %v277_v57 }
 0x123   :  { %v282_v60 = vmul.f32 %v281_v59, %v576_v61  ;;  %v283_v0 = vmul.f32 %v281_v59, %v578_v62  ;;  %v284_v1 = vmul.f32 %v281_v59, %v580_v63  ;;  %v285_v58 = vmul.f32 %v281_v59, %v586_v2 }
 0x124   :  { %v286_v4 = vmul.f32 %v281_v59, %v588_v3  ;;  %v287_v5 = vmul.f32 %v281_v59, %v222_v6  ;;  %v288_v7 = vmul.f32 %v281_v59, %v223_v9  ;;  %v289_v8 = vmul.f32 %v281_v59, %v224_v12 }
 0x125   :  { %v290_v10 = vmul.f32 %v281_v59, %v225_v15  ;;  %v291_v11 = vmul.f32 %v281_v59, %v226_v18  ;;  %v292_v13 = vmul.f32 %v281_v59, %v227_v26  ;;  %v293_v14 = vmul.f32 %v281_v59, %v228_v28 }
 0x126   :  { %v294_v16 = vmul.f32 %v281_v59, %v229_v25  ;;  %v295_v17 = vmul.f32 %v281_v59, %v230_v34  ;;  %v296_v21 = vmul.f32 %v281_v59, %v231_v19  ;;  %v297_v24 = vmul.f32 %v281_v59, %v232_v23 }
 0x127   :  { %v298_v61 = vmax.f32 %v282_v60, 0.0  ;;  %v299_v20 = vmax.f32 %v283_v0, 0.0  ;;  %v300_v62 = vmax.f32 %v284_v1, 0.0  ;;  %v301_v27 = vmax.f32 %v285_v58, 0.0 }
 0x128   :  { %v302_v63 = vmax.f32 %v286_v4, 0.0  ;;  %v303_v29 = vmax.f32 %v287_v5, 0.0  ;;  %v304_v2 = vmax.f32 %v288_v7, 0.0  ;;  %v305_v31 = vmax.f32 %v289_v8, 0.0 }
 0x129   :  { %v306_v3 = vmax.f32 %v290_v10, 0.0  ;;  %v307_v6 = vmax.f32 %v291_v11, 0.0  ;;  %v308_v9 = vmax.f32 %v292_v13, 0.0  ;;  %v309_v12 = vmax.f32 %v293_v14, 0.0 }
 0x12a   :  { %v310_v15 = vmax.f32 %v294_v16, 0.0  ;;  %v311_v18 = vmax.f32 %v295_v17, 0.0  ;;  %v433_v26 = vpack.c.bf16 %v299_v20, %v298_v61  ;;  %v438_v28 = vpack.c.bf16 %v301_v27, %v300_v62 }
 0x12b   :  { %v443_v25 = vpack.c.bf16 %v303_v29, %v302_v63  ;;  %v312_v33 = vmax.f32 %v296_v21, 0.0  ;;  %v313_v35 = vmax.f32 %v297_v24, 0.0  ;;  %v448_v34 = vpack.c.bf16 %v305_v31, %v304_v2 }
 0x12c   :  { %434 = vst [vmem:[%s629_s2] sm:$0xff] %v433_v26   ;;  %v453_v36 = vpack.c.bf16 %v307_v6, %v306_v3  ;;  %v458_v37 = vpack.c.bf16 %v309_v12, %v308_v9  ;;  %v463_v19 = vpack.c.bf16 %v311_v18, %v310_v15 }
 0x12d   :  { %470 = vst [vmem:[%s629_s2 + $0x8] sm:$0xff] %v438_v28   ;;  %v468_v38 = vpack.c.bf16 %v313_v35, %v312_v33 }
 0x12e   :  { %471 = vst [vmem:[%s629_s2 + $0x10] sm:$0xff] %v443_v25  }
 0x12f   :  { %472 = vst [vmem:[%s629_s2 + $0x18] sm:$0xff] %v448_v34  }
 0x130   :  { %473 = vst [vmem:[%s629_s2 + $0x20] sm:$0xff] %v453_v36  }
 0x131   :  { %474 = vst [vmem:[%s629_s2 + $0x28] sm:$0xff] %v458_v37  }
 0x132   :  { %475 = vst [vmem:[%s629_s2 + $0x30] sm:$0xff] %v463_v19  }
 0x133   :  { %476 = vst [vmem:[%s629_s2 + $0x38] sm:$0xff] %v468_v38  }

// kernel: bottleneck_forward.6
= control target key start
LH: loop header
LB: loop body
LE: loop exit
PB: predicated region body
PF: predicated region fallthrough
CT: control target
= control target key end

     0   :  { %7 = vsyncpa [#allocation3], 0  ;;  %s1234_s12 = smov [#allocation2]   ;;  %s1235_s14 = smov 256   ;;  %s2184_s0 = inlined_call_operand.vmem [shape: bf16[128,128], index: 0, kind: input, shape index: {}]   ;;  %s2185_s1 = inlined_call_operand.hbm [shape: bf16[128,512], index: 1, kind: input, shape index: {}]   ;;  %s2186_s2 = inlined_call_operand.vmem [shape: bf16[128,512], index: 2, kind: output, shape index: {}]  }
   0x1   :  { %s14_s11 = sshll.u32 %s2185_s1, 4  ;;  %s16_s13 = sshll.u32 %s1234_s12, 4  ;;  %s15_s11 = int_to_ptr.hbm [resolvable:$true] %s14_s11  ;;  %s17_s13 = int_to_ptr.vmem [resolvable:$true] %s16_s13 }
   0x2   :  { %s1236_s15 = smov 16  }
   0x3   :  { %22 = dma.hbm_to_vmem [thread:$0]  %s15_s11, 4096, %s17_s13, [#allocation3], %s1235_s14, %s1235_s14, %s1236_s15  }
   0x4   :  { %1232 = dma.done.wait [#allocation3], 4096  }
   0x5   :  { %1233 = vsyncadd [#allocation3], 4294963200  ;;  %v1146_v0 = vld [vmem:[#allocation2 + $0xe0] sm:$0xf]  ;;  %v1198_v1 = vld [vmem:[#allocation2 + $0xec] sm:$0xf0] }
   0x6   :  { %v1196_v2 = vld [vmem:[#allocation2 + $0xe4] sm:$0xf]  ;;  %v1147_v3 = vor.u32 %v1198_v1, %v1146_v0  ;;  %v1148_v4 = vld [vmem:[#allocation2 + $0xf0] sm:$0xf0]  ;;  %v1154_v5 = vld [vmem:[#allocation2 + $0xe8] sm:$0xf] }
   0x7   :  { %v1199_v6 = vld [vmem:[#allocation2 + $0xf4] sm:$0xf0]  ;;  %v1151_v7 = vor.u32 %v1196_v2, %v1148_v4  ;;  %v1197_v9 = vld [vmem:[#allocation2 + $0xec] sm:$0xf]  ;;  %v1156_v10 = vld [vmem:[#allocation2 + $0xf8] sm:$0xf0] }
   0x8   :  { %v1155_v8 = vor.u32 %v1199_v6, %v1154_v5  ;;  %v1130_v11 = vld [vmem:[#allocation2 + $0xc0] sm:$0xf]  ;;  %283 = vmatpush.bf16.msra.mxu0 %v1147_v3  ;;  %v1159_v12 = vor.u32 %v1197_v9, %v1156_v10  ;;  %v1194_v13 = vld [vmem:[#allocation2 + $0xcc] sm:$0xf0]  ;;  %v1192_v14 = vld [vmem:[#allocation2 + $0xc4] sm:$0xf] }
   0x9   :  { %v1132_v15 = vld [vmem:[#allocation2 + $0xd0] sm:$0xf0]  ;;  %332 = vmatpush.bf16.msra.mxu1 %v1151_v7  ;;  %v1131_v16 = vor.u32 %v1194_v13, %v1130_v11  ;;  %v1138_v18 = vld [vmem:[#allocation2 + $0xc8] sm:$0xf]  ;;  %v1195_v19 = vld [vmem:[#allocation2 + $0xd4] sm:$0xf0] }
   0xa   :  { %381 = vmatpush.bf16.msra.mxu2 %v1155_v8  ;;  %v1135_v17 = vor.u32 %v1192_v14, %v1132_v15  ;;  %v1193_v20 = vld [vmem:[#allocation2 + $0xcc] sm:$0xf]  ;;  %430 = vmatpush.bf16.msra.mxu3 %v1159_v12  ;;  %v1139_v21 = vor.u32 %v1195_v19, %v1138_v18  ;;  %v1140_v22 = vld [vmem:[#allocation2 + $0xd8] sm:$0xf0]  ;;  %v1114_v23 = vld [vmem:[#allocation2 + $0xa0] sm:$0xf] }
   0xb   :  { %v1190_v24 = vld [vmem:[#allocation2 + $0xac] sm:$0xf0]  ;;  %v1143_v25 = vor.u32 %v1193_v20, %v1140_v22  ;;  %v1188_v26 = vld [vmem:[#allocation2 + $0xa4] sm:$0xf]  ;;  %v1116_v27 = vld [vmem:[#allocation2 + $0xb0] sm:$0xf0] }
   0xc   :  { %v1122_v28 = vld [vmem:[#allocation2 + $0xa8] sm:$0xf]  ;;  %284 = vmatpush.bf16.msra.mxu0 %v1131_v16  ;;  %v1115_v29 = vor.u32 %v1190_v24, %v1114_v23  ;;  %v1191_v30 = vld [vmem:[#allocation2 + $0xb4] sm:$0xf0]  ;;  %v1189_v31 = vld [vmem:[#allocation2 + $0xac] sm:$0xf]  ;;  %v1119_v33 = vor.u32 %v1188_v26, %v1116_v27 }
   0xd   :  { %v1124_v32 = vld [vmem:[#allocation2 + $0xb8] sm:$0xf0]  ;;  %333 = vmatpush.bf16.msra.mxu1 %v1135_v17  ;;  %v1123_v34 = vor.u32 %v1191_v30, %v1122_v28  ;;  %v1098_v35 = vld [vmem:[#allocation2 + $0x80] sm:$0xf]  ;;  %v1186_v36 = vld [vmem:[#allocation2 + $0x8c] sm:$0xf0] }
   0xe   :  { %382 = vmatpush.bf16.msra.mxu2 %v1139_v21  ;;  %v1184_v37 = vld [vmem:[#allocation2 + $0x84] sm:$0xf]  ;;  %431 = vmatpush.bf16.msra.mxu3 %v1143_v25  ;;  %v1127_v38 = vor.u32 %v1189_v31, %v1124_v32  ;;  %v1100_v39 = vld [vmem:[#allocation2 + $0x90] sm:$0xf0]  ;;  %v1106_v40 = vld [vmem:[#allocation2 + $0x88] sm:$0xf]  ;;  %v1099_v44 = vor.u32 %v1186_v36, %v1098_v35 }
   0xf   :  { %v1187_v41 = vld [vmem:[#allocation2 + $0x94] sm:$0xf0]  ;;  %v1185_v42 = vld [vmem:[#allocation2 + $0x8c] sm:$0xf]  ;;  %v1108_v43 = vld [vmem:[#allocation2 + $0x98] sm:$0xf0]  ;;  %v1103_v45 = vor.u32 %v1184_v37, %v1100_v39 }
  0x10   :  { %285 = vmatpush.bf16.msra.mxu0 %v1115_v29  ;;  %v1107_v46 = vor.u32 %v1187_v41, %v1106_v40  ;;  %v1082_v47 = vld [vmem:[#allocation2 + $0x60] sm:$0xf]  ;;  %v1182_v48 = vld [vmem:[#allocation2 + $0x6c] sm:$0xf0]  ;;  %v1180_v49 = vld [vmem:[#allocation2 + $0x64] sm:$0xf]  ;;  %v1111_v50 = vor.u32 %v1185_v42, %v1108_v43 }
  0x11   :  { %334 = vmatpush.bf16.msra.mxu1 %v1119_v33  ;;  %v1084_v51 = vld [vmem:[#allocation2 + $0x70] sm:$0xf0]  ;;  %v1090_v52 = vld [vmem:[#allocation2 + $0x68] sm:$0xf]  ;;  %v1183_v53 = vld [vmem:[#allocation2 + $0x74] sm:$0xf0]  ;;  %v1083_v56 = vor.u32 %v1182_v48, %v1082_v47 }
  0x12   :  { %383 = vmatpush.bf16.msra.mxu2 %v1123_v34  ;;  %432 = vmatpush.bf16.msra.mxu3 %v1127_v38  ;;  %v1181_v54 = vld [vmem:[#allocation2 + $0x6c] sm:$0xf]  ;;  %v1092_v55 = vld [vmem:[#allocation2 + $0x78] sm:$0xf0]  ;;  %v1087_v57 = vor.u32 %v1180_v49, %v1084_v51  ;;  %v1091_v58 = vor.u32 %v1183_v53, %v1090_v52  ;;  %v1066_v59 = vld [vmem:[#allocation2 + $0x40] sm:$0xf] }
  0x13   :  { %v1178_v60 = vld [vmem:[#allocation2 + $0x4c] sm:$0xf0]  ;;  %v1176_v61 = vld [vmem:[#allocation2 + $0x44] sm:$0xf]  ;;  %v1095_v62 = vor.u32 %v1181_v54, %v1092_v55  ;;  %v1068_v63 = vld [vmem:[#allocation2 + $0x50] sm:$0xf0] }
  0x14   :  { %286 = vmatpush.bf16.msra.mxu0 %v1099_v44  ;;  %v1074_v0 = vld [vmem:[#allocation2 + $0x48] sm:$0xf]  ;;  %v1179_v1 = vld [vmem:[#allocation2 + $0x54] sm:$0xf0]  ;;  %v1177_v2 = vld [vmem:[#allocation2 + $0x4c] sm:$0xf]  ;;  %v1067_v4 = vor.u32 %v1178_v60, %v1066_v59  ;;  %v1071_v5 = vor.u32 %v1176_v61, %v1068_v63 }
  0x15   :  { %335 = vmatpush.bf16.msra.mxu1 %v1103_v45  ;;  %v1076_v3 = vld [vmem:[#allocation2 + $0x58] sm:$0xf0]  ;;  %v1075_v6 = vor.u32 %v1179_v1, %v1074_v0  ;;  %v1050_v7 = vld [vmem:[#allocation2 + $0x20] sm:$0xf]  ;;  %v1174_v8 = vld [vmem:[#allocation2 + $0x2c] sm:$0xf0] }
  0x16   :  { %384 = vmatpush.bf16.msra.mxu2 %v1107_v46  ;;  %433 = vmatpush.bf16.msra.mxu3 %v1111_v50  ;;  %v1172_v9 = vld [vmem:[#allocation2 + $0x24] sm:$0xf]  ;;  %v1079_v10 = vor.u32 %v1177_v2, %v1076_v3  ;;  %v1052_v11 = vld [vmem:[#allocation2 + $0x30] sm:$0xf0]  ;;  %v1058_v12 = vld [vmem:[#allocation2 + $0x28] sm:$0xf]  ;;  %v1051_v16 = vor.u32 %v1174_v8, %v1050_v7 }
  0x17   :  { %v1175_v13 = vld [vmem:[#allocation2 + $0x34] sm:$0xf0]  ;;  %v1173_v14 = vld [vmem:[#allocation2 + $0x2c] sm:$0xf]  ;;  %v1060_v15 = vld [vmem:[#allocation2 + $0x38] sm:$0xf0]  ;;  %v1055_v17 = vor.u32 %v1172_v9, %v1052_v11 }
  0x18   :  { %287 = vmatpush.bf16.msra.mxu0 %v1083_v56  ;;  %v1059_v18 = vor.u32 %v1175_v13, %v1058_v12  ;;  %v1034_v19 = vld [vmem:[#allocation2] sm:$0xf]  ;;  %v1170_v20 = vld [vmem:[#allocation2 + $0xc] sm:$0xf0]  ;;  %v1168_v21 = vld [vmem:[#allocation2 + $0x4] sm:$0xf]  ;;  %v1063_v22 = vor.u32 %v1173_v14, %v1060_v15 }
  0x19   :  { %336 = vmatpush.bf16.msra.mxu1 %v1087_v57  ;;  %v1036_v23 = vld [vmem:[#allocation2 + $0x10] sm:$0xf0]  ;;  %v1042_v24 = vld [vmem:[#allocation2 + $0x8] sm:$0xf]  ;;  %v1171_v25 = vld [vmem:[#allocation2 + $0x14] sm:$0xf0]  ;;  %v1035_v28 = vor.u32 %v1170_v20, %v1034_v19 }
  0x1a   :  { %385 = vmatpush.bf16.msra.mxu2 %v1091_v58  ;;  %434 = vmatpush.bf16.msra.mxu3 %v1095_v62  ;;  %v1169_v26 = vld [vmem:[#allocation2 + $0xc] sm:$0xf]  ;;  %v1044_v27 = vld [vmem:[#allocation2 + $0x18] sm:$0xf0]  ;;  %v1039_v29 = vor.u32 %v1168_v21, %v1036_v23  ;;  %v1043_v30 = vor.u32 %v1171_v25, %v1042_v24  ;;  %v1160_v32 = vld [vmem:[%s2184_s0] sm:$0xff] }
  0x1b   :  { %v1047_v31 = vor.u32 %v1169_v26, %v1044_v27  ;;  %v1161_v33 = vld [vmem:[%s2184_s0 + $0x8] sm:$0xff]  ;;  %v1162_v34 = vld [vmem:[%s2184_s0 + $0x10] sm:$0xff]  ;;  %v1163_v35 = vld [vmem:[%s2184_s0 + $0x18] sm:$0xff] }
  0x1c   :  { %288 = vmatpush.bf16.msra.mxu0 %v1067_v4  ;;  %v1164_v36 = vld [vmem:[%s2184_s0 + $0x20] sm:$0xff]  ;;  %v1165_v37 = vld [vmem:[%s2184_s0 + $0x28] sm:$0xff]  ;;  %v1166_v38 = vld [vmem:[%s2184_s0 + $0x30] sm:$0xff] }
  0x1d   :  { %337 = vmatpush.bf16.msra.mxu1 %v1071_v5  ;;  %v1167_v39 = vld [vmem:[%s2184_s0 + $0x38] sm:$0xff] }
  0x1e   :  { %386 = vmatpush.bf16.msra.mxu2 %v1075_v6  ;;  %435 = vmatpush.bf16.msra.mxu3 %v1079_v10 }
  0x20   :  { %289 = vmatpush.bf16.msra.mxu0 %v1051_v16 }
  0x21   :  { %338 = vmatpush.bf16.msra.mxu1 %v1055_v17 }
  0x22   :  { %387 = vmatpush.bf16.msra.mxu2 %v1059_v18  ;;  %436 = vmatpush.bf16.msra.mxu3 %v1063_v22 }
  0x24   :  { %290 = vmatpush.bf16.msra.mxu0 %v1035_v28 }
  0x25   :  { %339 = vmatpush.bf16.msra.mxu1 %v1039_v29 }
  0x26   :  { %388 = vmatpush.bf16.msra.mxu2 %v1043_v30  ;;  %437 = vmatpush.bf16.msra.mxu3 %v1047_v31 }
  0x27   :  { %291 = vmatmul.bf16.vlgmr.msra.gmra.mxu0 %v1160_v32 }
  0x28   :  { %340 = vmatmul.bf16.vlgmr.msra.gmra.mxu1 %v1160_v32 }
  0x29   :  { %389 = vmatmul.bf16.vlgmr.msra.gmra.mxu2 %v1160_v32  ;;  %438 = vmatmul.bf16.vlgmr.msra.gmra.mxu3 %v1160_v32 }
  0x37   :  { %296 = vmatmul.bf16.gmra.mxu0 %v1161_v33 }
  0x38   :  { %345 = vmatmul.bf16.gmra.mxu1 %v1161_v33 }
  0x39   :  { %394 = vmatmul.bf16.gmra.mxu2 %v1161_v33  ;;  %443 = vmatmul.bf16.gmra.mxu3 %v1161_v33 }
  0x47   :  { %301 = vmatmul.bf16.gmra.mxu0 %v1162_v34 }
  0x48   :  { %350 = vmatmul.bf16.gmra.mxu1 %v1162_v34 }
  0x49   :  { %399 = vmatmul.bf16.gmra.mxu2 %v1162_v34  ;;  %448 = vmatmul.bf16.gmra.mxu3 %v1162_v34 }
  0x57   :  { %306 = vmatmul.bf16.gmra.mxu0 %v1163_v35 }
  0x58   :  { %355 = vmatmul.bf16.gmra.mxu1 %v1163_v35 }
  0x59   :  { %404 = vmatmul.bf16.gmra.mxu2 %v1163_v35  ;;  %453 = vmatmul.bf16.gmra.mxu3 %v1163_v35 }
  0x67   :  { %311 = vmatmul.bf16.gmra.mxu0 %v1164_v36 }
  0x68   :  { %360 = vmatmul.bf16.gmra.mxu1 %v1164_v36 }
  0x69   :  { %409 = vmatmul.bf16.gmra.mxu2 %v1164_v36  ;;  %458 = vmatmul.bf16.gmra.mxu3 %v1164_v36 }
  0x77   :  { %316 = vmatmul.bf16.gmra.mxu0 %v1165_v37 }
  0x78   :  { %365 = vmatmul.bf16.gmra.mxu1 %v1165_v37 }
  0x79   :  { %414 = vmatmul.bf16.gmra.mxu2 %v1165_v37  ;;  %463 = vmatmul.bf16.gmra.mxu3 %v1165_v37 }
  0x87   :  { %321 = vmatmul.bf16.gmra.mxu0 %v1166_v38 }
  0x88   :  { %370 = vmatmul.bf16.gmra.mxu1 %v1166_v38 }
  0x89   :  { %419 = vmatmul.bf16.gmra.mxu2 %v1166_v38  ;;  %468 = vmatmul.bf16.gmra.mxu3 %v1166_v38 }
  0x97   :  { %326 = vmatmul.bf16.gmra.mxu0 %v1167_v39 }
  0x98   :  { %375 = vmatmul.bf16.gmra.mxu1 %v1167_v39 }
  0x99   :  { %424 = vmatmul.bf16.gmra.mxu2 %v1167_v39  ;;  %473 = vmatmul.bf16.gmra.mxu3 %v1167_v39 }
  0xa4   :  { %v1280_v40 = vpop.f32.mrf.mxu0 }
  0xa5   :  { %v1282_v41 = vpop.f32.mrf.mxu1 }
  0xac   :  { %v1284_v42 = vpop.f32.mrf.mxu2  ;;  %v1286_v43 = vpop.f32.mrf.mxu3 }
  0xad   :  { %2243 = vst [vmem:[#allocation5_spill] sm:$0xff] %v1286_v43  ;;  %v1288_v44 = vpop.f32.mrf.mxu0  ;;  %v1290_v45 = vpop.f32.mrf.mxu1 }
  0xae   :  { %v479_v22 = vadd.f32 %v1288_v44, %v1280_v40  ;;  %v500_v23 = vadd.f32 %v1290_v45, %v1282_v41 }
  0xb4   :  { %v1292_v46 = vpop.f32.mrf.mxu2  ;;  %v1294_v47 = vpop.f32.mrf.mxu3 }
  0xb5   :  { %2244 = vst [vmem:[#allocation6_spill] sm:$0xff] %v1294_v47  ;;  %v1296_v48 = vpop.f32.mrf.mxu0  ;;  %v1298_v49 = vpop.f32.mrf.mxu1  ;;  %v521_v33 = vadd.f32 %v1292_v46, %v1284_v42  ;;  %v542_v35 = vadd.f32 %v1294_v47, %v1286_v43 }
  0xb6   :  { %v480_v24 = vadd.f32 %v479_v22, %v1296_v48  ;;  %v501_v26 = vadd.f32 %v500_v23, %v1298_v49 }
  0xbc   :  { %v1300_v50 = vpop.f32.mrf.mxu2  ;;  %v1302_v51 = vpop.f32.mrf.mxu3 }
  0xbd   :  { %2245 = vst [vmem:[#allocation7_spill] sm:$0xff] %v1302_v51  ;;  %v1304_v52 = vpop.f32.mrf.mxu0  ;;  %v1306_v53 = vpop.f32.mrf.mxu1  ;;  %v522_v37 = vadd.f32 %v521_v33, %v1300_v50  ;;  %v543_v39 = vadd.f32 %v542_v35, %v1302_v51 }
  0xbe   :  { %v481_v29 = vadd.f32 %v480_v24, %v1304_v52  ;;  %v502_v31 = vadd.f32 %v501_v26, %v1306_v53 }
  0xc4   :  { %v1308_v54 = vpop.f32.mrf.mxu2  ;;  %v1310_v55 = vpop.f32.mrf.mxu3 }
  0xc5   :  { %2246 = vst [vmem:[#allocation8_spill] sm:$0xff] %v1310_v55  ;;  %v1312_v56 = vpop.f32.mrf.mxu0  ;;  %v1314_v57 = vpop.f32.mrf.mxu1  ;;  %v523_v24 = vadd.f32 %v522_v37, %v1308_v54 }
  0xc6   :  { %v482_v32 = vadd.f32 %v481_v29, %v1312_v56  ;;  %v503_v34 = vadd.f32 %v502_v31, %v1314_v57 }
  0xcc   :  { %v1316_v58 = vpop.f32.mrf.mxu2  ;;  %v1318_v59 = vpop.f32.mrf.mxu3 }
  0xcd   :  { %2247 = vst [vmem:[#allocation9_spill] sm:$0xff] %v1316_v58  ;;  %v1320_v60 = vpop.f32.mrf.mxu0  ;;  %v1322_v61 = vpop.f32.mrf.mxu1 }
  0xce   :  { %2248 = vst [vmem:[#allocation10_spill] sm:$0xff] %v1318_v59  ;;  %v483_v36 = vadd.f32 %v482_v32, %v1320_v60  ;;  %v504_v38 = vadd.f32 %v503_v34, %v1322_v61  ;;  %v544_v32 = vadd.f32 %v543_v39, %v1310_v55  ;;  %v524_v34 = vadd.f32 %v523_v24, %v1316_v58 }
  0xd4   :  { %v1324_v62 = vpop.f32.mrf.mxu2  ;;  %v1326_v63 = vpop.f32.mrf.mxu3 }
  0xd5   :  { %2249 = vst [vmem:[#allocation11_spill] sm:$0xff] %v1326_v63  ;;  %v1328_v0 = vpop.f32.mrf.mxu0  ;;  %v1330_v1 = vpop.f32.mrf.mxu1 }
  0xd6   :  { %v484_v22 = vadd.f32 %v483_v36, %v1328_v0  ;;  %v505_v26 = vadd.f32 %v504_v38, %v1330_v1  ;;  %v545_v36 = vadd.f32 %v544_v32, %v1318_v59  ;;  %v525_v38 = vadd.f32 %v524_v34, %v1324_v62 }
  0xd7   :  { %v1237_v59 = vmov 512.0  }
  0xd8   :  { %v546_v43 = vadd.f32 %v545_v36, %v1326_v63  ;;  %1204 = vrcp.f32 %v1237_v59 }
  0xdc   :  { %v1332_v2 = vpop.f32.mrf.mxu2  ;;  %v1334_v3 = vpop.f32.mrf.mxu3 }
  0xdd   :  { %2250 = vst [vmem:[#allocation12_spill] sm:$0xff] %v1334_v3  ;;  %v1336_v4 = vpop.f32.mrf.mxu0  ;;  %v1338_v5 = vpop.f32.mrf.mxu1  ;;  %v547_v24 = vadd.f32 %v546_v43, %v1334_v3 }
  0xde   :  { %v485_v33 = vadd.f32 %v484_v22, %v1336_v4  ;;  %v506_v35 = vadd.f32 %v505_v26, %v1338_v5  ;;  %v526_v22 = vadd.f32 %v525_v38, %v1332_v2 }
  0xe4   :  { %v1340_v6 = vpop.f32.mrf.mxu2  ;;  %v1342_v7 = vpop.f32.mrf.mxu3 }
  0xe5   :  { %2251 = vst [vmem:[#allocation13_spill] sm:$0xff] %v1342_v7  ;;  %v1344_v8 = vpop.f32.mrf.mxu0  ;;  %v1346_v9 = vpop.f32.mrf.mxu1  ;;  %v527_v32 = vadd.f32 %v526_v22, %v1340_v6  ;;  %v548_v36 = vadd.f32 %v547_v24, %v1342_v7 }
  0xe6   :  { %v486_v37 = vadd.f32 %v485_v33, %v1344_v8  ;;  %v507_v51 = vadd.f32 %v506_v35, %v1346_v9 }
  0xec   :  { %v1348_v10 = vpop.f32.mrf.mxu2  ;;  %v1350_v11 = vpop.f32.mrf.mxu3 }
  0xed   :  { %2252 = vst [vmem:[#allocation14_spill] sm:$0xff] %v1348_v10  ;;  %v1352_v12 = vpop.f32.mrf.mxu0  ;;  %v1354_v13 = vpop.f32.mrf.mxu1  ;;  %v528_v43 = vadd.f32 %v527_v32, %v1348_v10 }
  0xee   :  { %2253 = vst [vmem:[#allocation15_spill] sm:$0xff] %v1350_v11  ;;  %v487_v39 = vadd.f32 %v486_v37, %v1352_v12  ;;  %v508_v55 = vadd.f32 %v507_v51, %v1354_v13 }
  0xf4   :  { %v1356_v14 = vpop.f32.mrf.mxu2  ;;  %v1358_v15 = vpop.f32.mrf.mxu3 }
  0xf5   :  { %2254 = vst [vmem:[#allocation16_spill] sm:$0xff] %v1356_v14  ;;  %v1360_v16 = vpop.f32.mrf.mxu0  ;;  %v1362_v17 = vpop.f32.mrf.mxu1 }
  0xf6   :  { %2255 = vst [vmem:[#allocation17_spill] sm:$0xff] %v1358_v15  ;;  %v488_v26 = vadd.f32 %v487_v39, %v1360_v16  ;;  %v509_v33 = vadd.f32 %v508_v55, %v1362_v17  ;;  %v549_v39 = vadd.f32 %v548_v36, %v1350_v11  ;;  %v529_v55 = vadd.f32 %v528_v43, %v1356_v14 }
  0xf8   :  { %v550_v63 = vadd.f32 %v549_v39, %v1358_v15 }
  0xfc   :  { %v1364_v18 = vpop.f32.mrf.mxu2  ;;  %v1366_v19 = vpop.f32.mrf.mxu3 }
  0xfd   :  { %2256 = vst [vmem:[#allocation18_spill] sm:$0xff] %v1364_v18  ;;  %v1368_v20 = vpop.f32.mrf.mxu0  ;;  %v1370_v21 = vpop.f32.mrf.mxu1  ;;  %v551_v32 = vadd.f32 %v550_v63, %v1366_v19 }
  0xfe   :  { %2257 = vst [vmem:[#allocation19_spill] sm:$0xff] %v1366_v19  ;;  %v489_v37 = vadd.f32 %v488_v26, %v1368_v20  ;;  %v510_v51 = vadd.f32 %v509_v33, %v1370_v21  ;;  %v530_v26 = vadd.f32 %v529_v55, %v1364_v18 }
 0x104   :  { %v1377_v25 = vpop.f32.mrf.mxu2  ;;  %v1380_v27 = vpop.f32.mrf.mxu3 }
 0x105   :  { %2258 = vst [vmem:[#allocation20_spill] sm:$0xff] %v1377_v25  ;;  %v1382_v28 = vpop.f32.mrf.mxu0  ;;  %v1385_v30 = vpop.f32.mrf.mxu1 }
 0x106   :  { %2259 = vst [vmem:[#allocation21_spill] sm:$0xff] %v1380_v27  ;;  %v490_v22 = vadd.f32 %v489_v37, %v1382_v28  ;;  %v511_v3 = vadd.f32 %v510_v51, %v1385_v30  ;;  %v531_v37 = vadd.f32 %v530_v26, %v1377_v25  ;;  %v1205_v26 = vpop.eup %1204 }
 0x107   :  { %vm572_vm0 = vweird.f32 %v1205_v26 }
 0x10c   :  { %v1399_v23 = vpop.f32.mrf.mxu2  ;;  %v1403_v29 = vpop.f32.mrf.mxu3 }
 0x10d   :  { %2260 = vst [vmem:[#allocation22_spill] sm:$0xff] %v1399_v23  ;;  %v1405_v31 = vpop.f32.mrf.mxu0  ;;  %v1409_v47 = vpop.f32.mrf.mxu1  ;;  %v532_v59 = vadd.f32 %v531_v37, %v1399_v23  ;;  %v568_v37 = vmul.f32 512.0, %v1205_v26 }
 0x10e   :  { %2261 = vst [vmem:[#allocation23_spill] sm:$0xff] %v1403_v29  ;;  %v491_v24 = vadd.f32 %v490_v22, %v1405_v31  ;;  %v512_v7 = vadd.f32 %v511_v3, %v1409_v47  ;;  %v552_v22 = vadd.f32 %v551_v32, %v1380_v27 }
 0x10f   :  { %2262 = vst [vmem:[#allocation24_spill] sm:$0xff] %v1409_v47 }
 0x114   :  { %v1423_v58 = vpop.f32.mrf.mxu2  ;;  %v1427_v34 = vpop.f32.mrf.mxu3 }
 0x115   :  { %2263 = vst [vmem:[#allocation25_spill] sm:$0xff] %v1423_v58  ;;  %v1429_v35 = vpop.f32.mrf.mxu0  ;;  %v1433_v38 = vpop.f32.mrf.mxu1 }
 0x116   :  { %2264 = vst [vmem:[#allocation26_spill] sm:$0xff] %v1427_v34  ;;  %v492_v33 = vadd.f32 %v491_v24, %v1429_v35  ;;  %v513_v43 = vadd.f32 %v512_v7, %v1433_v38  ;;  %v553_v24 = vadd.f32 %v552_v22, %v1403_v29  ;;  %v533_v7 = vadd.f32 %v532_v59, %v1423_v58 }
 0x117   :  { %2265 = vst [vmem:[#allocation27_spill] sm:$0xff] %v1433_v38 }
 0x118   :  { %v554_v11 = vadd.f32 %v553_v24, %v1427_v34 }
 0x11c   :  { %v1447_v36 = vpop.f32.mrf.mxu2  ;;  %v1451_v51 = vpop.f32.mrf.mxu3 }
 0x11d   :  { %2266 = vst [vmem:[#allocation28_spill] sm:$0xff] %v1447_v36  ;;  %v1453_v39 = vpop.f32.mrf.mxu0  ;;  %v1457_v55 = vpop.f32.mrf.mxu1  ;;  %v534_v32 = vadd.f32 %v533_v7, %v1447_v36 }
 0x11e   :  { %2267 = vst [vmem:[#allocation29_spill] sm:$0xff] %v1451_v51  ;;  %v493_v3 = vadd.f32 %v492_v33, %v1453_v39  ;;  %v514_v63 = vadd.f32 %v513_v43, %v1457_v55  ;;  %v555_v33 = vadd.f32 %v554_v11, %v1451_v51 }
 0x11f   :  { %2268 = vst [vmem:[#allocation30_spill] sm:$0xff] %v1457_v55 }
 0x120   :  { %v494_v19 = vrot.slane %v493_v3, 4  ;;  %v515_v15 = vrot.slane %v514_v63, 4 }
 0x122   :  { %v495_v25 = vadd.f32 %v494_v19, %v493_v3  ;;  %v516_v27 = vadd.f32 %v515_v15, %v514_v63  ;;  %v569_v3 = vsub.f32 1.0, %v568_v37 }
 0x124   :  { %v496_v18 = vrot.slane %v495_v25, 2  ;;  %v1466_v14 = vpop.f32.mrf.mxu2  ;;  %v517_v43 = vrot.slane %v516_v27, 2  ;;  %v1469_v29 = vpop.f32.mrf.mxu3  ;;  %v570_v36 = vmul.f32 %v1205_v26, %v569_v3 }
 0x125   :  { %2269 = vst [vmem:[#allocation31_spill] sm:$0xff] %v1466_v14  ;;  %v535_v22 = vadd.f32 %v534_v32, %v1466_v14  ;;  %v556_v59 = vadd.f32 %v555_v33, %v1469_v29 }
 0x126   :  { %2270 = vst [vmem:[#allocation32_spill] sm:$0xff] %v1469_v29  ;;  %v497_v23 = vadd.f32 %v496_v18, %v495_v25  ;;  %v518_v58 = vadd.f32 %v517_v43, %v516_v27  ;;  %v571_v18 = vadd.f32 %v1205_v26, %v570_v36 }
 0x127   :  { %v536_v24 = vrot.slane %v535_v22, 4  ;;  %v557_v19 = vrot.slane %v556_v59, 4 }
 0x128   :  { %v498_v7 = vrot.slane %v497_v23, 1  ;;  %v519_v15 = vrot.slane %v518_v58, 1  ;;  %v1472_v37 = vsel %vm572_vm0, %v1205_v26, %v571_v18 }
 0x129   :  { %v537_v63 = vadd.f32 %v536_v24, %v535_v22  ;;  %v558_v11 = vadd.f32 %v557_v19, %v556_v59 }
 0x12a   :  { %v499_v55 = vadd.f32 %v498_v7, %v497_v23  ;;  %v520_v10 = vadd.f32 %v519_v15, %v518_v58 }
 0x12b   :  { %v538_v51 = vrot.slane %v537_v63, 2  ;;  %v559_v34 = vrot.slane %v558_v11, 2 }
 0x12c   :  { %v564_v25 = vadd.f32 %v520_v10, %v499_v55 }
 0x12d   :  { %v539_v38 = vadd.f32 %v538_v51, %v537_v63  ;;  %v560_v32 = vadd.f32 %v559_v34, %v558_v11 }
 0x12f   :  { %v540_v14 = vrot.slane %v539_v38, 1  ;;  %v561_v47 = vrot.slane %v560_v32, 1 }
 0x131   :  { %v541_v33 = vadd.f32 %v540_v14, %v539_v38  ;;  %v562_v43 = vadd.f32 %v561_v47, %v560_v32 }
 0x133   :  { %v565_v27 = vadd.f32 %v564_v25, %v541_v33 }
 0x135   :  { %v566_v29 = vadd.f32 %v565_v27, %v562_v43 }
 0x137   :  { %v1475_v22 = vmul.f32 %v1472_v37, %v566_v29 }
 0x139   :  { %v1479_v23 = vsub.f32 %v1280_v40, %v1475_v22  ;;  %v1483_v58 = vsub.f32 %v1288_v44, %v1475_v22  ;;  %v1487_v10 = vsub.f32 %v1296_v48, %v1475_v22  ;;  %v1495_v29 = vsub.f32 %v1304_v52, %v1475_v22 }
 0x13a   :  { %v1499_v40 = vsub.f32 %v1312_v56, %v1475_v22  ;;  %v1505_v48 = vsub.f32 %v1282_v41, %v1475_v22  ;;  %v1509_v38 = vsub.f32 %v1290_v45, %v1475_v22  ;;  %v1513_v52 = vsub.f32 %v1320_v60, %v1475_v22 }
 0x13b   :  { %v591_v47 = vmul.f32 %v1479_v23, %v1479_v23  ;;  %v592_v14 = vmul.f32 %v1483_v58, %v1483_v58  ;;  %v593_v44 = vmul.f32 %v1487_v10, %v1487_v10  ;;  %v594_v56 = vmul.f32 %v1495_v29, %v1495_v29 }
 0x13c   :  { %v1519_v51 = vsub.f32 %v1328_v0, %v1475_v22  ;;  %v595_v41 = vmul.f32 %v1499_v40, %v1499_v40  ;;  %v1525_v45 = vsub.f32 %v1298_v49, %v1475_v22  ;;  %v645_v60 = vmul.f32 %v1505_v48, %v1505_v48 }
 0x13d   :  { %v607_v34 = vadd.f32 %v592_v14, %v591_v47  ;;  %v646_v26 = vmul.f32 %v1509_v38, %v1509_v38  ;;  %v1533_v59 = vsub.f32 %v1336_v4, %v1475_v22  ;;  %v596_v0 = vmul.f32 %v1513_v52, %v1513_v52 }
 0x13e   :  { %v1539_v19 = vsub.f32 %v1306_v53, %v1475_v22  ;;  %v1543_v49 = vsub.f32 %v1344_v8, %v1475_v22  ;;  %v597_v3 = vmul.f32 %v1519_v51, %v1519_v51  ;;  %v1549_v4 = vsub.f32 %v1314_v57, %v1475_v22 }
 0x13f   :  { %v608_v36 = vadd.f32 %v607_v34, %v593_v44  ;;  %v647_v15 = vmul.f32 %v1525_v45, %v1525_v45  ;;  %v661_v63 = vadd.f32 %v646_v26, %v645_v60  ;;  %v1555_v53 = vsub.f32 %v1352_v12, %v1475_v22 }
 0x140   :  { %v598_v8 = vmul.f32 %v1533_v59, %v1533_v59  ;;  %v1561_v32 = vsub.f32 %v1360_v16, %v1475_v22  ;;  %v1565_v57 = vsub.f32 %v1322_v61, %v1475_v22  ;;  %v648_v18 = vmul.f32 %v1539_v19, %v1539_v19 }
 0x141   :  { %v609_v55 = vadd.f32 %v608_v36, %v594_v56  ;;  %v662_v25 = vadd.f32 %v661_v63, %v647_v15  ;;  %v599_v12 = vmul.f32 %v1543_v49, %v1543_v49  ;;  %v1573_v27 = vsub.f32 %v1284_v42, %v1475_v22 }
 0x142   :  { %v1577_v16 = vsub.f32 %v1292_v46, %v1475_v22  ;;  %v1581_v61 = vsub.f32 %v1330_v1, %v1475_v22  ;;  %v649_v43 = vmul.f32 %v1549_v4, %v1549_v4  ;;  %v1587_v14 = vsub.f32 %v1368_v20, %v1475_v22 }
 0x143   :  { %v610_v24 = vadd.f32 %v609_v55, %v595_v41  ;;  %v663_v47 = vadd.f32 %v662_v25, %v648_v18  ;;  %v1591_v42 = vsub.f32 %v1382_v28, %v1475_v22  ;;  %v600_v46 = vmul.f32 %v1555_v53, %v1555_v53 }
 0x144   :  { %v601_v1 = vmul.f32 %v1561_v32, %v1561_v32  ;;  %v1599_v34 = vsub.f32 %v1338_v5, %v1475_v22  ;;  %v650_v56 = vmul.f32 %v1565_v57, %v1565_v57  ;;  %v1605_v28 = vsub.f32 %v1300_v50, %v1475_v22 }
 0x145   :  { %v611_v7 = vadd.f32 %v610_v24, %v596_v0  ;;  %v664_v20 = vadd.f32 %v663_v47, %v649_v43  ;;  %v699_v41 = vmul.f32 %v1573_v27, %v1573_v27  ;;  %v700_v55 = vmul.f32 %v1577_v16, %v1577_v16 }
 0x146   :  { %v1613_v60 = vsub.f32 %v1405_v31, %v1475_v22  ;;  %v1617_v5 = vsub.f32 %v1346_v9, %v1475_v22  ;;  %v651_v26 = vmul.f32 %v1581_v61, %v1581_v61  ;;  %v1623_v50 = vsub.f32 %v1429_v35, %v1475_v22 }
 0x147   :  { %v612_v11 = vadd.f32 %v611_v7, %v597_v3  ;;  %v665_v0 = vadd.f32 %v664_v20, %v650_v56  ;;  %v602_v24 = vmul.f32 %v1587_v14, %v1587_v14  ;;  %v1629_v31 = vsub.f32 %v1308_v54, %v1475_v22 }
 0x148   :  { %v603_v9 = vmul.f32 %v1591_v42, %v1591_v42  ;;  %v1635_v7 = vsub.f32 %v1354_v13, %v1475_v22  ;;  %v652_v15 = vmul.f32 %v1599_v34, %v1599_v34  ;;  %v701_v54 = vmul.f32 %v1605_v28, %v1605_v28 }
 0x149   :  { %v613_v33 = vadd.f32 %v612_v11, %v598_v8  ;;  %2271 = vst [vmem:[#allocation33_spill] sm:$0xff] %v1629_v31  ;;  %v666_v35 = vadd.f32 %v665_v0, %v651_v26  ;;  %v2272_v8 = vld [vmem:[#allocation9_spill] sm:$0xff]  ;;  %v715_v18 = vadd.f32 %v700_v55, %v699_v41  ;;  %v1647_v25 = vsub.f32 %v1453_v39, %v1475_v22 }
 0x14a   :  { %v1641_v11 = vsub.f32 %v2272_v8, %v1475_v22  ;;  %v1651_v13 = vsub.f32 %v1362_v17, %v1475_v22  ;;  %v1657_v47 = vsub.f32 %v1324_v62, %v1475_v22  ;;  %v604_v39 = vmul.f32 %v1613_v60, %v1613_v60  ;;  %v2276_v26 = vld [vmem:[#allocation5_spill] sm:$0xff]  ;;  %v2282_v8 = vld [vmem:[#allocation27_spill] sm:$0xff] }
 0x14b   :  { %v614_v44 = vadd.f32 %v613_v33, %v599_v12  ;;  %v653_v12 = vmul.f32 %v1617_v5, %v1617_v5  ;;  %v667_v33 = vadd.f32 %v666_v35, %v652_v15  ;;  %v1665_v17 = vsub.f32 %v1370_v21, %v1475_v22  ;;  %v2281_v35 = vld [vmem:[#allocation24_spill] sm:$0xff] }
 0x14c   :  { %2273 = vst [vmem:[#allocation9_spill] sm:$0xff] %v1641_v11  ;;  %v1671_v20 = vsub.f32 %v1385_v30, %v1475_v22  ;;  %v1675_v62 = vsub.f32 %v1332_v2, %v1475_v22  ;;  %v655_v21 = vmul.f32 %v1651_v13, %v1651_v13  ;;  %v1683_v0 = vsub.f32 %v2276_v26, %v1475_v22 }
 0x14d   :  { %v615_v36 = vadd.f32 %v614_v44, %v600_v46  ;;  %2274 = vst [vmem:[#allocation34_spill] sm:$0xff] %v1657_v47  ;;  %v702_v46 = vmul.f32 %v1629_v31, %v1629_v31  ;;  %v716_v44 = vadd.f32 %v715_v18, %v701_v54  ;;  %v668_v56 = vadd.f32 %v667_v33, %v653_v12  ;;  %v2283_v33 = vld [vmem:[#allocation14_spill] sm:$0xff] }
 0x14e   :  { %2275 = vst [vmem:[#allocation35_spill] sm:$0xff] %v1675_v62  ;;  %v605_v2 = vmul.f32 %v1623_v50, %v1623_v50  ;;  %v1703_v54 = vsub.f32 %v2282_v8, %v1475_v22  ;;  %v656_v18 = vmul.f32 %v1665_v17, %v1665_v17  ;;  %v753_v26 = vmul.f32 %v1683_v0, %v1683_v0 }
 0x14f   :  { %v616_v3 = vadd.f32 %v615_v36, %v601_v1  ;;  %v654_v1 = vmul.f32 %v1635_v7, %v1635_v7  ;;  %v703_v36 = vmul.f32 %v1641_v11, %v1641_v11  ;;  %v717_v41 = vadd.f32 %v716_v44, %v702_v46  ;;  %2277 = vst [vmem:[#allocation5_spill] sm:$0xff] %v1683_v0  ;;  %v2292_v0 = vld [vmem:[#allocation18_spill] sm:$0xff] }
 0x150   :  { %v1711_v46 = vsub.f32 %v2283_v33, %v1475_v22  ;;  %v705_v44 = vmul.f32 %v1675_v62, %v1675_v62 }
 0x151   :  { %v617_v63 = vadd.f32 %v616_v3, %v602_v24  ;;  %v669_v55 = vadd.f32 %v668_v56, %v654_v1  ;;  %v2278_v24 = vld [vmem:[#allocation6_spill] sm:$0xff]  ;;  %v1693_v3 = vsub.f32 %v1340_v6, %v1475_v22  ;;  %v718_v15 = vadd.f32 %v717_v41, %v703_v36  ;;  %v2285_v36 = vld [vmem:[#allocation7_spill] sm:$0xff] }
 0x152   :  { %v1687_v30 = vsub.f32 %v2278_v24, %v1475_v22  ;;  %v657_v6 = vmul.f32 %v1671_v20, %v1671_v20  ;;  %2284 = vst [vmem:[#allocation24_spill] sm:$0xff] %v1711_v46  ;;  %v1717_v41 = vsub.f32 %v2285_v36, %v1475_v22  ;;  %v2290_v36 = vld [vmem:[#allocation8_spill] sm:$0xff] }
 0x153   :  { %v618_v43 = vadd.f32 %v617_v63, %v603_v9  ;;  %2280 = vst [vmem:[#allocation36_spill] sm:$0xff] %v1693_v3  ;;  %v704_v9 = vmul.f32 %v1657_v47, %v1657_v47  ;;  %v1699_v63 = vsub.f32 %v2281_v35, %v1475_v22  ;;  %v670_v12 = vadd.f32 %v669_v55, %v655_v21  ;;  %v2287_v55 = vld [vmem:[#allocation30_spill] sm:$0xff]  ;;  %v2288_v35 = vld [vmem:[#allocation16_spill] sm:$0xff] }
 0x154   :  { %2279 = vst [vmem:[#allocation6_spill] sm:$0xff] %v1687_v30  ;;  %v754_v21 = vmul.f32 %v1687_v30, %v1687_v30  ;;  %v1725_v24 = vsub.f32 %v2287_v55, %v1475_v22  ;;  %v1729_v8 = vsub.f32 %v2288_v35, %v1475_v22  ;;  %v1737_v30 = vsub.f32 %v2290_v36, %v1475_v22  ;;  %v2296_v36 = vld [vmem:[#allocation20_spill] sm:$0xff] }
 0x155   :  { %v719_v1 = vadd.f32 %v718_v15, %v704_v9  ;;  %v671_v56 = vadd.f32 %v670_v12, %v656_v18  ;;  %2286 = vst [vmem:[#allocation27_spill] sm:$0xff] %v1717_v41  ;;  %v706_v9 = vmul.f32 %v1693_v3, %v1693_v3  ;;  %v619_v18 = vadd.f32 %v618_v43, %v604_v39  ;;  %v2294_v39 = vld [vmem:[#allocation10_spill] sm:$0xff] }
 0x156   :  { %2289 = vst [vmem:[#allocation14_spill] sm:$0xff] %v1729_v8  ;;  %v658_v12 = vmul.f32 %v1699_v63, %v1699_v63  ;;  %v659_v55 = vmul.f32 %v1703_v54, %v1703_v54  ;;  %v1743_v35 = vsub.f32 %v2292_v0, %v1475_v22  ;;  %v707_v3 = vmul.f32 %v1711_v46, %v1711_v46  ;;  %v2298_v46 = vld [vmem:[#allocation11_spill] sm:$0xff] }
 0x157   :  { %v720_v15 = vadd.f32 %v719_v1, %v705_v44  ;;  %v672_v33 = vadd.f32 %v671_v56, %v657_v6  ;;  %2291 = vst [vmem:[#allocation7_spill] sm:$0xff] %v1737_v30  ;;  %v1749_v1 = vsub.f32 %v2294_v39, %v1475_v22  ;;  %v755_v6 = vmul.f32 %v1717_v41, %v1717_v41 }
 0x158   :  { %2293 = vst [vmem:[#allocation30_spill] sm:$0xff] %v1743_v35  ;;  %v769_v56 = vadd.f32 %v754_v21, %v753_v26  ;;  %v1755_v62 = vsub.f32 %v2296_v36, %v1475_v22  ;;  %v708_v0 = vmul.f32 %v1729_v8, %v1729_v8  ;;  %v606_v26 = vmul.f32 %v1647_v25, %v1647_v25  ;;  %v2300_v21 = vld [vmem:[#allocation22_spill] sm:$0xff] }
 0x159   :  { %v721_v44 = vadd.f32 %v720_v15, %v706_v9  ;;  %v673_v43 = vadd.f32 %v672_v33, %v658_v12  ;;  %2295 = vst [vmem:[#allocation16_spill] sm:$0xff] %v1749_v1  ;;  %v1761_v9 = vsub.f32 %v2298_v46, %v1475_v22  ;;  %v620_v15 = vadd.f32 %v619_v18, %v605_v2  ;;  %v2302_v2 = vld [vmem:[#allocation12_spill] sm:$0xff] }
 0x15a   :  { %2297 = vst [vmem:[#allocation8_spill] sm:$0xff] %v1755_v62  ;;  %v756_v33 = vmul.f32 %v1737_v30, %v1737_v30  ;;  %v770_v39 = vadd.f32 %v769_v56, %v755_v6  ;;  %v1769_v36 = vsub.f32 %v2300_v21, %v1475_v22  ;;  %v660_v46 = vmul.f32 %v1725_v24, %v1725_v24  ;;  %v2304_v6 = vld [vmem:[#allocation25_spill] sm:$0xff] }
 0x15b   :  { %v722_v47 = vadd.f32 %v721_v44, %v707_v3  ;;  %2299 = vst [vmem:[#allocation18_spill] sm:$0xff] %v1761_v9  ;;  %v674_v12 = vadd.f32 %v673_v43, %v659_v55  ;;  %v709_v3 = vmul.f32 %v1743_v35, %v1743_v35  ;;  %v1777_v18 = vsub.f32 %v2302_v2, %v1475_v22 }
 0x15c   :  { %2301 = vst [vmem:[#allocation10_spill] sm:$0xff] %v1769_v36  ;;  %v757_v55 = vmul.f32 %v1749_v1, %v1749_v1  ;;  %v771_v43 = vadd.f32 %v770_v39, %v756_v33  ;;  %v1783_v56 = vsub.f32 %v2304_v6, %v1475_v22  ;;  %v710_v21 = vmul.f32 %v1755_v62, %v1755_v62  ;;  %v2308_v33 = vld [vmem:[#allocation28_spill] sm:$0xff] }
 0x15d   :  { %v723_v44 = vadd.f32 %v722_v47, %v708_v0  ;;  %2303 = vst [vmem:[#allocation20_spill] sm:$0xff] %v1777_v18  ;;  %v2306_v47 = vld [vmem:[#allocation13_spill] sm:$0xff]  ;;  %v621_v41 = vadd.f32 %v620_v15, %v606_v26  ;;  %v675_v35 = vadd.f32 %v674_v12, %v660_v46  ;;  %v758_v2 = vmul.f32 %v1761_v9, %v1761_v9  ;;  %v2312_v26 = vld [vmem:[#allocation31_spill] sm:$0xff] }
 0x15e   :  { %2305 = vst [vmem:[#allocation11_spill] sm:$0xff] %v1783_v56  ;;  %v1789_v0 = vsub.f32 %v2306_v47, %v1475_v22  ;;  %v772_v8 = vadd.f32 %v771_v43, %v757_v55  ;;  %v1795_v39 = vsub.f32 %v2308_v33, %v1475_v22  ;;  %v711_v6 = vmul.f32 %v1769_v36, %v1769_v36  ;;  %v2314_v47 = vld [vmem:[#allocation17_spill] sm:$0xff] }
 0x15f   :  { %v724_v30 = vadd.f32 %v723_v44, %v709_v3  ;;  %v2310_v3 = vld [vmem:[#allocation15_spill] sm:$0xff]  ;;  %v759_v15 = vmul.f32 %v1777_v18, %v1777_v18  ;;  %v1807_v46 = vsub.f32 %v2312_v26, %v1475_v22  ;;  %v712_v55 = vmul.f32 %v1783_v56, %v1783_v56  ;;  %v2318_v36 = vld [vmem:[#allocation21_spill] sm:$0xff] }
 0x160   :  { %2307 = vst [vmem:[#allocation22_spill] sm:$0xff] %v1789_v0  ;;  %v1801_v44 = vsub.f32 %v2310_v3, %v1475_v22  ;;  %v773_v12 = vadd.f32 %v772_v8, %v758_v2  ;;  %v1813_v33 = vsub.f32 %v2314_v47, %v1475_v22  ;;  %v760_v3 = vmul.f32 %v1789_v0, %v1789_v0  ;;  %v2316_v26 = vld [vmem:[#allocation19_spill] sm:$0xff] }
 0x161   :  { %2309 = vst [vmem:[#allocation12_spill] sm:$0xff] %v1795_v39  ;;  %v725_v1 = vadd.f32 %v724_v30, %v710_v21  ;;  %v622_v30 = vrot.slane %v621_v41, 4  ;;  %v676_v21 = vrot.slane %v675_v35, 4  ;;  %v713_v8 = vmul.f32 %v1795_v39, %v1795_v39  ;;  %v2320_v39 = vld [vmem:[#allocation23_spill] sm:$0xff] }
 0x162   :  { %2311 = vst [vmem:[#allocation25_spill] sm:$0xff] %v1801_v44  ;;  %v774_v9 = vadd.f32 %v773_v12, %v759_v15  ;;  %v1821_v18 = vsub.f32 %v2316_v26, %v1475_v22  ;;  %v714_v47 = vmul.f32 %v1807_v46, %v1807_v46  ;;  %v1829_v0 = vsub.f32 %v2318_v36, %v1475_v22 }
 0x163   :  { %2313 = vst [vmem:[#allocation13_spill] sm:$0xff] %v1807_v46  ;;  %v726_v43 = vadd.f32 %v725_v1, %v711_v6  ;;  %v761_v1 = vmul.f32 %v1801_v44, %v1801_v44  ;;  %v623_v15 = vadd.f32 %v622_v30, %v621_v41  ;;  %v677_v12 = vadd.f32 %v676_v21, %v675_v35 }
 0x164   :  { %2315 = vst [vmem:[#allocation28_spill] sm:$0xff] %v1813_v33  ;;  %v775_v6 = vadd.f32 %v774_v9, %v760_v3  ;;  %v1835_v62 = vsub.f32 %v2320_v39, %v1475_v22  ;;  %v763_v9 = vmul.f32 %v1821_v18, %v1821_v18  ;;  %v764_v30 = vmul.f32 %v1829_v0, %v1829_v0 }
 0x165   :  { %v727_v2 = vadd.f32 %v726_v43, %v712_v55  ;;  %2317 = vst [vmem:[#allocation15_spill] sm:$0xff] %v1821_v18  ;;  %v762_v55 = vmul.f32 %v1813_v33, %v1813_v33  ;;  %v624_v41 = vrot.slane %v623_v15, 2  ;;  %v678_v35 = vrot.slane %v677_v12, 2 }
 0x166   :  { %2319 = vst [vmem:[#allocation31_spill] sm:$0xff] %v1829_v0  ;;  %v776_v43 = vadd.f32 %v775_v6, %v761_v1  ;;  %v2324_v1 = vld [vmem:[#allocation29_spill] sm:$0xff]  ;;  %v765_v6 = vmul.f32 %v1835_v62, %v1835_v62 }
 0x167   :  { %v728_v56 = vadd.f32 %v727_v2, %v713_v8  ;;  %2321 = vst [vmem:[#allocation17_spill] sm:$0xff] %v1835_v62  ;;  %v2322_v2 = vld [vmem:[#allocation26_spill] sm:$0xff]  ;;  %v1847_v39 = vsub.f32 %v2324_v1, %v1475_v22  ;;  %v679_v18 = vadd.f32 %v678_v35, %v677_v12 }
 0x168   :  { %v777_v3 = vadd.f32 %v776_v43, %v762_v55  ;;  %v1841_v36 = vsub.f32 %v2322_v2, %v1475_v22  ;;  %v2326_v55 = vld [vmem:[#allocation32_spill] sm:$0xff]  ;;  %v625_v2 = vadd.f32 %v624_v41, %v623_v15 }
 0x169   :  { %v729_v26 = vadd.f32 %v728_v56, %v714_v47  ;;  %2325 = vst [vmem:[#allocation21_spill] sm:$0xff] %v1847_v39  ;;  %v1853_v43 = vsub.f32 %v2326_v55, %v1475_v22  ;;  %v680_v1 = vrot.slane %v679_v18, 1 }
 0x16a   :  { %2323 = vst [vmem:[#allocation19_spill] sm:$0xff] %v1841_v36  ;;  %v778_v21 = vadd.f32 %v777_v3, %v763_v9  ;;  %v766_v33 = vmul.f32 %v1841_v36, %v1841_v36 }
 0x16b   :  { %v730_v8 = vrot.slane %v729_v26, 4  ;;  %v681_v15 = vadd.f32 %v680_v1, %v679_v18 }
 0x16c   :  { %v779_v47 = vadd.f32 %v778_v21, %v764_v30  ;;  %v768_v30 = vmul.f32 %v1853_v43, %v1853_v43 }
 0x16d   :  { %v731_v56 = vadd.f32 %v730_v8, %v729_v26  ;;  %v767_v26 = vmul.f32 %v1847_v39, %v1847_v39  ;;  %v626_v8 = vrot.slane %v625_v2, 1 }
 0x16e   :  { %v780_v0 = vadd.f32 %v779_v47, %v765_v6 }
 0x16f   :  { %v732_v9 = vrot.slane %v731_v56, 2  ;;  %v627_v55 = vadd.f32 %v626_v8, %v625_v2 }
 0x170   :  { %v781_v3 = vadd.f32 %v780_v0, %v766_v33 }
 0x171   :  { %v733_v62 = vadd.f32 %v732_v9, %v731_v56  ;;  %v682_v36 = vadd.f32 %v681_v15, %v627_v55 }
 0x172   :  { %v782_v21 = vadd.f32 %v781_v3, %v767_v26 }
 0x173   :  { %v734_v41 = vrot.slane %v733_v62, 1 }
 0x174   :  { %v783_v22 = vadd.f32 %v782_v21, %v768_v30 }
 0x175   :  { %v735_v47 = vadd.f32 %v734_v41, %v733_v62 }
 0x176   :  { %v784_v12 = vrot.slane %v783_v22, 4 }
 0x177   :  { %v736_v46 = vadd.f32 %v735_v47, %v682_v36 }
 0x178   :  { %v785_v35 = vadd.f32 %v784_v12, %v783_v22 }
 0x17a   :  { %v786_v6 = vrot.slane %v785_v35, 2 }
 0x17c   :  { %v787_v44 = vadd.f32 %v786_v6, %v785_v35 }
 0x17e   :  { %v788_v39 = vrot.slane %v787_v44, 1 }
 0x180   :  { %v789_v0 = vadd.f32 %v788_v39, %v787_v44 }
 0x182   :  { %v790_v33 = vadd.f32 %v789_v0, %v736_v46 }
 0x184   :  { %v791_v11 = vmul.f32 %v790_v33, %v1472_v37 }
 0x186   :  { %v792_v31 = vadd.f32 1e-05, %v791_v11 }
 0x188   :  { %1206 = vrsqrt.f32 %v792_v31  ;;  %vm799_vm2 = vweird.f32 %v792_v31 }
 0x18e   :  { %v1207_v26 = vpop.eup %1206 }
 0x18f   :  { %v794_v56 = vmul.f32 %v1207_v26, %v792_v31  ;;  %vm800_vm1 = vweird.f32 %v1207_v26 }
 0x190   :  { %vm801_vm3 = vmor %vm799_vm2, %vm800_vm1 }
 0x191   :  { %v795_v9 = vmul.f32 %v1207_v26, %v794_v56 }
 0x193   :  { %v796_v2 = vmul.f32 0.5, %v795_v9 }
 0x195   :  { %v797_v18 = vsub.f32 1.5, %v796_v2 }
 0x197   :  { %v798_v3 = vmul.f32 %v1207_v26, %v797_v18 }
 0x199   :  { %v1862_v8 = vsel %vm801_vm3, %v1207_v26, %v798_v3 }
 0x19a   :  { %v803_v62 = vmul.f32 %v1862_v8, %v1479_v23  ;;  %v804_v44 = vmul.f32 %v1862_v8, %v1483_v58  ;;  %v805_v37 = vmul.f32 %v1862_v8, %v1487_v10  ;;  %v806_v11 = vmul.f32 %v1862_v8, %v1495_v29 }
 0x19b   :  { %v807_v46 = vmul.f32 %v1862_v8, %v1499_v40  ;;  %v813_v31 = vmul.f32 %v1862_v8, %v1561_v32  ;;  %v814_v36 = vmul.f32 %v1862_v8, %v1587_v14  ;;  %v808_v23 = vmul.f32 %v1862_v8, %v1513_v52 }
 0x19c   :  { %v815_v58 = vmul.f32 %v1862_v8, %v1591_v42  ;;  %v809_v10 = vmul.f32 %v1862_v8, %v1519_v51  ;;  %v819_v39 = vpack.c.bf16 %v803_v62, %v803_v62  ;;  %v820_v29 = vpack.c.bf16 %v804_v44, %v804_v44 }
 0x19d   :  { %v821_v1 = vpack.c.bf16 %v805_v37, %v805_v37  ;;  %v810_v40 = vmul.f32 %v1862_v8, %v1533_v59  ;;  %v822_v30 = vpack.c.bf16 %v806_v11, %v806_v11  ;;  %v811_v32 = vmul.f32 %v1862_v8, %v1543_v49 }
 0x19e   :  { %v823_v14 = vpack.c.bf16 %v807_v46, %v807_v46  ;;  %835 = vst [vmem:[%s2186_s2] sm:$0xf] %v819_v39  ;;  %v812_v52 = vmul.f32 %v1862_v8, %v1555_v53  ;;  %v824_v42 = vpack.c.bf16 %v808_v23, %v808_v23  ;;  %v825_v51 = vpack.c.bf16 %v809_v10, %v809_v10 }
 0x19f   :  { %836 = vst [vmem:[%s2186_s2 + $0x10] sm:$0xf] %v820_v29  ;;  %v826_v59 = vpack.c.bf16 %v810_v40, %v810_v40  ;;  %v827_v49 = vpack.c.bf16 %v811_v32, %v811_v32  ;;  %v816_v53 = vmul.f32 %v1862_v8, %v1613_v60  ;;  %v817_v22 = vmul.f32 %v1862_v8, %v1623_v50  ;;  %v2330_v40 = vld [vmem:[#allocation35_spill] sm:$0xff] }
 0x1a0   :  { %837 = vst [vmem:[%s2186_s2 + $0x20] sm:$0xf] %v821_v1  ;;  %v828_v21 = vpack.c.bf16 %v812_v52, %v812_v52  ;;  %v829_v55 = vpack.c.bf16 %v813_v31, %v813_v31  ;;  %v818_v15 = vmul.f32 %v1862_v8, %v1647_v25  ;;  %v830_v12 = vpack.c.bf16 %v814_v36, %v814_v36 }
 0x1a1   :  { %838 = vst [vmem:[%s2186_s2 + $0x30] sm:$0xf] %v822_v30  ;;  %v831_v60 = vpack.c.bf16 %v815_v58, %v815_v58  ;;  %v851_v50 = vmul.f32 %v1862_v8, %v1505_v48  ;;  %v832_v41 = vpack.c.bf16 %v816_v53, %v816_v53  ;;  %v852_v25 = vmul.f32 %v1862_v8, %v1509_v38  ;;  %v2333_v53 = vld [vmem:[#allocation14_spill] sm:$0xff] }
 0x1a2   :  { %839 = vst [vmem:[%s2186_s2 + $0x40] sm:$0xf] %v823_v14  ;;  %v833_v35 = vpack.c.bf16 %v817_v22, %v817_v22  ;;  %v853_v6 = vmul.f32 %v1862_v8, %v1525_v45  ;;  %v834_v47 = vpack.c.bf16 %v818_v15, %v818_v15  ;;  %v854_v48 = vmul.f32 %v1862_v8, %v1539_v19  ;;  %v2331_v14 = vld [vmem:[#allocation36_spill] sm:$0xff] }
 0x1a3   :  { %840 = vst [vmem:[%s2186_s2 + $0x50] sm:$0xf] %v824_v42  ;;  %v855_v38 = vmul.f32 %v1862_v8, %v1549_v4  ;;  %v867_v0 = vpack.c.bf16 %v851_v50, %v851_v50  ;;  %v856_v45 = vmul.f32 %v1862_v8, %v1565_v57  ;;  %v868_v33 = vpack.c.bf16 %v852_v25, %v852_v25  ;;  %v2336_v25 = vld [vmem:[#allocation10_spill] sm:$0xff] }
 0x1a4   :  { %841 = vst [vmem:[%s2186_s2 + $0x60] sm:$0xf] %v825_v51  ;;  %v857_v19 = vmul.f32 %v1862_v8, %v1581_v61  ;;  %v869_v26 = vpack.c.bf16 %v853_v6, %v853_v6  ;;  %v858_v4 = vmul.f32 %v1862_v8, %v1599_v34  ;;  %v870_v56 = vpack.c.bf16 %v854_v48, %v854_v48  ;;  %v2332_v51 = vld [vmem:[#allocation24_spill] sm:$0xff] }
 0x1a5   :  { %842 = vst [vmem:[%s2186_s2 + $0x70] sm:$0xf] %v826_v59  ;;  %v859_v57 = vmul.f32 %v1862_v8, %v1617_v5  ;;  %v871_v9 = vpack.c.bf16 %v855_v38, %v855_v38  ;;  %v860_v61 = vmul.f32 %v1862_v8, %v1635_v7  ;;  %v872_v2 = vpack.c.bf16 %v856_v45, %v856_v45 }
 0x1a6   :  { %843 = vst [vmem:[%s2186_s2 + $0x80] sm:$0xf] %v827_v49  ;;  %v861_v34 = vmul.f32 %v1862_v8, %v1651_v13  ;;  %v873_v18 = vpack.c.bf16 %v857_v19, %v857_v19  ;;  %v862_v5 = vmul.f32 %v1862_v8, %v1665_v17  ;;  %v874_v3 = vpack.c.bf16 %v858_v4, %v858_v4  ;;  %v2339_v19 = vld [vmem:[#allocation13_spill] sm:$0xff] }
 0x1a7   :  { %844 = vst [vmem:[%s2186_s2 + $0x90] sm:$0xf] %v828_v21  ;;  %v863_v7 = vmul.f32 %v1862_v8, %v1671_v20  ;;  %v875_v62 = vpack.c.bf16 %v859_v57, %v859_v57  ;;  %v864_v13 = vmul.f32 %v1862_v8, %v1699_v63  ;;  %v876_v44 = vpack.c.bf16 %v860_v61, %v860_v61  ;;  %v2340_v57 = vld [vmem:[#allocation5_spill] sm:$0xff] }
 0x1a8   :  { %845 = vst [vmem:[%s2186_s2 + $0xa0] sm:$0xf] %v829_v55  ;;  %v865_v17 = vmul.f32 %v1862_v8, %v1703_v54  ;;  %v877_v37 = vpack.c.bf16 %v861_v34, %v861_v34  ;;  %v866_v20 = vmul.f32 %v1862_v8, %v1725_v24  ;;  %v878_v11 = vpack.c.bf16 %v862_v5, %v862_v5  ;;  %v2334_v55 = vld [vmem:[#allocation30_spill] sm:$0xff]  ;;  %v2342_v5 = vld [vmem:[#allocation27_spill] sm:$0xff] }
 0x1a9   :  { %846 = vst [vmem:[%s2186_s2 + $0xb0] sm:$0xf] %v830_v12  ;;  %v879_v63 = vpack.c.bf16 %v863_v7, %v863_v7  ;;  %v899_v54 = vmul.f32 %v1862_v8, %v1573_v27  ;;  %v880_v46 = vpack.c.bf16 %v864_v13, %v864_v13  ;;  %v900_v24 = vmul.f32 %v1862_v8, %v1577_v16  ;;  %v2327_v27 = vld [vmem:[#allocation33_spill] sm:$0xff] }
 0x1aa   :  { %847 = vst [vmem:[%s2186_s2 + $0xc0] sm:$0xf] %v831_v60  ;;  %v881_v31 = vpack.c.bf16 %v865_v17, %v865_v17  ;;  %v901_v36 = vmul.f32 %v1862_v8, %v1605_v28  ;;  %v882_v23 = vpack.c.bf16 %v866_v20, %v866_v20  ;;  %v902_v58 = vmul.f32 %v1862_v8, %v2327_v27  ;;  %v2328_v16 = vld [vmem:[#allocation9_spill] sm:$0xff]  ;;  %v2329_v28 = vld [vmem:[#allocation34_spill] sm:$0xff]  ;;  %v2335_v60 = vld [vmem:[#allocation8_spill] sm:$0xff] }
 0x1ab   :  { %848 = vst [vmem:[%s2186_s2 + $0xd0] sm:$0xf] %v832_v41  ;;  %v903_v10 = vmul.f32 %v1862_v8, %v2328_v16  ;;  %v915_v39 = vpack.c.bf16 %v899_v54, %v899_v54  ;;  %v904_v29 = vmul.f32 %v1862_v8, %v2329_v28  ;;  %v916_v1 = vpack.c.bf16 %v900_v24, %v900_v24  ;;  %v2345_v20 = vld [vmem:[#allocation18_spill] sm:$0xff]  ;;  %v2346_v54 = vld [vmem:[#allocation20_spill] sm:$0xff]  ;;  %v2348_v27 = vld [vmem:[#allocation25_spill] sm:$0xff] }
 0x1ac   :  { %849 = vst [vmem:[%s2186_s2 + $0xe0] sm:$0xf] %v833_v35  ;;  %v905_v30 = vmul.f32 %v1862_v8, %v2330_v40  ;;  %v917_v32 = vpack.c.bf16 %v901_v36, %v901_v36  ;;  %v906_v52 = vmul.f32 %v1862_v8, %v2331_v14  ;;  %v918_v42 = vpack.c.bf16 %v902_v58, %v902_v58 }
 0x1ad   :  { %850 = vst [vmem:[%s2186_s2 + $0xf0] sm:$0xf] %v834_v47  ;;  %v907_v59 = vmul.f32 %v1862_v8, %v2332_v51  ;;  %v919_v49 = vpack.c.bf16 %v903_v10, %v903_v10  ;;  %v908_v21 = vmul.f32 %v1862_v8, %v2333_v53  ;;  %v920_v22 = vpack.c.bf16 %v904_v29, %v904_v29  ;;  %v2337_v47 = vld [vmem:[#allocation11_spill] sm:$0xff]  ;;  %v2349_v10 = vld [vmem:[#allocation28_spill] sm:$0xff] }
 0x1ae   :  { %883 = vst [vmem:[%s2186_s2 + $0x4] sm:$0xf] %v867_v0  ;;  %v909_v15 = vmul.f32 %v1862_v8, %v2334_v55  ;;  %v921_v12 = vpack.c.bf16 %v905_v30, %v905_v30  ;;  %v910_v50 = vmul.f32 %v1862_v8, %v2335_v60  ;;  %v922_v41 = vpack.c.bf16 %v906_v52, %v906_v52  ;;  %v2338_v0 = vld [vmem:[#allocation12_spill] sm:$0xff]  ;;  %v2350_v29 = vld [vmem:[#allocation15_spill] sm:$0xff]  ;;  %v2352_v52 = vld [vmem:[#allocation17_spill] sm:$0xff] }
 0x1af   :  { %884 = vst [vmem:[%s2186_s2 + $0x14] sm:$0xf] %v868_v33  ;;  %v911_v35 = vmul.f32 %v1862_v8, %v2336_v25  ;;  %v923_v6 = vpack.c.bf16 %v907_v59, %v907_v59  ;;  %v912_v48 = vmul.f32 %v1862_v8, %v2337_v47  ;;  %v924_v38 = vpack.c.bf16 %v908_v21, %v908_v21  ;;  %v2351_v30 = vld [vmem:[#allocation31_spill] sm:$0xff]  ;;  %v2354_v21 = vld [vmem:[#allocation21_spill] sm:$0xff] }
 0x1b0   :  { %885 = vst [vmem:[%s2186_s2 + $0x24] sm:$0xf] %v869_v26  ;;  %v913_v45 = vmul.f32 %v1862_v8, %v2338_v0  ;;  %v925_v33 = vpack.c.bf16 %v909_v15, %v909_v15  ;;  %v914_v26 = vmul.f32 %v1862_v8, %v2339_v19  ;;  %v926_v4 = vpack.c.bf16 %v910_v50, %v910_v50  ;;  %v2353_v59 = vld [vmem:[#allocation19_spill] sm:$0xff] }
 0x1b1   :  { %886 = vst [vmem:[%s2186_s2 + $0x34] sm:$0xf] %v870_v56  ;;  %v927_v56 = vpack.c.bf16 %v911_v35, %v911_v35  ;;  %v928_v61 = vpack.c.bf16 %v912_v48, %v912_v48  ;;  %v955_v58 = vmul.f32 %v1862_v8, %v2348_v27  ;;  %v962_v15 = vmul.f32 %v1862_v8, %v1853_v43 }
 0x1b2   :  { %887 = vst [vmem:[%s2186_s2 + $0x44] sm:$0xf] %v871_v9  ;;  %v947_v9 = vmul.f32 %v1862_v8, %v2340_v57  ;;  %v930_v7 = vpack.c.bf16 %v914_v26, %v914_v26 }
 0x1b3   :  { %888 = vst [vmem:[%s2186_s2 + $0x54] sm:$0xf] %v872_v2  ;;  %v2341_v2 = vld [vmem:[#allocation6_spill] sm:$0xff]  ;;  %v971_v51 = vpack.c.bf16 %v955_v58, %v955_v58  ;;  %v978_v43 = vpack.c.bf16 %v962_v15, %v962_v15 }
 0x1b4   :  { %889 = vst [vmem:[%s2186_s2 + $0x64] sm:$0xf] %v873_v18  ;;  %v948_v34 = vmul.f32 %v1862_v8, %v2341_v2  ;;  %v929_v18 = vpack.c.bf16 %v913_v45, %v913_v45 }
 0x1b5   :  { %890 = vst [vmem:[%s2186_s2 + $0x74] sm:$0xf] %v874_v3  ;;  %v949_v3 = vmul.f32 %v1862_v8, %v2342_v5 }
 0x1b6   :  { %891 = vst [vmem:[%s2186_s2 + $0x84] sm:$0xf] %v875_v62  ;;  %v2343_v62 = vld [vmem:[#allocation7_spill] sm:$0xff] }
 0x1b7   :  { %892 = vst [vmem:[%s2186_s2 + $0x94] sm:$0xf] %v876_v44  ;;  %v950_v13 = vmul.f32 %v1862_v8, %v2343_v62  ;;  %v2344_v44 = vld [vmem:[#allocation16_spill] sm:$0xff]  ;;  %v965_v24 = vpack.c.bf16 %v949_v3, %v949_v3 }
 0x1b8   :  { %893 = vst [vmem:[%s2186_s2 + $0xa4] sm:$0xf] %v877_v37  ;;  %v951_v17 = vmul.f32 %v1862_v8, %v2344_v44  ;;  %v963_v37 = vpack.c.bf16 %v947_v9, %v947_v9 }
 0x1b9   :  { %894 = vst [vmem:[%s2186_s2 + $0xb4] sm:$0xf] %v878_v11  ;;  %v952_v11 = vmul.f32 %v1862_v8, %v2345_v20 }
 0x1ba   :  { %895 = vst [vmem:[%s2186_s2 + $0xc4] sm:$0xf] %v879_v63  ;;  %v964_v63 = vpack.c.bf16 %v948_v34, %v948_v34  ;;  %v967_v16 = vpack.c.bf16 %v951_v17, %v951_v17 }
 0x1bb   :  { %896 = vst [vmem:[%s2186_s2 + $0xd4] sm:$0xf] %v880_v46  ;;  %v953_v46 = vmul.f32 %v1862_v8, %v2346_v54  ;;  %v968_v28 = vpack.c.bf16 %v952_v11, %v952_v11 }
 0x1bc   :  { %897 = vst [vmem:[%s2186_s2 + $0xe4] sm:$0xf] %v881_v31  ;;  %v2347_v31 = vld [vmem:[#allocation22_spill] sm:$0xff] }
 0x1bd   :  { %898 = vst [vmem:[%s2186_s2 + $0xf4] sm:$0xf] %v882_v23  ;;  %v954_v36 = vmul.f32 %v1862_v8, %v2347_v31  ;;  %v966_v23 = vpack.c.bf16 %v950_v13, %v950_v13  ;;  %v969_v40 = vpack.c.bf16 %v953_v46, %v953_v46 }
 0x1be   :  { %931 = vst [vmem:[%s2186_s2 + $0x8] sm:$0xf] %v915_v39  ;;  %v956_v39 = vmul.f32 %v1862_v8, %v2349_v10 }
 0x1bf   :  { %932 = vst [vmem:[%s2186_s2 + $0x18] sm:$0xf] %v916_v1  ;;  %v957_v1 = vmul.f32 %v1862_v8, %v2350_v29  ;;  %v970_v14 = vpack.c.bf16 %v954_v36, %v954_v36 }
 0x1c0   :  { %933 = vst [vmem:[%s2186_s2 + $0x28] sm:$0xf] %v917_v32  ;;  %v958_v32 = vmul.f32 %v1862_v8, %v2351_v30  ;;  %v972_v53 = vpack.c.bf16 %v956_v39, %v956_v39 }
 0x1c1   :  { %934 = vst [vmem:[%s2186_s2 + $0x38] sm:$0xf] %v918_v42  ;;  %v959_v42 = vmul.f32 %v1862_v8, %v2352_v52  ;;  %v973_v55 = vpack.c.bf16 %v957_v1, %v957_v1 }
 0x1c2   :  { %935 = vst [vmem:[%s2186_s2 + $0x48] sm:$0xf] %v919_v49  ;;  %v960_v49 = vmul.f32 %v1862_v8, %v2353_v59 }
 0x1c3   :  { %936 = vst [vmem:[%s2186_s2 + $0x58] sm:$0xf] %v920_v22  ;;  %v961_v22 = vmul.f32 %v1862_v8, %v2354_v21  ;;  %v975_v60 = vpack.c.bf16 %v959_v42, %v959_v42 }
 0x1c4   :  { %937 = vst [vmem:[%s2186_s2 + $0x68] sm:$0xf] %v921_v12  ;;  %v974_v12 = vpack.c.bf16 %v958_v32, %v958_v32  ;;  %v976_v50 = vpack.c.bf16 %v960_v49, %v960_v49 }
 0x1c5   :  { %938 = vst [vmem:[%s2186_s2 + $0x78] sm:$0xf] %v922_v41  ;;  %v977_v41 = vpack.c.bf16 %v961_v22, %v961_v22 }
 0x1c6   :  { %939 = vst [vmem:[%s2186_s2 + $0x88] sm:$0xf] %v923_v6 }
 0x1c7   :  { %940 = vst [vmem:[%s2186_s2 + $0x98] sm:$0xf] %v924_v38 }
 0x1c8   :  { %941 = vst [vmem:[%s2186_s2 + $0xa8] sm:$0xf] %v925_v33 }
 0x1c9   :  { %942 = vst [vmem:[%s2186_s2 + $0xb8] sm:$0xf] %v926_v4 }
 0x1ca   :  { %943 = vst [vmem:[%s2186_s2 + $0xc8] sm:$0xf] %v927_v56 }
 0x1cb   :  { %944 = vst [vmem:[%s2186_s2 + $0xd8] sm:$0xf] %v928_v61 }
 0x1cc   :  { %945 = vst [vmem:[%s2186_s2 + $0xe8] sm:$0xf] %v929_v18 }
 0x1cd   :  { %946 = vst [vmem:[%s2186_s2 + $0xf8] sm:$0xf] %v930_v7 }
 0x1ce   :  { %979 = vst [vmem:[%s2186_s2 + $0xc] sm:$0xf] %v963_v37 }
 0x1cf   :  { %980 = vst [vmem:[%s2186_s2 + $0x1c] sm:$0xf] %v964_v63 }
 0x1d0   :  { %981 = vst [vmem:[%s2186_s2 + $0x2c] sm:$0xf] %v965_v24 }
 0x1d1   :  { %982 = vst [vmem:[%s2186_s2 + $0x3c] sm:$0xf] %v966_v23 }
 0x1d2   :  { %983 = vst [vmem:[%s2186_s2 + $0x4c] sm:$0xf] %v967_v16 }
 0x1d3   :  { %984 = vst [vmem:[%s2186_s2 + $0x5c] sm:$0xf] %v968_v28 }
 0x1d4   :  { %985 = vst [vmem:[%s2186_s2 + $0x6c] sm:$0xf] %v969_v40 }
 0x1d5   :  { %986 = vst [vmem:[%s2186_s2 + $0x7c] sm:$0xf] %v970_v14 }
 0x1d6   :  { %987 = vst [vmem:[%s2186_s2 + $0x8c] sm:$0xf] %v971_v51 }
 0x1d7   :  { %988 = vst [vmem:[%s2186_s2 + $0x9c] sm:$0xf] %v972_v53 }
 0x1d8   :  { %989 = vst [vmem:[%s2186_s2 + $0xac] sm:$0xf] %v973_v55 }
 0x1d9   :  { %990 = vst [vmem:[%s2186_s2 + $0xbc] sm:$0xf] %v974_v12 }
 0x1da   :  { %991 = vst [vmem:[%s2186_s2 + $0xcc] sm:$0xf] %v975_v60 }
 0x1db   :  { %992 = vst [vmem:[%s2186_s2 + $0xdc] sm:$0xf] %v976_v50 }
 0x1dc   :  { %993 = vst [vmem:[%s2186_s2 + $0xec] sm:$0xf] %v977_v41 }
 0x1dd   :  { %994 = vst [vmem:[%s2186_s2 + $0xfc] sm:$0xf] %v978_v43 }
 0x1de   :  { %999 = vsyncpa [#allocation3], 1 }

// kernel: bottleneck_forward.5
= control target key start
LH: loop header
LB: loop body
LE: loop exit
PB: predicated region body
PF: predicated region fallthrough
CT: control target
= control target key end

     0   :  { %s2388_s1 = inlined_call_operand.vmem [shape: bf16[128,512], index: 1, kind: input, shape index: {}]   ;;  %s2389_s0 = inlined_call_operand.vmem [shape: bf16[128,128], index: 0, kind: input, shape index: {}]   ;;  %s2390_s2 = inlined_call_operand.vmem [shape: bf16[128,512], index: 2, kind: output, shape index: {}]  }
   0x1   :  { %v1193_v0 = vld [vmem:[%s2388_s1 + $0xe0] sm:$0xf]  ;;  %v1245_v1 = vld [vmem:[%s2388_s1 + $0xec] sm:$0xf0]  ;;  %v1243_v2 = vld [vmem:[%s2388_s1 + $0xe4] sm:$0xf] }
   0x2   :  { %v1194_v3 = vor.u32 %v1245_v1, %v1193_v0  ;;  %v1195_v4 = vld [vmem:[%s2388_s1 + $0xf0] sm:$0xf0]  ;;  %v1201_v5 = vld [vmem:[%s2388_s1 + $0xe8] sm:$0xf]  ;;  %v1246_v6 = vld [vmem:[%s2388_s1 + $0xf4] sm:$0xf0] }
   0x3   :  { %v1198_v7 = vor.u32 %v1243_v2, %v1195_v4  ;;  %v1202_v8 = vor.u32 %v1246_v6, %v1201_v5  ;;  %v1244_v9 = vld [vmem:[%s2388_s1 + $0xec] sm:$0xf]  ;;  %v1203_v10 = vld [vmem:[%s2388_s1 + $0xf8] sm:$0xf0]  ;;  %v1177_v11 = vld [vmem:[%s2388_s1 + $0xc0] sm:$0xf] }
   0x4   :  { %267 = vmatpush.bf16.msra.mxu0 %v1194_v3  ;;  %v1206_v12 = vor.u32 %v1244_v9, %v1203_v10  ;;  %v1241_v13 = vld [vmem:[%s2388_s1 + $0xcc] sm:$0xf0]  ;;  %v1239_v14 = vld [vmem:[%s2388_s1 + $0xc4] sm:$0xf]  ;;  %v1179_v15 = vld [vmem:[%s2388_s1 + $0xd0] sm:$0xf0] }
   0x5   :  { %316 = vmatpush.bf16.msra.mxu1 %v1198_v7  ;;  %365 = vmatpush.bf16.msra.mxu2 %v1202_v8  ;;  %v1178_v16 = vor.u32 %v1241_v13, %v1177_v11  ;;  %v1182_v17 = vor.u32 %v1239_v14, %v1179_v15  ;;  %v1185_v18 = vld [vmem:[%s2388_s1 + $0xc8] sm:$0xf]  ;;  %v1242_v19 = vld [vmem:[%s2388_s1 + $0xd4] sm:$0xf0]  ;;  %v1240_v20 = vld [vmem:[%s2388_s1 + $0xcc] sm:$0xf] }
   0x6   :  { %414 = vmatpush.bf16.msra.mxu3 %v1206_v12  ;;  %v1186_v21 = vor.u32 %v1242_v19, %v1185_v18  ;;  %v1187_v22 = vld [vmem:[%s2388_s1 + $0xd8] sm:$0xf0]  ;;  %v1161_v23 = vld [vmem:[%s2388_s1 + $0xa0] sm:$0xf]  ;;  %v1237_v24 = vld [vmem:[%s2388_s1 + $0xac] sm:$0xf0] }
   0x7   :  { %v1190_v25 = vor.u32 %v1240_v20, %v1187_v22  ;;  %v1235_v26 = vld [vmem:[%s2388_s1 + $0xa4] sm:$0xf]  ;;  %v1163_v27 = vld [vmem:[%s2388_s1 + $0xb0] sm:$0xf0]  ;;  %v1169_v28 = vld [vmem:[%s2388_s1 + $0xa8] sm:$0xf]  ;;  %v1162_v29 = vor.u32 %v1237_v24, %v1161_v23 }
   0x8   :  { %268 = vmatpush.bf16.msra.mxu0 %v1178_v16  ;;  %v1238_v30 = vld [vmem:[%s2388_s1 + $0xb4] sm:$0xf0]  ;;  %v1236_v31 = vld [vmem:[%s2388_s1 + $0xac] sm:$0xf]  ;;  %v1171_v32 = vld [vmem:[%s2388_s1 + $0xb8] sm:$0xf0]  ;;  %v1166_v33 = vor.u32 %v1235_v26, %v1163_v27 }
   0x9   :  { %317 = vmatpush.bf16.msra.mxu1 %v1182_v17  ;;  %366 = vmatpush.bf16.msra.mxu2 %v1186_v21  ;;  %v1170_v34 = vor.u32 %v1238_v30, %v1169_v28  ;;  %v1145_v35 = vld [vmem:[%s2388_s1 + $0x80] sm:$0xf]  ;;  %v1233_v36 = vld [vmem:[%s2388_s1 + $0x8c] sm:$0xf0]  ;;  %v1231_v37 = vld [vmem:[%s2388_s1 + $0x84] sm:$0xf]  ;;  %v1174_v38 = vor.u32 %v1236_v31, %v1171_v32 }
   0xa   :  { %415 = vmatpush.bf16.msra.mxu3 %v1190_v25  ;;  %v1147_v39 = vld [vmem:[%s2388_s1 + $0x90] sm:$0xf0]  ;;  %v1153_v40 = vld [vmem:[%s2388_s1 + $0x88] sm:$0xf]  ;;  %v1234_v41 = vld [vmem:[%s2388_s1 + $0x94] sm:$0xf0]  ;;  %v1146_v44 = vor.u32 %v1233_v36, %v1145_v35 }
   0xb   :  { %v1232_v42 = vld [vmem:[%s2388_s1 + $0x8c] sm:$0xf]  ;;  %v1155_v43 = vld [vmem:[%s2388_s1 + $0x98] sm:$0xf0]  ;;  %v1150_v45 = vor.u32 %v1231_v37, %v1147_v39  ;;  %v1154_v46 = vor.u32 %v1234_v41, %v1153_v40  ;;  %v1129_v47 = vld [vmem:[%s2388_s1 + $0x60] sm:$0xf] }
   0xc   :  { %269 = vmatpush.bf16.msra.mxu0 %v1162_v29  ;;  %v1229_v48 = vld [vmem:[%s2388_s1 + $0x6c] sm:$0xf0]  ;;  %v1227_v49 = vld [vmem:[%s2388_s1 + $0x64] sm:$0xf]  ;;  %v1158_v50 = vor.u32 %v1232_v42, %v1155_v43  ;;  %v1131_v51 = vld [vmem:[%s2388_s1 + $0x70] sm:$0xf0] }
   0xd   :  { %318 = vmatpush.bf16.msra.mxu1 %v1166_v33  ;;  %367 = vmatpush.bf16.msra.mxu2 %v1170_v34  ;;  %v1137_v52 = vld [vmem:[%s2388_s1 + $0x68] sm:$0xf]  ;;  %v1230_v53 = vld [vmem:[%s2388_s1 + $0x74] sm:$0xf0]  ;;  %v1228_v54 = vld [vmem:[%s2388_s1 + $0x6c] sm:$0xf]  ;;  %v1130_v56 = vor.u32 %v1229_v48, %v1129_v47  ;;  %v1134_v57 = vor.u32 %v1227_v49, %v1131_v51 }
   0xe   :  { %416 = vmatpush.bf16.msra.mxu3 %v1174_v38  ;;  %v1139_v55 = vld [vmem:[%s2388_s1 + $0x78] sm:$0xf0]  ;;  %v1138_v58 = vor.u32 %v1230_v53, %v1137_v52  ;;  %v1113_v59 = vld [vmem:[%s2388_s1 + $0x40] sm:$0xf]  ;;  %v1225_v60 = vld [vmem:[%s2388_s1 + $0x4c] sm:$0xf0] }
   0xf   :  { %v1223_v61 = vld [vmem:[%s2388_s1 + $0x44] sm:$0xf]  ;;  %v1142_v62 = vor.u32 %v1228_v54, %v1139_v55  ;;  %v1115_v63 = vld [vmem:[%s2388_s1 + $0x50] sm:$0xf0]  ;;  %v1121_v0 = vld [vmem:[%s2388_s1 + $0x48] sm:$0xf]  ;;  %v1114_v4 = vor.u32 %v1225_v60, %v1113_v59 }
  0x10   :  { %270 = vmatpush.bf16.msra.mxu0 %v1146_v44  ;;  %v1226_v1 = vld [vmem:[%s2388_s1 + $0x54] sm:$0xf0]  ;;  %v1224_v2 = vld [vmem:[%s2388_s1 + $0x4c] sm:$0xf]  ;;  %v1123_v3 = vld [vmem:[%s2388_s1 + $0x58] sm:$0xf0]  ;;  %v1118_v5 = vor.u32 %v1223_v61, %v1115_v63 }
  0x11   :  { %319 = vmatpush.bf16.msra.mxu1 %v1150_v45  ;;  %368 = vmatpush.bf16.msra.mxu2 %v1154_v46  ;;  %v1122_v6 = vor.u32 %v1226_v1, %v1121_v0  ;;  %v1097_v7 = vld [vmem:[%s2388_s1 + $0x20] sm:$0xf]  ;;  %v1221_v8 = vld [vmem:[%s2388_s1 + $0x2c] sm:$0xf0]  ;;  %v1219_v9 = vld [vmem:[%s2388_s1 + $0x24] sm:$0xf]  ;;  %v1126_v10 = vor.u32 %v1224_v2, %v1123_v3 }
  0x12   :  { %417 = vmatpush.bf16.msra.mxu3 %v1158_v50  ;;  %v1099_v11 = vld [vmem:[%s2388_s1 + $0x30] sm:$0xf0]  ;;  %v1105_v12 = vld [vmem:[%s2388_s1 + $0x28] sm:$0xf]  ;;  %v1222_v13 = vld [vmem:[%s2388_s1 + $0x34] sm:$0xf0]  ;;  %v1098_v16 = vor.u32 %v1221_v8, %v1097_v7 }
  0x13   :  { %v1220_v14 = vld [vmem:[%s2388_s1 + $0x2c] sm:$0xf]  ;;  %v1107_v15 = vld [vmem:[%s2388_s1 + $0x38] sm:$0xf0]  ;;  %v1102_v17 = vor.u32 %v1219_v9, %v1099_v11  ;;  %v1106_v18 = vor.u32 %v1222_v13, %v1105_v12  ;;  %v1081_v19 = vld [vmem:[%s2388_s1] sm:$0xf] }
  0x14   :  { %271 = vmatpush.bf16.msra.mxu0 %v1130_v56  ;;  %v1217_v20 = vld [vmem:[%s2388_s1 + $0xc] sm:$0xf0]  ;;  %v1215_v21 = vld [vmem:[%s2388_s1 + $0x4] sm:$0xf]  ;;  %v1110_v22 = vor.u32 %v1220_v14, %v1107_v15  ;;  %v1083_v23 = vld [vmem:[%s2388_s1 + $0x10] sm:$0xf0] }
  0x15   :  { %320 = vmatpush.bf16.msra.mxu1 %v1134_v57  ;;  %369 = vmatpush.bf16.msra.mxu2 %v1138_v58  ;;  %v1089_v24 = vld [vmem:[%s2388_s1 + $0x8] sm:$0xf]  ;;  %v1218_v25 = vld [vmem:[%s2388_s1 + $0x14] sm:$0xf0]  ;;  %v1216_v26 = vld [vmem:[%s2388_s1 + $0xc] sm:$0xf]  ;;  %v1082_v28 = vor.u32 %v1217_v20, %v1081_v19  ;;  %v1086_v29 = vor.u32 %v1215_v21, %v1083_v23 }
  0x16   :  { %418 = vmatpush.bf16.msra.mxu3 %v1142_v62  ;;  %v1091_v27 = vld [vmem:[%s2388_s1 + $0x18] sm:$0xf0]  ;;  %v1090_v30 = vor.u32 %v1218_v25, %v1089_v24  ;;  %v1207_v32 = vld [vmem:[%s2389_s0] sm:$0xff]  ;;  %v1208_v33 = vld [vmem:[%s2389_s0 + $0x8] sm:$0xff] }
  0x17   :  { %v1094_v31 = vor.u32 %v1216_v26, %v1091_v27  ;;  %v1209_v34 = vld [vmem:[%s2389_s0 + $0x10] sm:$0xff]  ;;  %v1210_v35 = vld [vmem:[%s2389_s0 + $0x18] sm:$0xff]  ;;  %v1211_v36 = vld [vmem:[%s2389_s0 + $0x20] sm:$0xff] }
  0x18   :  { %272 = vmatpush.bf16.msra.mxu0 %v1114_v4  ;;  %v1212_v37 = vld [vmem:[%s2389_s0 + $0x28] sm:$0xff]  ;;  %v1213_v38 = vld [vmem:[%s2389_s0 + $0x30] sm:$0xff]  ;;  %v1214_v39 = vld [vmem:[%s2389_s0 + $0x38] sm:$0xff] }
  0x19   :  { %321 = vmatpush.bf16.msra.mxu1 %v1118_v5  ;;  %370 = vmatpush.bf16.msra.mxu2 %v1122_v6 }
  0x1a   :  { %419 = vmatpush.bf16.msra.mxu3 %v1126_v10 }
  0x1c   :  { %273 = vmatpush.bf16.msra.mxu0 %v1098_v16 }
  0x1d   :  { %322 = vmatpush.bf16.msra.mxu1 %v1102_v17  ;;  %371 = vmatpush.bf16.msra.mxu2 %v1106_v18 }
  0x1e   :  { %420 = vmatpush.bf16.msra.mxu3 %v1110_v22 }
  0x20   :  { %274 = vmatpush.bf16.msra.mxu0 %v1082_v28 }
  0x21   :  { %323 = vmatpush.bf16.msra.mxu1 %v1086_v29  ;;  %372 = vmatpush.bf16.msra.mxu2 %v1090_v30 }
  0x22   :  { %421 = vmatpush.bf16.msra.mxu3 %v1094_v31 }
  0x23   :  { %275 = vmatmul.bf16.vlgmr.msra.gmra.mxu0 %v1207_v32 }
  0x24   :  { %324 = vmatmul.bf16.vlgmr.msra.gmra.mxu1 %v1207_v32  ;;  %373 = vmatmul.bf16.vlgmr.msra.gmra.mxu2 %v1207_v32 }
  0x25   :  { %422 = vmatmul.bf16.vlgmr.msra.gmra.mxu3 %v1207_v32 }
  0x33   :  { %280 = vmatmul.bf16.gmra.mxu0 %v1208_v33 }
  0x34   :  { %329 = vmatmul.bf16.gmra.mxu1 %v1208_v33  ;;  %378 = vmatmul.bf16.gmra.mxu2 %v1208_v33 }
  0x35   :  { %427 = vmatmul.bf16.gmra.mxu3 %v1208_v33 }
  0x43   :  { %285 = vmatmul.bf16.gmra.mxu0 %v1209_v34 }
  0x44   :  { %334 = vmatmul.bf16.gmra.mxu1 %v1209_v34  ;;  %383 = vmatmul.bf16.gmra.mxu2 %v1209_v34 }
  0x45   :  { %432 = vmatmul.bf16.gmra.mxu3 %v1209_v34 }
  0x53   :  { %290 = vmatmul.bf16.gmra.mxu0 %v1210_v35 }
  0x54   :  { %339 = vmatmul.bf16.gmra.mxu1 %v1210_v35  ;;  %388 = vmatmul.bf16.gmra.mxu2 %v1210_v35 }
  0x55   :  { %437 = vmatmul.bf16.gmra.mxu3 %v1210_v35 }
  0x63   :  { %295 = vmatmul.bf16.gmra.mxu0 %v1211_v36 }
  0x64   :  { %344 = vmatmul.bf16.gmra.mxu1 %v1211_v36  ;;  %393 = vmatmul.bf16.gmra.mxu2 %v1211_v36 }
  0x65   :  { %442 = vmatmul.bf16.gmra.mxu3 %v1211_v36 }
  0x73   :  { %300 = vmatmul.bf16.gmra.mxu0 %v1212_v37 }
  0x74   :  { %349 = vmatmul.bf16.gmra.mxu1 %v1212_v37  ;;  %398 = vmatmul.bf16.gmra.mxu2 %v1212_v37 }
  0x75   :  { %447 = vmatmul.bf16.gmra.mxu3 %v1212_v37 }
  0x83   :  { %305 = vmatmul.bf16.gmra.mxu0 %v1213_v38 }
  0x84   :  { %354 = vmatmul.bf16.gmra.mxu1 %v1213_v38  ;;  %403 = vmatmul.bf16.gmra.mxu2 %v1213_v38 }
  0x85   :  { %452 = vmatmul.bf16.gmra.mxu3 %v1213_v38 }
  0x93   :  { %310 = vmatmul.bf16.gmra.mxu0 %v1214_v39 }
  0x94   :  { %359 = vmatmul.bf16.gmra.mxu1 %v1214_v39  ;;  %408 = vmatmul.bf16.gmra.mxu2 %v1214_v39 }
  0x95   :  { %457 = vmatmul.bf16.gmra.mxu3 %v1214_v39 }
  0xa0   :  { %v1484_v40 = vpop.f32.mrf.mxu0 }
  0xa1   :  { %v1486_v41 = vpop.f32.mrf.mxu1 }
  0xa7   :  { %v1488_v42 = vpop.f32.mrf.mxu2 }
  0xa8   :  { %v1490_v43 = vpop.f32.mrf.mxu3  ;;  %v1492_v44 = vpop.f32.mrf.mxu0 }
  0xa9   :  { %2447 = vst [vmem:[#allocation2_spill] sm:$0xff] %v1490_v43  ;;  %v1494_v45 = vpop.f32.mrf.mxu1  ;;  %v463_v22 = vadd.f32 %v1492_v44, %v1484_v40 }
  0xaa   :  { %v484_v23 = vadd.f32 %v1494_v45, %v1486_v41 }
  0xaf   :  { %v1496_v46 = vpop.f32.mrf.mxu2 }
  0xb0   :  { %v1498_v47 = vpop.f32.mrf.mxu3  ;;  %v1500_v48 = vpop.f32.mrf.mxu0  ;;  %v505_v33 = vadd.f32 %v1496_v46, %v1488_v42 }
  0xb1   :  { %2448 = vst [vmem:[#allocation3_spill] sm:$0xff] %v1498_v47  ;;  %v1502_v49 = vpop.f32.mrf.mxu1  ;;  %v464_v24 = vadd.f32 %v463_v22, %v1500_v48  ;;  %v526_v35 = vadd.f32 %v1498_v47, %v1490_v43 }
  0xb2   :  { %v485_v26 = vadd.f32 %v484_v23, %v1502_v49 }
  0xb7   :  { %v1504_v50 = vpop.f32.mrf.mxu2 }
  0xb8   :  { %v1506_v51 = vpop.f32.mrf.mxu3  ;;  %v1508_v52 = vpop.f32.mrf.mxu0  ;;  %v506_v37 = vadd.f32 %v505_v33, %v1504_v50 }
  0xb9   :  { %2449 = vst [vmem:[#allocation4_spill] sm:$0xff] %v1506_v51  ;;  %v1510_v53 = vpop.f32.mrf.mxu1  ;;  %v465_v29 = vadd.f32 %v464_v24, %v1508_v52  ;;  %v527_v39 = vadd.f32 %v526_v35, %v1506_v51 }
  0xba   :  { %v486_v31 = vadd.f32 %v485_v26, %v1510_v53 }
  0xbf   :  { %v1512_v54 = vpop.f32.mrf.mxu2 }
  0xc0   :  { %v1514_v55 = vpop.f32.mrf.mxu3  ;;  %v1516_v56 = vpop.f32.mrf.mxu0  ;;  %v507_v24 = vadd.f32 %v506_v37, %v1512_v54 }
  0xc1   :  { %2450 = vst [vmem:[#allocation5_spill] sm:$0xff] %v1514_v55  ;;  %v1518_v57 = vpop.f32.mrf.mxu1  ;;  %v466_v32 = vadd.f32 %v465_v29, %v1516_v56 }
  0xc2   :  { %v487_v34 = vadd.f32 %v486_v31, %v1518_v57 }
  0xc7   :  { %v1520_v58 = vpop.f32.mrf.mxu2 }
  0xc8   :  { %2451 = vst [vmem:[#allocation6_spill] sm:$0xff] %v1520_v58  ;;  %v1522_v59 = vpop.f32.mrf.mxu3  ;;  %v1524_v60 = vpop.f32.mrf.mxu0 }
  0xc9   :  { %2452 = vst [vmem:[#allocation7_spill] sm:$0xff] %v1522_v59  ;;  %v1526_v61 = vpop.f32.mrf.mxu1  ;;  %v467_v36 = vadd.f32 %v466_v32, %v1524_v60  ;;  %v528_v32 = vadd.f32 %v527_v39, %v1514_v55 }
  0xca   :  { %v488_v38 = vadd.f32 %v487_v34, %v1526_v61  ;;  %v508_v34 = vadd.f32 %v507_v24, %v1520_v58 }
  0xcf   :  { %v1528_v62 = vpop.f32.mrf.mxu2 }
  0xd0   :  { %v1530_v63 = vpop.f32.mrf.mxu3  ;;  %v1532_v0 = vpop.f32.mrf.mxu0 }
  0xd1   :  { %2453 = vst [vmem:[#allocation8_spill] sm:$0xff] %v1530_v63  ;;  %v1534_v1 = vpop.f32.mrf.mxu1  ;;  %v468_v22 = vadd.f32 %v467_v36, %v1532_v0  ;;  %v529_v36 = vadd.f32 %v528_v32, %v1522_v59  ;;  %v1252_v59 = vmov 512.0  }
  0xd2   :  { %v489_v26 = vadd.f32 %v488_v38, %v1534_v1  ;;  %v509_v38 = vadd.f32 %v508_v34, %v1528_v62  ;;  %1248 = vrcp.f32 %v1252_v59 }
  0xd3   :  { %v530_v43 = vadd.f32 %v529_v36, %v1530_v63 }
  0xd7   :  { %v1536_v2 = vpop.f32.mrf.mxu2 }
  0xd8   :  { %v1538_v3 = vpop.f32.mrf.mxu3  ;;  %v1540_v4 = vpop.f32.mrf.mxu0 }
  0xd9   :  { %2454 = vst [vmem:[#allocation9_spill] sm:$0xff] %v1538_v3  ;;  %v1542_v5 = vpop.f32.mrf.mxu1  ;;  %v469_v33 = vadd.f32 %v468_v22, %v1540_v4  ;;  %v510_v22 = vadd.f32 %v509_v38, %v1536_v2  ;;  %v531_v24 = vadd.f32 %v530_v43, %v1538_v3 }
  0xda   :  { %v490_v35 = vadd.f32 %v489_v26, %v1542_v5 }
  0xdf   :  { %v1544_v6 = vpop.f32.mrf.mxu2 }
  0xe0   :  { %v1546_v7 = vpop.f32.mrf.mxu3  ;;  %v1548_v8 = vpop.f32.mrf.mxu0  ;;  %v511_v32 = vadd.f32 %v510_v22, %v1544_v6 }
  0xe1   :  { %2455 = vst [vmem:[#allocation10_spill] sm:$0xff] %v1546_v7  ;;  %v1550_v9 = vpop.f32.mrf.mxu1  ;;  %v470_v37 = vadd.f32 %v469_v33, %v1548_v8  ;;  %v532_v36 = vadd.f32 %v531_v24, %v1546_v7 }
  0xe2   :  { %v491_v51 = vadd.f32 %v490_v35, %v1550_v9 }
  0xe7   :  { %v1552_v10 = vpop.f32.mrf.mxu2 }
  0xe8   :  { %2456 = vst [vmem:[#allocation11_spill] sm:$0xff] %v1552_v10  ;;  %v1554_v11 = vpop.f32.mrf.mxu3  ;;  %v1556_v12 = vpop.f32.mrf.mxu0  ;;  %v512_v43 = vadd.f32 %v511_v32, %v1552_v10 }
  0xe9   :  { %2457 = vst [vmem:[#allocation12_spill] sm:$0xff] %v1554_v11  ;;  %v1558_v13 = vpop.f32.mrf.mxu1  ;;  %v471_v39 = vadd.f32 %v470_v37, %v1556_v12 }
  0xea   :  { %v492_v55 = vadd.f32 %v491_v51, %v1558_v13 }
  0xef   :  { %v1560_v14 = vpop.f32.mrf.mxu2 }
  0xf0   :  { %2458 = vst [vmem:[#allocation13_spill] sm:$0xff] %v1560_v14  ;;  %v1562_v15 = vpop.f32.mrf.mxu3  ;;  %v1564_v16 = vpop.f32.mrf.mxu0 }
  0xf1   :  { %2459 = vst [vmem:[#allocation14_spill] sm:$0xff] %v1562_v15  ;;  %v1566_v17 = vpop.f32.mrf.mxu1  ;;  %v472_v26 = vadd.f32 %v471_v39, %v1564_v16  ;;  %v533_v39 = vadd.f32 %v532_v36, %v1554_v11 }
  0xf2   :  { %v493_v33 = vadd.f32 %v492_v55, %v1566_v17  ;;  %v513_v55 = vadd.f32 %v512_v43, %v1560_v14 }
  0xf3   :  { %v534_v63 = vadd.f32 %v533_v39, %v1562_v15 }
  0xf7   :  { %v1568_v18 = vpop.f32.mrf.mxu2 }
  0xf8   :  { %2460 = vst [vmem:[#allocation15_spill] sm:$0xff] %v1568_v18  ;;  %v1570_v19 = vpop.f32.mrf.mxu3  ;;  %v1572_v20 = vpop.f32.mrf.mxu0 }
  0xf9   :  { %2461 = vst [vmem:[#allocation16_spill] sm:$0xff] %v1570_v19  ;;  %v1574_v21 = vpop.f32.mrf.mxu1  ;;  %v473_v37 = vadd.f32 %v472_v26, %v1572_v20  ;;  %v514_v26 = vadd.f32 %v513_v55, %v1568_v18  ;;  %v535_v32 = vadd.f32 %v534_v63, %v1570_v19 }
  0xfa   :  { %v494_v51 = vadd.f32 %v493_v33, %v1574_v21 }
  0xff   :  { %v1581_v25 = vpop.f32.mrf.mxu2 }
 0x100   :  { %2462 = vst [vmem:[#allocation17_spill] sm:$0xff] %v1581_v25  ;;  %v1584_v27 = vpop.f32.mrf.mxu3  ;;  %v1586_v28 = vpop.f32.mrf.mxu0 }
 0x101   :  { %2463 = vst [vmem:[#allocation18_spill] sm:$0xff] %v1584_v27  ;;  %v1589_v30 = vpop.f32.mrf.mxu1  ;;  %v474_v22 = vadd.f32 %v473_v37, %v1586_v28  ;;  %v515_v37 = vadd.f32 %v514_v26, %v1581_v25  ;;  %v1249_v26 = vpop.eup %1248 }
 0x102   :  { %v495_v3 = vadd.f32 %v494_v51, %v1589_v30  ;;  %vm556_vm0 = vweird.f32 %v1249_v26 }
 0x107   :  { %v1603_v23 = vpop.f32.mrf.mxu2 }
 0x108   :  { %2464 = vst [vmem:[#allocation19_spill] sm:$0xff] %v1603_v23  ;;  %v1607_v29 = vpop.f32.mrf.mxu3  ;;  %v1609_v31 = vpop.f32.mrf.mxu0  ;;  %v516_v59 = vadd.f32 %v515_v37, %v1603_v23  ;;  %v552_v37 = vmul.f32 512.0, %v1249_v26 }
 0x109   :  { %2465 = vst [vmem:[#allocation20_spill] sm:$0xff] %v1607_v29  ;;  %v1613_v47 = vpop.f32.mrf.mxu1  ;;  %v475_v24 = vadd.f32 %v474_v22, %v1609_v31  ;;  %v536_v22 = vadd.f32 %v535_v32, %v1584_v27 }
 0x10a   :  { %2466 = vst [vmem:[#allocation21_spill] sm:$0xff] %v1613_v47  ;;  %v496_v7 = vadd.f32 %v495_v3, %v1613_v47 }
 0x10f   :  { %v1627_v58 = vpop.f32.mrf.mxu2 }
 0x110   :  { %2467 = vst [vmem:[#allocation22_spill] sm:$0xff] %v1627_v58  ;;  %v1631_v34 = vpop.f32.mrf.mxu3  ;;  %v1633_v35 = vpop.f32.mrf.mxu0 }
 0x111   :  { %2468 = vst [vmem:[#allocation23_spill] sm:$0xff] %v1631_v34  ;;  %v1637_v38 = vpop.f32.mrf.mxu1  ;;  %v476_v33 = vadd.f32 %v475_v24, %v1633_v35  ;;  %v537_v24 = vadd.f32 %v536_v22, %v1607_v29 }
 0x112   :  { %2469 = vst [vmem:[#allocation24_spill] sm:$0xff] %v1637_v38  ;;  %v497_v43 = vadd.f32 %v496_v7, %v1637_v38  ;;  %v517_v7 = vadd.f32 %v516_v59, %v1627_v58 }
 0x113   :  { %v538_v11 = vadd.f32 %v537_v24, %v1631_v34 }
 0x117   :  { %v1651_v36 = vpop.f32.mrf.mxu2 }
 0x118   :  { %2470 = vst [vmem:[#allocation25_spill] sm:$0xff] %v1651_v36  ;;  %v1655_v51 = vpop.f32.mrf.mxu3  ;;  %v1657_v39 = vpop.f32.mrf.mxu0  ;;  %v518_v32 = vadd.f32 %v517_v7, %v1651_v36 }
 0x119   :  { %2471 = vst [vmem:[#allocation26_spill] sm:$0xff] %v1655_v51  ;;  %v477_v3 = vadd.f32 %v476_v33, %v1657_v39  ;;  %v1661_v55 = vpop.f32.mrf.mxu1  ;;  %v539_v33 = vadd.f32 %v538_v11, %v1655_v51 }
 0x11a   :  { %2472 = vst [vmem:[#allocation27_spill] sm:$0xff] %v1661_v55  ;;  %v498_v63 = vadd.f32 %v497_v43, %v1661_v55 }
 0x11b   :  { %v478_v19 = vrot.slane %v477_v3, 4 }
 0x11c   :  { %v499_v15 = vrot.slane %v498_v63, 4 }
 0x11d   :  { %v479_v25 = vadd.f32 %v478_v19, %v477_v3  ;;  %v553_v3 = vsub.f32 1.0, %v552_v37 }
 0x11e   :  { %v500_v27 = vadd.f32 %v499_v15, %v498_v63 }
 0x11f   :  { %v480_v18 = vrot.slane %v479_v25, 2  ;;  %v1670_v14 = vpop.f32.mrf.mxu2  ;;  %v554_v36 = vmul.f32 %v1249_v26, %v553_v3 }
 0x120   :  { %2473 = vst [vmem:[#allocation28_spill] sm:$0xff] %v1670_v14  ;;  %v501_v43 = vrot.slane %v500_v27, 2  ;;  %v519_v22 = vadd.f32 %v518_v32, %v1670_v14  ;;  %v1673_v29 = vpop.f32.mrf.mxu3 }
 0x121   :  { %2474 = vst [vmem:[#allocation29_spill] sm:$0xff] %v1673_v29  ;;  %v481_v23 = vadd.f32 %v480_v18, %v479_v25  ;;  %v540_v59 = vadd.f32 %v539_v33, %v1673_v29  ;;  %v555_v18 = vadd.f32 %v1249_v26, %v554_v36 }
 0x122   :  { %v502_v58 = vadd.f32 %v501_v43, %v500_v27  ;;  %v520_v24 = vrot.slane %v519_v22, 4 }
 0x123   :  { %v541_v19 = vrot.slane %v540_v59, 4  ;;  %v482_v7 = vrot.slane %v481_v23, 1  ;;  %v1676_v37 = vsel %vm556_vm0, %v1249_v26, %v555_v18 }
 0x124   :  { %v503_v15 = vrot.slane %v502_v58, 1  ;;  %v521_v63 = vadd.f32 %v520_v24, %v519_v22 }
 0x125   :  { %v542_v11 = vadd.f32 %v541_v19, %v540_v59  ;;  %v483_v55 = vadd.f32 %v482_v7, %v481_v23 }
 0x126   :  { %v522_v51 = vrot.slane %v521_v63, 2  ;;  %v504_v10 = vadd.f32 %v503_v15, %v502_v58 }
 0x127   :  { %v543_v34 = vrot.slane %v542_v11, 2 }
 0x128   :  { %v523_v38 = vadd.f32 %v522_v51, %v521_v63  ;;  %v548_v25 = vadd.f32 %v504_v10, %v483_v55 }
 0x129   :  { %v544_v32 = vadd.f32 %v543_v34, %v542_v11 }
 0x12a   :  { %v524_v14 = vrot.slane %v523_v38, 1 }
 0x12b   :  { %v545_v47 = vrot.slane %v544_v32, 1 }
 0x12c   :  { %v525_v33 = vadd.f32 %v524_v14, %v523_v38 }
 0x12d   :  { %v546_v43 = vadd.f32 %v545_v47, %v544_v32 }
 0x12e   :  { %v549_v27 = vadd.f32 %v548_v25, %v525_v33 }
 0x130   :  { %v550_v29 = vadd.f32 %v549_v27, %v546_v43 }
 0x132   :  { %v1679_v22 = vmul.f32 %v1676_v37, %v550_v29 }
 0x134   :  { %v1683_v23 = vsub.f32 %v1484_v40, %v1679_v22  ;;  %v1687_v58 = vsub.f32 %v1492_v44, %v1679_v22  ;;  %v1691_v10 = vsub.f32 %v1500_v48, %v1679_v22  ;;  %v1699_v29 = vsub.f32 %v1508_v52, %v1679_v22 }
 0x135   :  { %v1703_v40 = vsub.f32 %v1516_v56, %v1679_v22  ;;  %v1709_v48 = vsub.f32 %v1486_v41, %v1679_v22  ;;  %v1713_v38 = vsub.f32 %v1494_v45, %v1679_v22  ;;  %v1717_v52 = vsub.f32 %v1524_v60, %v1679_v22 }
 0x136   :  { %v575_v47 = vmul.f32 %v1683_v23, %v1683_v23  ;;  %v576_v14 = vmul.f32 %v1687_v58, %v1687_v58  ;;  %v577_v44 = vmul.f32 %v1691_v10, %v1691_v10  ;;  %v578_v56 = vmul.f32 %v1699_v29, %v1699_v29 }
 0x137   :  { %v1723_v51 = vsub.f32 %v1532_v0, %v1679_v22  ;;  %v579_v41 = vmul.f32 %v1703_v40, %v1703_v40  ;;  %v1729_v45 = vsub.f32 %v1502_v49, %v1679_v22  ;;  %v629_v60 = vmul.f32 %v1709_v48, %v1709_v48 }
 0x138   :  { %v591_v34 = vadd.f32 %v576_v14, %v575_v47  ;;  %v630_v26 = vmul.f32 %v1713_v38, %v1713_v38  ;;  %v1737_v59 = vsub.f32 %v1540_v4, %v1679_v22  ;;  %v580_v0 = vmul.f32 %v1717_v52, %v1717_v52 }
 0x139   :  { %v1743_v19 = vsub.f32 %v1510_v53, %v1679_v22  ;;  %v1747_v49 = vsub.f32 %v1548_v8, %v1679_v22  ;;  %v581_v3 = vmul.f32 %v1723_v51, %v1723_v51  ;;  %v1753_v4 = vsub.f32 %v1518_v57, %v1679_v22 }
 0x13a   :  { %v592_v36 = vadd.f32 %v591_v34, %v577_v44  ;;  %v631_v15 = vmul.f32 %v1729_v45, %v1729_v45  ;;  %v645_v63 = vadd.f32 %v630_v26, %v629_v60  ;;  %v1759_v53 = vsub.f32 %v1556_v12, %v1679_v22 }
 0x13b   :  { %v582_v8 = vmul.f32 %v1737_v59, %v1737_v59  ;;  %v1765_v32 = vsub.f32 %v1564_v16, %v1679_v22  ;;  %v1769_v57 = vsub.f32 %v1526_v61, %v1679_v22  ;;  %v632_v18 = vmul.f32 %v1743_v19, %v1743_v19 }
 0x13c   :  { %v593_v55 = vadd.f32 %v592_v36, %v578_v56  ;;  %v646_v25 = vadd.f32 %v645_v63, %v631_v15  ;;  %v583_v12 = vmul.f32 %v1747_v49, %v1747_v49  ;;  %v1777_v27 = vsub.f32 %v1488_v42, %v1679_v22 }
 0x13d   :  { %v1781_v16 = vsub.f32 %v1496_v46, %v1679_v22  ;;  %v1785_v61 = vsub.f32 %v1534_v1, %v1679_v22  ;;  %v633_v43 = vmul.f32 %v1753_v4, %v1753_v4  ;;  %v1791_v14 = vsub.f32 %v1572_v20, %v1679_v22 }
 0x13e   :  { %v594_v24 = vadd.f32 %v593_v55, %v579_v41  ;;  %v647_v47 = vadd.f32 %v646_v25, %v632_v18  ;;  %v1795_v42 = vsub.f32 %v1586_v28, %v1679_v22  ;;  %v584_v46 = vmul.f32 %v1759_v53, %v1759_v53 }
 0x13f   :  { %v585_v1 = vmul.f32 %v1765_v32, %v1765_v32  ;;  %v1803_v34 = vsub.f32 %v1542_v5, %v1679_v22  ;;  %v634_v56 = vmul.f32 %v1769_v57, %v1769_v57  ;;  %v1809_v28 = vsub.f32 %v1504_v50, %v1679_v22 }
 0x140   :  { %v595_v7 = vadd.f32 %v594_v24, %v580_v0  ;;  %v648_v20 = vadd.f32 %v647_v47, %v633_v43  ;;  %v683_v41 = vmul.f32 %v1777_v27, %v1777_v27  ;;  %v684_v55 = vmul.f32 %v1781_v16, %v1781_v16 }
 0x141   :  { %v1817_v60 = vsub.f32 %v1609_v31, %v1679_v22  ;;  %v1821_v5 = vsub.f32 %v1550_v9, %v1679_v22  ;;  %v635_v26 = vmul.f32 %v1785_v61, %v1785_v61  ;;  %v1827_v50 = vsub.f32 %v1633_v35, %v1679_v22 }
 0x142   :  { %v596_v11 = vadd.f32 %v595_v7, %v581_v3  ;;  %v649_v0 = vadd.f32 %v648_v20, %v634_v56  ;;  %v586_v24 = vmul.f32 %v1791_v14, %v1791_v14  ;;  %v1833_v31 = vsub.f32 %v1512_v54, %v1679_v22 }
 0x143   :  { %v587_v9 = vmul.f32 %v1795_v42, %v1795_v42  ;;  %v1839_v7 = vsub.f32 %v1558_v13, %v1679_v22  ;;  %v636_v15 = vmul.f32 %v1803_v34, %v1803_v34  ;;  %v685_v54 = vmul.f32 %v1809_v28, %v1809_v28 }
 0x144   :  { %v597_v33 = vadd.f32 %v596_v11, %v582_v8  ;;  %2475 = vst [vmem:[#allocation30_spill] sm:$0xff] %v1833_v31  ;;  %v650_v35 = vadd.f32 %v649_v0, %v635_v26  ;;  %v2476_v8 = vld [vmem:[#allocation6_spill] sm:$0xff]  ;;  %v699_v18 = vadd.f32 %v684_v55, %v683_v41  ;;  %v1851_v25 = vsub.f32 %v1657_v39, %v1679_v22 }
 0x145   :  { %v1845_v11 = vsub.f32 %v2476_v8, %v1679_v22  ;;  %v1855_v13 = vsub.f32 %v1566_v17, %v1679_v22  ;;  %v1861_v47 = vsub.f32 %v1528_v62, %v1679_v22  ;;  %v588_v39 = vmul.f32 %v1817_v60, %v1817_v60  ;;  %v2480_v26 = vld [vmem:[#allocation2_spill] sm:$0xff]  ;;  %v2486_v8 = vld [vmem:[#allocation24_spill] sm:$0xff] }
 0x146   :  { %v598_v44 = vadd.f32 %v597_v33, %v583_v12  ;;  %v637_v12 = vmul.f32 %v1821_v5, %v1821_v5  ;;  %v651_v33 = vadd.f32 %v650_v35, %v636_v15  ;;  %v1869_v17 = vsub.f32 %v1574_v21, %v1679_v22  ;;  %v2485_v35 = vld [vmem:[#allocation21_spill] sm:$0xff] }
 0x147   :  { %2477 = vst [vmem:[#allocation6_spill] sm:$0xff] %v1845_v11  ;;  %v1875_v20 = vsub.f32 %v1589_v30, %v1679_v22  ;;  %v1879_v62 = vsub.f32 %v1536_v2, %v1679_v22  ;;  %v639_v21 = vmul.f32 %v1855_v13, %v1855_v13  ;;  %v1887_v0 = vsub.f32 %v2480_v26, %v1679_v22 }
 0x148   :  { %v599_v36 = vadd.f32 %v598_v44, %v584_v46  ;;  %2478 = vst [vmem:[#allocation31_spill] sm:$0xff] %v1861_v47  ;;  %v686_v46 = vmul.f32 %v1833_v31, %v1833_v31  ;;  %v700_v44 = vadd.f32 %v699_v18, %v685_v54  ;;  %v652_v56 = vadd.f32 %v651_v33, %v637_v12  ;;  %v2487_v33 = vld [vmem:[#allocation11_spill] sm:$0xff] }
 0x149   :  { %2479 = vst [vmem:[#allocation32_spill] sm:$0xff] %v1879_v62  ;;  %v589_v2 = vmul.f32 %v1827_v50, %v1827_v50  ;;  %v1907_v54 = vsub.f32 %v2486_v8, %v1679_v22  ;;  %v640_v18 = vmul.f32 %v1869_v17, %v1869_v17  ;;  %v737_v26 = vmul.f32 %v1887_v0, %v1887_v0 }
 0x14a   :  { %v600_v3 = vadd.f32 %v599_v36, %v585_v1  ;;  %v638_v1 = vmul.f32 %v1839_v7, %v1839_v7  ;;  %v687_v36 = vmul.f32 %v1845_v11, %v1845_v11  ;;  %v701_v41 = vadd.f32 %v700_v44, %v686_v46  ;;  %2481 = vst [vmem:[#allocation2_spill] sm:$0xff] %v1887_v0  ;;  %v2496_v0 = vld [vmem:[#allocation15_spill] sm:$0xff] }
 0x14b   :  { %v1915_v46 = vsub.f32 %v2487_v33, %v1679_v22  ;;  %v689_v44 = vmul.f32 %v1879_v62, %v1879_v62 }
 0x14c   :  { %v601_v63 = vadd.f32 %v600_v3, %v586_v24  ;;  %v653_v55 = vadd.f32 %v652_v56, %v638_v1  ;;  %v2482_v24 = vld [vmem:[#allocation3_spill] sm:$0xff]  ;;  %v1897_v3 = vsub.f32 %v1544_v6, %v1679_v22  ;;  %v702_v15 = vadd.f32 %v701_v41, %v687_v36  ;;  %v2489_v36 = vld [vmem:[#allocation4_spill] sm:$0xff] }
 0x14d   :  { %v1891_v30 = vsub.f32 %v2482_v24, %v1679_v22  ;;  %v641_v6 = vmul.f32 %v1875_v20, %v1875_v20  ;;  %2488 = vst [vmem:[#allocation21_spill] sm:$0xff] %v1915_v46  ;;  %v1921_v41 = vsub.f32 %v2489_v36, %v1679_v22  ;;  %v2494_v36 = vld [vmem:[#allocation5_spill] sm:$0xff] }
 0x14e   :  { %v602_v43 = vadd.f32 %v601_v63, %v587_v9  ;;  %2484 = vst [vmem:[#allocation33_spill] sm:$0xff] %v1897_v3  ;;  %v688_v9 = vmul.f32 %v1861_v47, %v1861_v47  ;;  %v1903_v63 = vsub.f32 %v2485_v35, %v1679_v22  ;;  %v654_v12 = vadd.f32 %v653_v55, %v639_v21  ;;  %v2491_v55 = vld [vmem:[#allocation27_spill] sm:$0xff]  ;;  %v2492_v35 = vld [vmem:[#allocation13_spill] sm:$0xff] }
 0x14f   :  { %2483 = vst [vmem:[#allocation3_spill] sm:$0xff] %v1891_v30  ;;  %v738_v21 = vmul.f32 %v1891_v30, %v1891_v30  ;;  %v1929_v24 = vsub.f32 %v2491_v55, %v1679_v22  ;;  %v1933_v8 = vsub.f32 %v2492_v35, %v1679_v22  ;;  %v1941_v30 = vsub.f32 %v2494_v36, %v1679_v22  ;;  %v2500_v36 = vld [vmem:[#allocation17_spill] sm:$0xff] }
 0x150   :  { %v703_v1 = vadd.f32 %v702_v15, %v688_v9  ;;  %v655_v56 = vadd.f32 %v654_v12, %v640_v18  ;;  %2490 = vst [vmem:[#allocation24_spill] sm:$0xff] %v1921_v41  ;;  %v690_v9 = vmul.f32 %v1897_v3, %v1897_v3  ;;  %v603_v18 = vadd.f32 %v602_v43, %v588_v39  ;;  %v2498_v39 = vld [vmem:[#allocation7_spill] sm:$0xff] }
 0x151   :  { %2493 = vst [vmem:[#allocation11_spill] sm:$0xff] %v1933_v8  ;;  %v642_v12 = vmul.f32 %v1903_v63, %v1903_v63  ;;  %v643_v55 = vmul.f32 %v1907_v54, %v1907_v54  ;;  %v1947_v35 = vsub.f32 %v2496_v0, %v1679_v22  ;;  %v691_v3 = vmul.f32 %v1915_v46, %v1915_v46  ;;  %v2502_v46 = vld [vmem:[#allocation8_spill] sm:$0xff] }
 0x152   :  { %v704_v15 = vadd.f32 %v703_v1, %v689_v44  ;;  %v656_v33 = vadd.f32 %v655_v56, %v641_v6  ;;  %2495 = vst [vmem:[#allocation4_spill] sm:$0xff] %v1941_v30  ;;  %v1953_v1 = vsub.f32 %v2498_v39, %v1679_v22  ;;  %v739_v6 = vmul.f32 %v1921_v41, %v1921_v41 }
 0x153   :  { %2497 = vst [vmem:[#allocation27_spill] sm:$0xff] %v1947_v35  ;;  %v753_v56 = vadd.f32 %v738_v21, %v737_v26  ;;  %v1959_v62 = vsub.f32 %v2500_v36, %v1679_v22  ;;  %v692_v0 = vmul.f32 %v1933_v8, %v1933_v8  ;;  %v590_v26 = vmul.f32 %v1851_v25, %v1851_v25  ;;  %v2504_v21 = vld [vmem:[#allocation19_spill] sm:$0xff] }
 0x154   :  { %v705_v44 = vadd.f32 %v704_v15, %v690_v9  ;;  %v657_v43 = vadd.f32 %v656_v33, %v642_v12  ;;  %2499 = vst [vmem:[#allocation13_spill] sm:$0xff] %v1953_v1  ;;  %v1965_v9 = vsub.f32 %v2502_v46, %v1679_v22  ;;  %v604_v15 = vadd.f32 %v603_v18, %v589_v2  ;;  %v2506_v2 = vld [vmem:[#allocation9_spill] sm:$0xff] }
 0x155   :  { %2501 = vst [vmem:[#allocation5_spill] sm:$0xff] %v1959_v62  ;;  %v740_v33 = vmul.f32 %v1941_v30, %v1941_v30  ;;  %v754_v39 = vadd.f32 %v753_v56, %v739_v6  ;;  %v1973_v36 = vsub.f32 %v2504_v21, %v1679_v22  ;;  %v644_v46 = vmul.f32 %v1929_v24, %v1929_v24  ;;  %v2508_v6 = vld [vmem:[#allocation22_spill] sm:$0xff] }
 0x156   :  { %v706_v47 = vadd.f32 %v705_v44, %v691_v3  ;;  %2503 = vst [vmem:[#allocation15_spill] sm:$0xff] %v1965_v9  ;;  %v658_v12 = vadd.f32 %v657_v43, %v643_v55  ;;  %v693_v3 = vmul.f32 %v1947_v35, %v1947_v35  ;;  %v1981_v18 = vsub.f32 %v2506_v2, %v1679_v22 }
 0x157   :  { %2505 = vst [vmem:[#allocation7_spill] sm:$0xff] %v1973_v36  ;;  %v741_v55 = vmul.f32 %v1953_v1, %v1953_v1  ;;  %v755_v43 = vadd.f32 %v754_v39, %v740_v33  ;;  %v1987_v56 = vsub.f32 %v2508_v6, %v1679_v22  ;;  %v694_v21 = vmul.f32 %v1959_v62, %v1959_v62  ;;  %v2512_v33 = vld [vmem:[#allocation25_spill] sm:$0xff] }
 0x158   :  { %v707_v44 = vadd.f32 %v706_v47, %v692_v0  ;;  %2507 = vst [vmem:[#allocation17_spill] sm:$0xff] %v1981_v18  ;;  %v2510_v47 = vld [vmem:[#allocation10_spill] sm:$0xff]  ;;  %v605_v41 = vadd.f32 %v604_v15, %v590_v26  ;;  %v659_v35 = vadd.f32 %v658_v12, %v644_v46  ;;  %v742_v2 = vmul.f32 %v1965_v9, %v1965_v9  ;;  %v2516_v26 = vld [vmem:[#allocation28_spill] sm:$0xff] }
 0x159   :  { %2509 = vst [vmem:[#allocation8_spill] sm:$0xff] %v1987_v56  ;;  %v1993_v0 = vsub.f32 %v2510_v47, %v1679_v22  ;;  %v756_v8 = vadd.f32 %v755_v43, %v741_v55  ;;  %v1999_v39 = vsub.f32 %v2512_v33, %v1679_v22  ;;  %v695_v6 = vmul.f32 %v1973_v36, %v1973_v36  ;;  %v2518_v47 = vld [vmem:[#allocation14_spill] sm:$0xff] }
 0x15a   :  { %v708_v30 = vadd.f32 %v707_v44, %v693_v3  ;;  %v2514_v3 = vld [vmem:[#allocation12_spill] sm:$0xff]  ;;  %v743_v15 = vmul.f32 %v1981_v18, %v1981_v18  ;;  %v2011_v46 = vsub.f32 %v2516_v26, %v1679_v22  ;;  %v696_v55 = vmul.f32 %v1987_v56, %v1987_v56  ;;  %v2522_v36 = vld [vmem:[#allocation18_spill] sm:$0xff] }
 0x15b   :  { %2511 = vst [vmem:[#allocation19_spill] sm:$0xff] %v1993_v0  ;;  %v2005_v44 = vsub.f32 %v2514_v3, %v1679_v22  ;;  %v757_v12 = vadd.f32 %v756_v8, %v742_v2  ;;  %v2017_v33 = vsub.f32 %v2518_v47, %v1679_v22  ;;  %v744_v3 = vmul.f32 %v1993_v0, %v1993_v0  ;;  %v2520_v26 = vld [vmem:[#allocation16_spill] sm:$0xff] }
 0x15c   :  { %2513 = vst [vmem:[#allocation9_spill] sm:$0xff] %v1999_v39  ;;  %v709_v1 = vadd.f32 %v708_v30, %v694_v21  ;;  %v606_v30 = vrot.slane %v605_v41, 4  ;;  %v660_v21 = vrot.slane %v659_v35, 4  ;;  %v697_v8 = vmul.f32 %v1999_v39, %v1999_v39  ;;  %v2524_v39 = vld [vmem:[#allocation20_spill] sm:$0xff] }
 0x15d   :  { %2515 = vst [vmem:[#allocation22_spill] sm:$0xff] %v2005_v44  ;;  %v758_v9 = vadd.f32 %v757_v12, %v743_v15  ;;  %v2025_v18 = vsub.f32 %v2520_v26, %v1679_v22  ;;  %v698_v47 = vmul.f32 %v2011_v46, %v2011_v46  ;;  %v2033_v0 = vsub.f32 %v2522_v36, %v1679_v22 }
 0x15e   :  { %2517 = vst [vmem:[#allocation10_spill] sm:$0xff] %v2011_v46  ;;  %v710_v43 = vadd.f32 %v709_v1, %v695_v6  ;;  %v745_v1 = vmul.f32 %v2005_v44, %v2005_v44  ;;  %v607_v15 = vadd.f32 %v606_v30, %v605_v41  ;;  %v661_v12 = vadd.f32 %v660_v21, %v659_v35 }
 0x15f   :  { %2519 = vst [vmem:[#allocation25_spill] sm:$0xff] %v2017_v33  ;;  %v759_v6 = vadd.f32 %v758_v9, %v744_v3  ;;  %v2039_v62 = vsub.f32 %v2524_v39, %v1679_v22  ;;  %v747_v9 = vmul.f32 %v2025_v18, %v2025_v18  ;;  %v748_v30 = vmul.f32 %v2033_v0, %v2033_v0 }
 0x160   :  { %v711_v2 = vadd.f32 %v710_v43, %v696_v55  ;;  %2521 = vst [vmem:[#allocation12_spill] sm:$0xff] %v2025_v18  ;;  %v746_v55 = vmul.f32 %v2017_v33, %v2017_v33  ;;  %v608_v41 = vrot.slane %v607_v15, 2  ;;  %v662_v35 = vrot.slane %v661_v12, 2 }
 0x161   :  { %2523 = vst [vmem:[#allocation28_spill] sm:$0xff] %v2033_v0  ;;  %v760_v43 = vadd.f32 %v759_v6, %v745_v1  ;;  %v2528_v1 = vld [vmem:[#allocation26_spill] sm:$0xff]  ;;  %v749_v6 = vmul.f32 %v2039_v62, %v2039_v62 }
 0x162   :  { %v712_v56 = vadd.f32 %v711_v2, %v697_v8  ;;  %2525 = vst [vmem:[#allocation14_spill] sm:$0xff] %v2039_v62  ;;  %v2526_v2 = vld [vmem:[#allocation23_spill] sm:$0xff]  ;;  %v2051_v39 = vsub.f32 %v2528_v1, %v1679_v22  ;;  %v663_v18 = vadd.f32 %v662_v35, %v661_v12 }
 0x163   :  { %v761_v3 = vadd.f32 %v760_v43, %v746_v55  ;;  %v2045_v36 = vsub.f32 %v2526_v2, %v1679_v22  ;;  %v2530_v55 = vld [vmem:[#allocation29_spill] sm:$0xff]  ;;  %v609_v2 = vadd.f32 %v608_v41, %v607_v15 }
 0x164   :  { %v713_v26 = vadd.f32 %v712_v56, %v698_v47  ;;  %2529 = vst [vmem:[#allocation18_spill] sm:$0xff] %v2051_v39  ;;  %v2057_v43 = vsub.f32 %v2530_v55, %v1679_v22  ;;  %v664_v1 = vrot.slane %v663_v18, 1 }
 0x165   :  { %2527 = vst [vmem:[#allocation16_spill] sm:$0xff] %v2045_v36  ;;  %v762_v21 = vadd.f32 %v761_v3, %v747_v9  ;;  %v750_v33 = vmul.f32 %v2045_v36, %v2045_v36 }
 0x166   :  { %v714_v8 = vrot.slane %v713_v26, 4  ;;  %v665_v15 = vadd.f32 %v664_v1, %v663_v18 }
 0x167   :  { %v763_v47 = vadd.f32 %v762_v21, %v748_v30  ;;  %v752_v30 = vmul.f32 %v2057_v43, %v2057_v43 }
 0x168   :  { %v715_v56 = vadd.f32 %v714_v8, %v713_v26  ;;  %v751_v26 = vmul.f32 %v2051_v39, %v2051_v39  ;;  %v610_v8 = vrot.slane %v609_v2, 1 }
 0x169   :  { %v764_v0 = vadd.f32 %v763_v47, %v749_v6 }
 0x16a   :  { %v716_v9 = vrot.slane %v715_v56, 2  ;;  %v611_v55 = vadd.f32 %v610_v8, %v609_v2 }
 0x16b   :  { %v765_v3 = vadd.f32 %v764_v0, %v750_v33 }
 0x16c   :  { %v717_v62 = vadd.f32 %v716_v9, %v715_v56  ;;  %v666_v36 = vadd.f32 %v665_v15, %v611_v55 }
 0x16d   :  { %v766_v21 = vadd.f32 %v765_v3, %v751_v26 }
 0x16e   :  { %v718_v41 = vrot.slane %v717_v62, 1 }
 0x16f   :  { %v767_v22 = vadd.f32 %v766_v21, %v752_v30 }
 0x170   :  { %v719_v47 = vadd.f32 %v718_v41, %v717_v62 }
 0x171   :  { %v768_v12 = vrot.slane %v767_v22, 4 }
 0x172   :  { %v720_v46 = vadd.f32 %v719_v47, %v666_v36 }
 0x173   :  { %v769_v35 = vadd.f32 %v768_v12, %v767_v22 }
 0x175   :  { %v770_v6 = vrot.slane %v769_v35, 2 }
 0x177   :  { %v771_v44 = vadd.f32 %v770_v6, %v769_v35 }
 0x179   :  { %v772_v39 = vrot.slane %v771_v44, 1 }
 0x17b   :  { %v773_v0 = vadd.f32 %v772_v39, %v771_v44 }
 0x17d   :  { %v774_v33 = vadd.f32 %v773_v0, %v720_v46 }
 0x17f   :  { %v775_v11 = vmul.f32 %v774_v33, %v1676_v37 }
 0x181   :  { %v776_v31 = vadd.f32 1e-05, %v775_v11 }
 0x183   :  { %1250 = vrsqrt.f32 %v776_v31  ;;  %vm783_vm2 = vweird.f32 %v776_v31 }
 0x189   :  { %v1251_v26 = vpop.eup %1250 }
 0x18a   :  { %v778_v56 = vmul.f32 %v1251_v26, %v776_v31  ;;  %vm784_vm1 = vweird.f32 %v1251_v26 }
 0x18b   :  { %vm785_vm3 = vmor %vm783_vm2, %vm784_vm1 }
 0x18c   :  { %v779_v9 = vmul.f32 %v1251_v26, %v778_v56 }
 0x18e   :  { %v780_v2 = vmul.f32 0.5, %v779_v9 }
 0x190   :  { %v781_v18 = vsub.f32 1.5, %v780_v2 }
 0x192   :  { %v782_v3 = vmul.f32 %v1251_v26, %v781_v18 }
 0x194   :  { %v2066_v8 = vsel %vm785_vm3, %v1251_v26, %v782_v3 }
 0x195   :  { %v787_v62 = vmul.f32 %v2066_v8, %v1683_v23  ;;  %v788_v44 = vmul.f32 %v2066_v8, %v1687_v58  ;;  %v789_v37 = vmul.f32 %v2066_v8, %v1691_v10  ;;  %v790_v11 = vmul.f32 %v2066_v8, %v1699_v29 }
 0x196   :  { %v791_v46 = vmul.f32 %v2066_v8, %v1703_v40  ;;  %v797_v31 = vmul.f32 %v2066_v8, %v1765_v32  ;;  %v798_v36 = vmul.f32 %v2066_v8, %v1791_v14  ;;  %v792_v23 = vmul.f32 %v2066_v8, %v1717_v52 }
 0x197   :  { %v799_v58 = vmul.f32 %v2066_v8, %v1795_v42  ;;  %v793_v10 = vmul.f32 %v2066_v8, %v1723_v51  ;;  %v803_v39 = vmax.f32 %v787_v62, 0.0  ;;  %v804_v29 = vmax.f32 %v788_v44, 0.0 }
 0x198   :  { %v805_v1 = vmax.f32 %v789_v37, 0.0  ;;  %v794_v40 = vmul.f32 %v2066_v8, %v1737_v59  ;;  %v806_v30 = vmax.f32 %v790_v11, 0.0  ;;  %v795_v32 = vmul.f32 %v2066_v8, %v1747_v49 }
 0x199   :  { %v807_v14 = vmax.f32 %v791_v46, 0.0  ;;  %v796_v52 = vmul.f32 %v2066_v8, %v1759_v53  ;;  %v808_v21 = vmax.f32 %v792_v23, 0.0  ;;  %v809_v22 = vmax.f32 %v793_v10, 0.0 }
 0x19a   :  { %v819_v42 = vpack.c.bf16 %v803_v39, %v803_v39  ;;  %v820_v55 = vpack.c.bf16 %v804_v29, %v804_v29  ;;  %v821_v15 = vpack.c.bf16 %v805_v1, %v805_v1  ;;  %v810_v51 = vmax.f32 %v794_v40, 0.0 }
 0x19b   :  { %v822_v12 = vpack.c.bf16 %v806_v30, %v806_v30  ;;  %v811_v41 = vmax.f32 %v795_v32, 0.0  ;;  %v823_v35 = vpack.c.bf16 %v807_v14, %v807_v14  ;;  %v800_v59 = vmul.f32 %v2066_v8, %v1817_v60 }
 0x19c   :  { %835 = vst [vmem:[%s2390_s2] sm:$0xf] %v819_v42  ;;  %v812_v49 = vmax.f32 %v796_v52, 0.0  ;;  %v824_v6 = vpack.c.bf16 %v808_v21, %v808_v21  ;;  %v801_v53 = vmul.f32 %v2066_v8, %v1827_v50  ;;  %v813_v47 = vmax.f32 %v797_v31, 0.0 }
 0x19d   :  { %836 = vst [vmem:[%s2390_s2 + $0x10] sm:$0xf] %v820_v55  ;;  %v825_v0 = vpack.c.bf16 %v809_v22, %v809_v22  ;;  %v802_v33 = vmul.f32 %v2066_v8, %v1851_v25  ;;  %v814_v26 = vmax.f32 %v798_v36, 0.0  ;;  %v826_v60 = vpack.c.bf16 %v810_v51, %v810_v51 }
 0x19e   :  { %837 = vst [vmem:[%s2390_s2 + $0x20] sm:$0xf] %v821_v15  ;;  %v815_v56 = vmax.f32 %v799_v58, 0.0  ;;  %v827_v9 = vpack.c.bf16 %v811_v41, %v811_v41  ;;  %v851_v50 = vmul.f32 %v2066_v8, %v1709_v48  ;;  %v816_v2 = vmax.f32 %v800_v59, 0.0 }
 0x19f   :  { %838 = vst [vmem:[%s2390_s2 + $0x30] sm:$0xf] %v822_v12  ;;  %v828_v18 = vpack.c.bf16 %v812_v49, %v812_v49  ;;  %v852_v25 = vmul.f32 %v2066_v8, %v1713_v38  ;;  %v817_v3 = vmax.f32 %v801_v53, 0.0  ;;  %v829_v62 = vpack.c.bf16 %v813_v47, %v813_v47 }
 0x1a0   :  { %839 = vst [vmem:[%s2390_s2 + $0x40] sm:$0xf] %v823_v35  ;;  %v853_v44 = vmul.f32 %v2066_v8, %v1729_v45  ;;  %v818_v37 = vmax.f32 %v802_v33, 0.0  ;;  %v830_v48 = vpack.c.bf16 %v814_v26, %v814_v26  ;;  %v854_v11 = vmul.f32 %v2066_v8, %v1743_v19 }
 0x1a1   :  { %840 = vst [vmem:[%s2390_s2 + $0x50] sm:$0xf] %v824_v6  ;;  %v831_v46 = vpack.c.bf16 %v815_v56, %v815_v56  ;;  %v855_v38 = vmul.f32 %v2066_v8, %v1753_v4  ;;  %v867_v31 = vmax.f32 %v851_v50, 0.0  ;;  %v832_v36 = vpack.c.bf16 %v816_v2, %v816_v2 }
 0x1a2   :  { %841 = vst [vmem:[%s2390_s2 + $0x60] sm:$0xf] %v825_v0  ;;  %v856_v45 = vmul.f32 %v2066_v8, %v1769_v57  ;;  %v868_v23 = vmax.f32 %v852_v25, 0.0  ;;  %v833_v58 = vpack.c.bf16 %v817_v3, %v817_v3  ;;  %v857_v19 = vmul.f32 %v2066_v8, %v1785_v61 }
 0x1a3   :  { %842 = vst [vmem:[%s2390_s2 + $0x70] sm:$0xf] %v826_v60  ;;  %v869_v10 = vmax.f32 %v853_v44, 0.0  ;;  %v834_v4 = vpack.c.bf16 %v818_v37, %v818_v37  ;;  %v858_v39 = vmul.f32 %v2066_v8, %v1803_v34  ;;  %v870_v29 = vmax.f32 %v854_v11, 0.0  ;;  %v2531_v60 = vld [vmem:[#allocation30_spill] sm:$0xff]  ;;  %v2534_v44 = vld [vmem:[#allocation32_spill] sm:$0xff] }
 0x1a4   :  { %843 = vst [vmem:[%s2390_s2 + $0x80] sm:$0xf] %v827_v9  ;;  %v859_v57 = vmul.f32 %v2066_v8, %v1821_v5  ;;  %v871_v1 = vmax.f32 %v855_v38, 0.0  ;;  %v883_v40 = vpack.c.bf16 %v867_v31, %v867_v31  ;;  %v860_v61 = vmul.f32 %v2066_v8, %v1839_v7 }
 0x1a5   :  { %844 = vst [vmem:[%s2390_s2 + $0x90] sm:$0xf] %v828_v18  ;;  %v872_v30 = vmax.f32 %v856_v45, 0.0  ;;  %v884_v32 = vpack.c.bf16 %v868_v23, %v868_v23  ;;  %v861_v34 = vmul.f32 %v2066_v8, %v1855_v13  ;;  %v873_v14 = vmax.f32 %v857_v19, 0.0  ;;  %v2537_v19 = vld [vmem:[#allocation11_spill] sm:$0xff] }
 0x1a6   :  { %845 = vst [vmem:[%s2390_s2 + $0xa0] sm:$0xf] %v829_v62  ;;  %v885_v5 = vpack.c.bf16 %v869_v10, %v869_v10  ;;  %v862_v52 = vmul.f32 %v2066_v8, %v1869_v17  ;;  %v874_v21 = vmax.f32 %v858_v39, 0.0  ;;  %v886_v7 = vpack.c.bf16 %v870_v29, %v870_v29  ;;  %v2538_v29 = vld [vmem:[#allocation27_spill] sm:$0xff] }
 0x1a7   :  { %846 = vst [vmem:[%s2390_s2 + $0xb0] sm:$0xf] %v830_v48  ;;  %v863_v22 = vmul.f32 %v2066_v8, %v1875_v20  ;;  %v875_v42 = vmax.f32 %v859_v57, 0.0  ;;  %v887_v55 = vpack.c.bf16 %v871_v1, %v871_v1  ;;  %v864_v13 = vmul.f32 %v2066_v8, %v1903_v63 }
 0x1a8   :  { %847 = vst [vmem:[%s2390_s2 + $0xc0] sm:$0xf] %v831_v46  ;;  %v876_v15 = vmax.f32 %v860_v61, 0.0  ;;  %v888_v51 = vpack.c.bf16 %v872_v30, %v872_v30  ;;  %v865_v17 = vmul.f32 %v2066_v8, %v1907_v54  ;;  %v877_v12 = vmax.f32 %v861_v34, 0.0  ;;  %v2535_v46 = vld [vmem:[#allocation33_spill] sm:$0xff] }
 0x1a9   :  { %848 = vst [vmem:[%s2390_s2 + $0xd0] sm:$0xf] %v832_v36  ;;  %v889_v20 = vpack.c.bf16 %v873_v14, %v873_v14  ;;  %v866_v41 = vmul.f32 %v2066_v8, %v1929_v24  ;;  %v878_v35 = vmax.f32 %v862_v52, 0.0  ;;  %v890_v63 = vpack.c.bf16 %v874_v21, %v874_v21  ;;  %v2536_v36 = vld [vmem:[#allocation21_spill] sm:$0xff]  ;;  %v2540_v14 = vld [vmem:[#allocation7_spill] sm:$0xff] }
 0x1aa   :  { %849 = vst [vmem:[%s2390_s2 + $0xe0] sm:$0xf] %v833_v58  ;;  %v879_v59 = vmax.f32 %v863_v22, 0.0  ;;  %v891_v49 = vpack.c.bf16 %v875_v42, %v875_v42  ;;  %v915_v54 = vmul.f32 %v2066_v8, %v1777_v27  ;;  %v880_v6 = vmax.f32 %v864_v13, 0.0  ;;  %v2539_v61 = vld [vmem:[#allocation5_spill] sm:$0xff] }
 0x1ab   :  { %850 = vst [vmem:[%s2390_s2 + $0xf0] sm:$0xf] %v834_v4  ;;  %v892_v53 = vpack.c.bf16 %v876_v15, %v876_v15  ;;  %v916_v24 = vmul.f32 %v2066_v8, %v1781_v16  ;;  %v881_v47 = vmax.f32 %v865_v17, 0.0  ;;  %v893_v0 = vpack.c.bf16 %v877_v12, %v877_v12  ;;  %v2532_v16 = vld [vmem:[#allocation6_spill] sm:$0xff]  ;;  %v2542_v13 = vld [vmem:[#allocation9_spill] sm:$0xff] }
 0x1ac   :  { %899 = vst [vmem:[%s2390_s2 + $0x4] sm:$0xf] %v883_v40  ;;  %v917_v33 = vmul.f32 %v2066_v8, %v1809_v28  ;;  %v882_v26 = vmax.f32 %v866_v41, 0.0  ;;  %v894_v27 = vpack.c.bf16 %v878_v35, %v878_v35  ;;  %v918_v56 = vmul.f32 %v2066_v8, %v2531_v60  ;;  %v2533_v28 = vld [vmem:[#allocation31_spill] sm:$0xff]  ;;  %v2543_v12 = vld [vmem:[#allocation10_spill] sm:$0xff] }
 0x1ad   :  { %900 = vst [vmem:[%s2390_s2 + $0x14] sm:$0xf] %v884_v32  ;;  %v895_v9 = vpack.c.bf16 %v879_v59, %v879_v59  ;;  %v919_v50 = vmul.f32 %v2066_v8, %v2532_v16  ;;  %v931_v2 = vmax.f32 %v915_v54, 0.0  ;;  %v896_v18 = vpack.c.bf16 %v880_v6, %v880_v6 }
 0x1ae   :  { %901 = vst [vmem:[%s2390_s2 + $0x24] sm:$0xf] %v885_v5  ;;  %v920_v25 = vmul.f32 %v2066_v8, %v2533_v28  ;;  %v932_v3 = vmax.f32 %v916_v24, 0.0  ;;  %v897_v62 = vpack.c.bf16 %v881_v47, %v881_v47  ;;  %v921_v37 = vmul.f32 %v2066_v8, %v2534_v44  ;;  %v2545_v24 = vld [vmem:[#allocation3_spill] sm:$0xff] }
 0x1af   :  { %902 = vst [vmem:[%s2390_s2 + $0x34] sm:$0xf] %v886_v7  ;;  %v933_v48 = vmax.f32 %v917_v33, 0.0  ;;  %v898_v11 = vpack.c.bf16 %v882_v26, %v882_v26  ;;  %v922_v38 = vmul.f32 %v2066_v8, %v2535_v46  ;;  %v934_v31 = vmax.f32 %v918_v56, 0.0  ;;  %v2541_v7 = vld [vmem:[#allocation8_spill] sm:$0xff] }
 0x1b0   :  { %903 = vst [vmem:[%s2390_s2 + $0x44] sm:$0xf] %v887_v55  ;;  %v923_v45 = vmul.f32 %v2066_v8, %v2536_v36  ;;  %v935_v23 = vmax.f32 %v919_v50, 0.0  ;;  %v947_v58 = vpack.c.bf16 %v931_v2, %v931_v2  ;;  %v924_v10 = vmul.f32 %v2066_v8, %v2537_v19  ;;  %v2546_v26 = vld [vmem:[#allocation24_spill] sm:$0xff]  ;;  %v2548_v2 = vld [vmem:[#allocation13_spill] sm:$0xff] }
 0x1b1   :  { %904 = vst [vmem:[%s2390_s2 + $0x54] sm:$0xf] %v888_v51  ;;  %v936_v4 = vmax.f32 %v920_v25, 0.0  ;;  %v948_v39 = vpack.c.bf16 %v932_v3, %v932_v3  ;;  %v925_v57 = vmul.f32 %v2066_v8, %v2538_v29  ;;  %v937_v1 = vmax.f32 %v921_v37, 0.0  ;;  %v2549_v3 = vld [vmem:[#allocation15_spill] sm:$0xff] }
 0x1b2   :  { %905 = vst [vmem:[%s2390_s2 + $0x64] sm:$0xf] %v889_v20  ;;  %v949_v40 = vpack.c.bf16 %v933_v48, %v933_v48  ;;  %v926_v30 = vmul.f32 %v2066_v8, %v2539_v61  ;;  %v938_v32 = vmax.f32 %v922_v38, 0.0  ;;  %v950_v34 = vpack.c.bf16 %v934_v31, %v934_v31  ;;  %v2550_v48 = vld [vmem:[#allocation17_spill] sm:$0xff]  ;;  %v2551_v31 = vld [vmem:[#allocation19_spill] sm:$0xff] }
 0x1b3   :  { %906 = vst [vmem:[%s2390_s2 + $0x74] sm:$0xf] %v890_v63  ;;  %v927_v5 = vmul.f32 %v2066_v8, %v2540_v14  ;;  %v939_v52 = vmax.f32 %v923_v45, 0.0  ;;  %v951_v21 = vpack.c.bf16 %v935_v23, %v935_v23  ;;  %v928_v22 = vmul.f32 %v2066_v8, %v2541_v7  ;;  %v2552_v23 = vld [vmem:[#allocation22_spill] sm:$0xff] }
 0x1b4   :  { %907 = vst [vmem:[%s2390_s2 + $0x84] sm:$0xf] %v891_v49  ;;  %v940_v42 = vmax.f32 %v924_v10, 0.0  ;;  %v952_v55 = vpack.c.bf16 %v936_v4, %v936_v4  ;;  %v929_v15 = vmul.f32 %v2066_v8, %v2542_v13  ;;  %v941_v51 = vmax.f32 %v925_v57, 0.0  ;;  %v2544_v49 = vld [vmem:[#allocation2_spill] sm:$0xff]  ;;  %v2553_v4 = vld [vmem:[#allocation25_spill] sm:$0xff] }
 0x1b5   :  { %908 = vst [vmem:[%s2390_s2 + $0x94] sm:$0xf] %v892_v53  ;;  %v953_v17 = vpack.c.bf16 %v937_v1, %v937_v1  ;;  %v930_v20 = vmul.f32 %v2066_v8, %v2543_v12  ;;  %v942_v41 = vmax.f32 %v926_v30, 0.0  ;;  %v954_v35 = vpack.c.bf16 %v938_v32, %v938_v32  ;;  %v2554_v1 = vld [vmem:[#allocation12_spill] sm:$0xff] }
 0x1b6   :  { %909 = vst [vmem:[%s2390_s2 + $0xa4] sm:$0xf] %v893_v0  ;;  %v943_v63 = vmax.f32 %v927_v5, 0.0  ;;  %v955_v59 = vpack.c.bf16 %v939_v52, %v939_v52  ;;  %v979_v54 = vmul.f32 %v2066_v8, %v2544_v49  ;;  %v944_v6 = vmax.f32 %v928_v22, 0.0  ;;  %v2555_v32 = vld [vmem:[#allocation28_spill] sm:$0xff]  ;;  %v2556_v52 = vld [vmem:[#allocation14_spill] sm:$0xff] }
 0x1b7   :  { %910 = vst [vmem:[%s2390_s2 + $0xb4] sm:$0xf] %v894_v27  ;;  %v956_v53 = vpack.c.bf16 %v940_v42, %v940_v42  ;;  %v980_v47 = vmul.f32 %v2066_v8, %v2545_v24  ;;  %v945_v0 = vmax.f32 %v929_v15, 0.0  ;;  %v957_v33 = vpack.c.bf16 %v941_v51, %v941_v51  ;;  %v2557_v42 = vld [vmem:[#allocation16_spill] sm:$0xff]  ;;  %v2558_v51 = vld [vmem:[#allocation18_spill] sm:$0xff] }
 0x1b8   :  { %911 = vst [vmem:[%s2390_s2 + $0xc4] sm:$0xf] %v895_v9  ;;  %v981_v27 = vmul.f32 %v2066_v8, %v2546_v26  ;;  %v946_v60 = vmax.f32 %v930_v20, 0.0  ;;  %v958_v56 = vpack.c.bf16 %v942_v41, %v942_v41  ;;  %v2547_v9 = vld [vmem:[#allocation4_spill] sm:$0xff]  ;;  %v959_v50 = vpack.c.bf16 %v943_v63, %v943_v63 }
 0x1b9   :  { %912 = vst [vmem:[%s2390_s2 + $0xd4] sm:$0xf] %v896_v18  ;;  %v982_v16 = vmul.f32 %v2066_v8, %v2547_v9  ;;  %v983_v18 = vmul.f32 %v2066_v8, %v2548_v2  ;;  %v995_v28 = vmax.f32 %v979_v54, 0.0  ;;  %v960_v25 = vpack.c.bf16 %v944_v6, %v944_v6 }
 0x1ba   :  { %913 = vst [vmem:[%s2390_s2 + $0xe4] sm:$0xf] %v897_v62  ;;  %v984_v62 = vmul.f32 %v2066_v8, %v2549_v3  ;;  %v996_v44 = vmax.f32 %v980_v47, 0.0  ;;  %v961_v37 = vpack.c.bf16 %v945_v0, %v945_v0  ;;  %v997_v46 = vmax.f32 %v981_v27, 0.0 }
 0x1bb   :  { %914 = vst [vmem:[%s2390_s2 + $0xf4] sm:$0xf] %v898_v11  ;;  %v985_v11 = vmul.f32 %v2066_v8, %v2550_v48  ;;  %v962_v38 = vpack.c.bf16 %v946_v60, %v946_v60  ;;  %v986_v36 = vmul.f32 %v2066_v8, %v2551_v31  ;;  %v998_v45 = vmax.f32 %v982_v16, 0.0 }
 0x1bc   :  { %963 = vst [vmem:[%s2390_s2 + $0x8] sm:$0xf] %v947_v58  ;;  %v987_v58 = vmul.f32 %v2066_v8, %v2552_v23  ;;  %v999_v19 = vmax.f32 %v983_v18, 0.0  ;;  %v1011_v10 = vpack.c.bf16 %v995_v28, %v995_v28  ;;  %v1000_v29 = vmax.f32 %v984_v62, 0.0 }
 0x1bd   :  { %964 = vst [vmem:[%s2390_s2 + $0x18] sm:$0xf] %v948_v39  ;;  %v988_v39 = vmul.f32 %v2066_v8, %v2553_v4  ;;  %v1012_v57 = vpack.c.bf16 %v996_v44, %v996_v44  ;;  %v1001_v61 = vmax.f32 %v985_v11, 0.0  ;;  %v1013_v30 = vpack.c.bf16 %v997_v46, %v997_v46 }
 0x1be   :  { %965 = vst [vmem:[%s2390_s2 + $0x28] sm:$0xf] %v949_v40  ;;  %v989_v40 = vmul.f32 %v2066_v8, %v2554_v1  ;;  %v1002_v14 = vmax.f32 %v986_v36, 0.0  ;;  %v1014_v5 = vpack.c.bf16 %v998_v45, %v998_v45  ;;  %v1003_v7 = vmax.f32 %v987_v58, 0.0 }
 0x1bf   :  { %966 = vst [vmem:[%s2390_s2 + $0x38] sm:$0xf] %v950_v34  ;;  %v990_v34 = vmul.f32 %v2066_v8, %v2555_v32  ;;  %v1015_v22 = vpack.c.bf16 %v999_v19, %v999_v19  ;;  %v1004_v13 = vmax.f32 %v988_v39, 0.0  ;;  %v1016_v15 = vpack.c.bf16 %v1000_v29, %v1000_v29 }
 0x1c0   :  { %967 = vst [vmem:[%s2390_s2 + $0x48] sm:$0xf] %v951_v21  ;;  %v991_v21 = vmul.f32 %v2066_v8, %v2556_v52  ;;  %v1005_v12 = vmax.f32 %v989_v40, 0.0  ;;  %v1017_v20 = vpack.c.bf16 %v1001_v61, %v1001_v61  ;;  %v994_v41 = vmul.f32 %v2066_v8, %v2057_v43 }
 0x1c1   :  { %968 = vst [vmem:[%s2390_s2 + $0x58] sm:$0xf] %v952_v55  ;;  %v992_v55 = vmul.f32 %v2066_v8, %v2557_v42  ;;  %v1018_v63 = vpack.c.bf16 %v1002_v14, %v1002_v14  ;;  %v1019_v49 = vpack.c.bf16 %v1003_v7, %v1003_v7  ;;  %v1020_v6 = vpack.c.bf16 %v1004_v13, %v1004_v13 }
 0x1c2   :  { %969 = vst [vmem:[%s2390_s2 + $0x68] sm:$0xf] %v953_v17  ;;  %v993_v17 = vmul.f32 %v2066_v8, %v2558_v51  ;;  %v1021_v43 = vpack.c.bf16 %v1005_v12, %v1005_v12  ;;  %v1010_v8 = vmax.f32 %v994_v41, 0.0 }
 0x1c3   :  { %970 = vst [vmem:[%s2390_s2 + $0x78] sm:$0xf] %v954_v35  ;;  %v1006_v35 = vmax.f32 %v990_v34, 0.0  ;;  %v1008_v54 = vmax.f32 %v992_v55, 0.0 }
 0x1c4   :  { %971 = vst [vmem:[%s2390_s2 + $0x88] sm:$0xf] %v955_v59  ;;  %v1007_v59 = vmax.f32 %v991_v21, 0.0  ;;  %v1026_v26 = vpack.c.bf16 %v1010_v8, %v1010_v8 }
 0x1c5   :  { %972 = vst [vmem:[%s2390_s2 + $0x98] sm:$0xf] %v956_v53  ;;  %v1009_v53 = vmax.f32 %v993_v17, 0.0  ;;  %v1022_v24 = vpack.c.bf16 %v1006_v35, %v1006_v35  ;;  %v1024_v0 = vpack.c.bf16 %v1008_v54, %v1008_v54 }
 0x1c6   :  { %973 = vst [vmem:[%s2390_s2 + $0xa8] sm:$0xf] %v957_v33  ;;  %v1023_v47 = vpack.c.bf16 %v1007_v59, %v1007_v59 }
 0x1c7   :  { %974 = vst [vmem:[%s2390_s2 + $0xb8] sm:$0xf] %v958_v56  ;;  %v1025_v33 = vpack.c.bf16 %v1009_v53, %v1009_v53 }
 0x1c8   :  { %975 = vst [vmem:[%s2390_s2 + $0xc8] sm:$0xf] %v959_v50 }
 0x1c9   :  { %976 = vst [vmem:[%s2390_s2 + $0xd8] sm:$0xf] %v960_v25 }
 0x1ca   :  { %977 = vst [vmem:[%s2390_s2 + $0xe8] sm:$0xf] %v961_v37 }
 0x1cb   :  { %978 = vst [vmem:[%s2390_s2 + $0xf8] sm:$0xf] %v962_v38 }
 0x1cc   :  { %1027 = vst [vmem:[%s2390_s2 + $0xc] sm:$0xf] %v1011_v10 }
 0x1cd   :  { %1028 = vst [vmem:[%s2390_s2 + $0x1c] sm:$0xf] %v1012_v57 }
 0x1ce   :  { %1029 = vst [vmem:[%s2390_s2 + $0x2c] sm:$0xf] %v1013_v30 }
 0x1cf   :  { %1030 = vst [vmem:[%s2390_s2 + $0x3c] sm:$0xf] %v1014_v5 }
 0x1d0   :  { %1031 = vst [vmem:[%s2390_s2 + $0x4c] sm:$0xf] %v1015_v22 }
 0x1d1   :  { %1032 = vst [vmem:[%s2390_s2 + $0x5c] sm:$0xf] %v1016_v15 }
 0x1d2   :  { %1033 = vst [vmem:[%s2390_s2 + $0x6c] sm:$0xf] %v1017_v20 }
 0x1d3   :  { %1034 = vst [vmem:[%s2390_s2 + $0x7c] sm:$0xf] %v1018_v63 }
 0x1d4   :  { %1035 = vst [vmem:[%s2390_s2 + $0x8c] sm:$0xf] %v1019_v49 }
 0x1d5   :  { %1036 = vst [vmem:[%s2390_s2 + $0x9c] sm:$0xf] %v1020_v6 }
 0x1d6   :  { %1037 = vst [vmem:[%s2390_s2 + $0xac] sm:$0xf] %v1021_v43 }
 0x1d7   :  { %1038 = vst [vmem:[%s2390_s2 + $0xbc] sm:$0xf] %v1022_v24 }
 0x1d8   :  { %1039 = vst [vmem:[%s2390_s2 + $0xcc] sm:$0xf] %v1023_v47 }
 0x1d9   :  { %1040 = vst [vmem:[%s2390_s2 + $0xdc] sm:$0xf] %v1024_v0 }
 0x1da   :  { %1041 = vst [vmem:[%s2390_s2 + $0xec] sm:$0xf] %v1025_v33 }
 0x1db   :  { %1042 = vst [vmem:[%s2390_s2 + $0xfc] sm:$0xf] %v1026_v26 }

// kernel: bottleneck_forward.7
= control target key start
LH: loop header
LB: loop body
LE: loop exit
PB: predicated region body
PF: predicated region fallthrough
CT: control target
= control target key end

     0   :  { %s2698_s1 = inlined_call_operand.vmem [shape: bf16[128,128], index: 1, kind: input, shape index: {}]   ;;  %s2699_s0 = inlined_call_operand.vmem [shape: bf16[512,128], index: 0, kind: input, shape index: {}]   ;;  %s2700_s2 = inlined_call_operand.vmem [shape: bf16[512,128], index: 2, kind: input, shape index: {}]   ;;  %s2701_s3 = inlined_call_operand.vmem [shape: f32[512,128], index: 3, kind: output, shape index: {}]  }
   0x1   :  { %v1376_v0 = vld [vmem:[%s2698_s1 + $0x38] sm:$0xff]  ;;  %v1375_v1 = vld [vmem:[%s2698_s1 + $0x30] sm:$0xff]  ;;  %v1374_v2 = vld [vmem:[%s2698_s1 + $0x28] sm:$0xff] }
   0x2   :  { %334 = vmatpush.bf16.msra.mxu0 %v1376_v0  ;;  %1536 = vmatpush.bf16.msra.mxu1 %v1376_v0  ;;  %v1373_v3 = vld [vmem:[%s2698_s1 + $0x20] sm:$0xff]  ;;  %v1372_v4 = vld [vmem:[%s2698_s1 + $0x18] sm:$0xff]  ;;  %v1371_v5 = vld [vmem:[%s2698_s1 + $0x10] sm:$0xff] }
   0x3   :  { %1537 = vmatpush.bf16.msra.mxu2 %v1376_v0  ;;  %1538 = vmatpush.bf16.msra.mxu3 %v1376_v0  ;;  %v1370_v6 = vld [vmem:[%s2698_s1 + $0x8] sm:$0xff]  ;;  %v1369_v7 = vld [vmem:[%s2698_s1] sm:$0xff]  ;;  %v1339_v13 = vld [vmem:[%s2699_s0 + $0x10] sm:$0xff] }
   0x4   :  { %v1337_v8 = vld [vmem:[%s2699_s0] sm:$0xff]  ;;  %v1338_v10 = vld [vmem:[%s2699_s0 + $0x8] sm:$0xff]  ;;  %v1347_v14 = vld [vmem:[%s2699_s0 + $0x50] sm:$0xff] }
   0x5   :  { %v1345_v9 = vld [vmem:[%s2699_s0 + $0x40] sm:$0xff]  ;;  %v1346_v11 = vld [vmem:[%s2699_s0 + $0x48] sm:$0xff]  ;;  %v1340_v16 = vld [vmem:[%s2699_s0 + $0x18] sm:$0xff] }
   0x6   :  { %335 = vmatpush.bf16.msra.mxu0 %v1375_v1  ;;  %1539 = vmatpush.bf16.msra.mxu1 %v1375_v1  ;;  %v1353_v12 = vld [vmem:[%s2699_s0 + $0x80] sm:$0xff]  ;;  %v1354_v15 = vld [vmem:[%s2699_s0 + $0x88] sm:$0xff]  ;;  %v1348_v17 = vld [vmem:[%s2699_s0 + $0x58] sm:$0xff] }
   0x7   :  { %1540 = vmatpush.bf16.msra.mxu2 %v1375_v1  ;;  %1541 = vmatpush.bf16.msra.mxu3 %v1375_v1  ;;  %v1355_v18 = vld [vmem:[%s2699_s0 + $0x90] sm:$0xff]  ;;  %v1361_v19 = vld [vmem:[%s2699_s0 + $0xc0] sm:$0xff]  ;;  %v1356_v22 = vld [vmem:[%s2699_s0 + $0x98] sm:$0xff] }
   0x8   :  { %v1341_v20 = vld [vmem:[%s2699_s0 + $0x20] sm:$0xff]  ;;  %v1362_v23 = vld [vmem:[%s2699_s0 + $0xc8] sm:$0xff]  ;;  %v1363_v27 = vld [vmem:[%s2699_s0 + $0xd0] sm:$0xff] }
   0x9   :  { %v1349_v21 = vld [vmem:[%s2699_s0 + $0x60] sm:$0xff]  ;;  %v1342_v24 = vld [vmem:[%s2699_s0 + $0x28] sm:$0xff]  ;;  %v1343_v28 = vld [vmem:[%s2699_s0 + $0x30] sm:$0xff] }
   0xa   :  { %336 = vmatpush.bf16.msra.mxu0 %v1374_v2  ;;  %1542 = vmatpush.bf16.msra.mxu1 %v1374_v2  ;;  %v1350_v25 = vld [vmem:[%s2699_s0 + $0x68] sm:$0xff]  ;;  %v1357_v26 = vld [vmem:[%s2699_s0 + $0xa0] sm:$0xff]  ;;  %v1351_v29 = vld [vmem:[%s2699_s0 + $0x70] sm:$0xff] }
   0xb   :  { %1543 = vmatpush.bf16.msra.mxu2 %v1374_v2  ;;  %1544 = vmatpush.bf16.msra.mxu3 %v1374_v2  ;;  %v1358_v30 = vld [vmem:[%s2699_s0 + $0xa8] sm:$0xff]  ;;  %v1364_v31 = vld [vmem:[%s2699_s0 + $0xd8] sm:$0xff]  ;;  %v1359_v34 = vld [vmem:[%s2699_s0 + $0xb0] sm:$0xff] }
   0xc   :  { %v1344_v32 = vld [vmem:[%s2699_s0 + $0x38] sm:$0xff]  ;;  %v1365_v35 = vld [vmem:[%s2699_s0 + $0xe0] sm:$0xff]  ;;  %v1366_v38 = vld [vmem:[%s2699_s0 + $0xe8] sm:$0xff] }
   0xd   :  { %v1352_v33 = vld [vmem:[%s2699_s0 + $0x78] sm:$0xff]  ;;  %v1367_v43 = vld [vmem:[%s2699_s0 + $0xf0] sm:$0xff] }
   0xe   :  { %337 = vmatpush.bf16.msra.mxu0 %v1373_v3  ;;  %1545 = vmatpush.bf16.msra.mxu1 %v1373_v3  ;;  %v1360_v37 = vld [vmem:[%s2699_s0 + $0xb8] sm:$0xff] }
   0xf   :  { %1546 = vmatpush.bf16.msra.mxu2 %v1373_v3  ;;  %1547 = vmatpush.bf16.msra.mxu3 %v1373_v3  ;;  %v1368_v48 = vld [vmem:[%s2699_s0 + $0xf8] sm:$0xff] }
  0x12   :  { %338 = vmatpush.bf16.msra.mxu0 %v1372_v4  ;;  %1548 = vmatpush.bf16.msra.mxu1 %v1372_v4 }
  0x13   :  { %1549 = vmatpush.bf16.msra.mxu2 %v1372_v4  ;;  %1550 = vmatpush.bf16.msra.mxu3 %v1372_v4 }
  0x16   :  { %339 = vmatpush.bf16.msra.mxu0 %v1371_v5  ;;  %1551 = vmatpush.bf16.msra.mxu1 %v1371_v5 }
  0x17   :  { %1552 = vmatpush.bf16.msra.mxu2 %v1371_v5  ;;  %1553 = vmatpush.bf16.msra.mxu3 %v1371_v5 }
  0x1a   :  { %340 = vmatpush.bf16.msra.mxu0 %v1370_v6  ;;  %1554 = vmatpush.bf16.msra.mxu1 %v1370_v6 }
  0x1b   :  { %1555 = vmatpush.bf16.msra.mxu2 %v1370_v6  ;;  %1556 = vmatpush.bf16.msra.mxu3 %v1370_v6 }
  0x1e   :  { %341 = vmatpush.bf16.msra.mxu0 %v1369_v7  ;;  %1557 = vmatpush.bf16.msra.mxu1 %v1369_v7 }
  0x1f   :  { %1558 = vmatpush.bf16.msra.mxu2 %v1369_v7  ;;  %1559 = vmatpush.bf16.msra.mxu3 %v1369_v7 }
  0x21   :  { %342 = vmatmul.bf16.vlgmr.msra.gmra.mxu0 %v1337_v8  ;;  %382 = vmatmul.bf16.vlgmr.msra.gmra.mxu1 %v1345_v9 }
  0x22   :  { %422 = vmatmul.bf16.vlgmr.msra.gmra.mxu2 %v1353_v12  ;;  %462 = vmatmul.bf16.vlgmr.msra.gmra.mxu3 %v1361_v19 }
  0x31   :  { %347 = vmatmul.bf16.gmra.mxu0 %v1338_v10  ;;  %387 = vmatmul.bf16.gmra.mxu1 %v1346_v11 }
  0x32   :  { %427 = vmatmul.bf16.gmra.mxu2 %v1354_v15  ;;  %467 = vmatmul.bf16.gmra.mxu3 %v1362_v23 }
  0x41   :  { %352 = vmatmul.bf16.gmra.mxu0 %v1339_v13  ;;  %392 = vmatmul.bf16.gmra.mxu1 %v1347_v14 }
  0x42   :  { %432 = vmatmul.bf16.gmra.mxu2 %v1355_v18  ;;  %472 = vmatmul.bf16.gmra.mxu3 %v1363_v27 }
  0x51   :  { %357 = vmatmul.bf16.gmra.mxu0 %v1340_v16  ;;  %397 = vmatmul.bf16.gmra.mxu1 %v1348_v17 }
  0x52   :  { %437 = vmatmul.bf16.gmra.mxu2 %v1356_v22  ;;  %477 = vmatmul.bf16.gmra.mxu3 %v1364_v31 }
  0x61   :  { %362 = vmatmul.bf16.gmra.mxu0 %v1341_v20  ;;  %402 = vmatmul.bf16.gmra.mxu1 %v1349_v21 }
  0x62   :  { %442 = vmatmul.bf16.gmra.mxu2 %v1357_v26  ;;  %482 = vmatmul.bf16.gmra.mxu3 %v1365_v35 }
  0x71   :  { %367 = vmatmul.bf16.gmra.mxu0 %v1342_v24  ;;  %407 = vmatmul.bf16.gmra.mxu1 %v1350_v25 }
  0x72   :  { %447 = vmatmul.bf16.gmra.mxu2 %v1358_v30  ;;  %487 = vmatmul.bf16.gmra.mxu3 %v1366_v38 }
  0x81   :  { %372 = vmatmul.bf16.gmra.mxu0 %v1343_v28  ;;  %412 = vmatmul.bf16.gmra.mxu1 %v1351_v29 }
  0x82   :  { %452 = vmatmul.bf16.gmra.mxu2 %v1359_v34  ;;  %492 = vmatmul.bf16.gmra.mxu3 %v1367_v43 }
  0x91   :  { %377 = vmatmul.bf16.gmra.mxu0 %v1344_v32  ;;  %417 = vmatmul.bf16.gmra.mxu1 %v1352_v33 }
  0x92   :  { %457 = vmatmul.bf16.gmra.mxu2 %v1360_v37  ;;  %497 = vmatmul.bf16.gmra.mxu3 %v1368_v48 }
  0x9e   :  { %v1694_v36 = vpop.f32.mrf.mxu0  ;;  %v1702_v39 = vpop.f32.mrf.mxu1 }
  0xa5   :  { %v1724_v49 = vpop.f32.mrf.mxu2  ;;  %v1746_v60 = vpop.f32.mrf.mxu3 }
  0xa6   :  { %v1704_v40 = vpop.f32.mrf.mxu0  ;;  %v1706_v41 = vpop.f32.mrf.mxu1  ;;  %2742 = vst [vmem:[#allocation2_spill] sm:$0xff] %v1724_v49 }
  0xa7   :  { %2744 = vst [vmem:[#allocation4_spill] sm:$0xff] %v1746_v60  ;;  %v503_v7 = vadd.f32 %v1704_v40, %v1694_v36 }
  0xad   :  { %v1730_v52 = vpop.f32.mrf.mxu2  ;;  %v1754_v0 = vpop.f32.mrf.mxu3 }
  0xae   :  { %v1708_v42 = vpop.f32.mrf.mxu0  ;;  %v1713_v44 = vpop.f32.mrf.mxu1  ;;  %2743 = vst [vmem:[#allocation3_spill] sm:$0xff] %v1730_v52 }
  0xaf   :  { %v504_v9 = vadd.f32 %v503_v7, %v1708_v42 }
  0xb5   :  { %v1736_v55 = vpop.f32.mrf.mxu2  ;;  %v1762_v4 = vpop.f32.mrf.mxu3 }
  0xb6   :  { %v1715_v45 = vpop.f32.mrf.mxu0  ;;  %v1719_v47 = vpop.f32.mrf.mxu1 }
  0xb7   :  { %v505_v12 = vadd.f32 %v504_v9, %v1715_v45 }
  0xbd   :  { %v1744_v59 = vpop.f32.mrf.mxu2  ;;  %v1775_v11 = vpop.f32.mrf.mxu3 }
  0xbe   :  { %v1717_v46 = vpop.f32.mrf.mxu0  ;;  %v1728_v51 = vpop.f32.mrf.mxu1 }
  0xbf   :  { %v506_v13 = vadd.f32 %v505_v12, %v1717_v46 }
  0xc5   :  { %v1752_v63 = vpop.f32.mrf.mxu2  ;;  %v1788_v20 = vpop.f32.mrf.mxu3 }
  0xc6   :  { %v1726_v50 = vpop.f32.mrf.mxu0  ;;  %v1734_v54 = vpop.f32.mrf.mxu1  ;;  %2748 = vst [vmem:[#allocation8_spill] sm:$0xff] %v1788_v20 }
  0xc7   :  { %v507_v14 = vadd.f32 %v506_v13, %v1726_v50 }
  0xcd   :  { %v1760_v3 = vpop.f32.mrf.mxu2  ;;  %v1801_v29 = vpop.f32.mrf.mxu3 }
  0xce   :  { %v1732_v53 = vpop.f32.mrf.mxu0  ;;  %v1740_v57 = vpop.f32.mrf.mxu1  ;;  %2745 = vst [vmem:[#allocation5_spill] sm:$0xff] %v1760_v3 }
  0xcf   :  { %v508_v16 = vadd.f32 %v507_v14, %v1732_v53  ;;  %2749 = vst [vmem:[#allocation9_spill] sm:$0xff] %v1801_v29 }
  0xd5   :  { %v1770_v8 = vpop.f32.mrf.mxu2  ;;  %v1814_v43 = vpop.f32.mrf.mxu3 }
  0xd6   :  { %v1738_v56 = vpop.f32.mrf.mxu0  ;;  %v1750_v62 = vpop.f32.mrf.mxu1  ;;  %2746 = vst [vmem:[#allocation6_spill] sm:$0xff] %v1770_v8 }
  0xd7   :  { %v509_v19 = vadd.f32 %v508_v16, %v1738_v56  ;;  %2750 = vst [vmem:[#allocation10_spill] sm:$0xff] %v1814_v43 }
  0xdd   :  { %v1785_v18 = vpop.f32.mrf.mxu2 }
  0xde   :  { %v1742_v58 = vpop.f32.mrf.mxu0  ;;  %v1758_v2 = vpop.f32.mrf.mxu1  ;;  %2747 = vst [vmem:[#allocation7_spill] sm:$0xff] %v1785_v18 }
  0xdf   :  { %v510_v21 = vadd.f32 %v509_v19, %v1742_v58  ;;  %v1825_v19 = vpop.f32.mrf.mxu3 }
  0xe0   :  { %2752 = vst [vmem:[#allocation12_spill] sm:$0xff] %v1825_v19 }
  0xe5   :  { %v1798_v27 = vpop.f32.mrf.mxu2 }
  0xe6   :  { %v1748_v61 = vpop.f32.mrf.mxu0  ;;  %v1766_v6 = vpop.f32.mrf.mxu1 }
  0xe7   :  { %v511_v22 = vadd.f32 %v510_v21, %v1748_v61 }
  0xed   :  { %v1811_v37 = vpop.f32.mrf.mxu2 }
  0xee   :  { %v1756_v1 = vpop.f32.mrf.mxu0  ;;  %v1780_v15 = vpop.f32.mrf.mxu1 }
  0xef   :  { %v512_v23 = vadd.f32 %v511_v22, %v1756_v1 }
  0xf5   :  { %v1822_v14 = vpop.f32.mrf.mxu2 }
  0xf6   :  { %v1764_v5 = vpop.f32.mrf.mxu0  ;;  %v1795_v25 = vpop.f32.mrf.mxu1  ;;  %2751 = vst [vmem:[#allocation11_spill] sm:$0xff] %v1822_v14 }
  0xf7   :  { %v513_v26 = vadd.f32 %v512_v23, %v1764_v5 }
  0xfe   :  { %v1773_v10 = vpop.f32.mrf.mxu0  ;;  %v1808_v34 = vpop.f32.mrf.mxu1 }
  0xff   :  { %v514_v28 = vadd.f32 %v513_v26, %v1773_v10 }
 0x106   :  { %v1783_v17 = vpop.f32.mrf.mxu0  ;;  %v1819_v12 = vpop.f32.mrf.mxu1 }
 0x107   :  { %v515_v30 = vadd.f32 %v514_v28, %v1783_v17 }
 0x10e   :  { %v1793_v24 = vpop.f32.mrf.mxu0  ;;  %v1830_v26 = vpop.f32.mrf.mxu1 }
 0x10f   :  { %v516_v31 = vadd.f32 %v515_v30, %v1793_v24  ;;  %2753 = vst [vmem:[#allocation13_spill] sm:$0xff] %v1830_v26  ;;  %v1833_v30 = vpop.f32.mrf.mxu2 }
 0x110   :  { %2754 = vst [vmem:[#allocation14_spill] sm:$0xff] %v1833_v30 }
 0x116   :  { %v1805_v32 = vpop.f32.mrf.mxu0 }
 0x117   :  { %v517_v33 = vadd.f32 %v516_v31, %v1805_v32 }
 0x119   :  { %v518_v35 = vadd.f32 %v517_v33, %v1702_v39  ;;  %v1836_v33 = vpop.f32.mrf.mxu3 }
 0x11a   :  { %2755 = vst [vmem:[#allocation15_spill] sm:$0xff] %v1836_v33 }
 0x11b   :  { %v519_v38 = vadd.f32 %v518_v35, %v1706_v41 }
 0x11d   :  { %v520_v48 = vadd.f32 %v519_v38, %v1713_v44 }
 0x11f   :  { %v521_v7 = vadd.f32 %v520_v48, %v1719_v47 }
 0x121   :  { %v522_v9 = vadd.f32 %v521_v7, %v1728_v51  ;;  %v1841_v7 = vpop.f32.mrf.mxu1 }
 0x123   :  { %v523_v13 = vadd.f32 %v522_v9, %v1734_v54 }
 0x125   :  { %v524_v16 = vadd.f32 %v523_v13, %v1740_v57  ;;  %v1844_v13 = vpop.f32.mrf.mxu2 }
 0x127   :  { %v525_v21 = vadd.f32 %v524_v16, %v1750_v62 }
 0x129   :  { %v526_v22 = vadd.f32 %v525_v21, %v1758_v2  ;;  %v1847_v21 = vpop.f32.mrf.mxu3 }
 0x12a   :  { %2756 = vst [vmem:[#allocation16_spill] sm:$0xff] %v1847_v21 }
 0x12b   :  { %v527_v23 = vadd.f32 %v526_v22, %v1766_v6 }
 0x12d   :  { %v528_v28 = vadd.f32 %v527_v23, %v1780_v15 }
 0x12f   :  { %v529_v31 = vadd.f32 %v528_v28, %v1795_v25 }
 0x131   :  { %v530_v35 = vadd.f32 %v529_v31, %v1808_v34 }
 0x133   :  { %v531_v38 = vadd.f32 %v530_v35, %v1819_v12  ;;  %v1853_v35 = vpop.f32.mrf.mxu2 }
 0x135   :  { %v532_v48 = vadd.f32 %v531_v38, %v1830_v26  ;;  %v1856_v26 = vpop.f32.mrf.mxu3 }
 0x136   :  { %2757 = vst [vmem:[#allocation17_spill] sm:$0xff] %v1856_v26 }
 0x137   :  { %v533_v9 = vadd.f32 %v532_v48, %v1841_v7 }
 0x139   :  { %v534_v16 = vadd.f32 %v533_v9, %v1724_v49 }
 0x13b   :  { %v535_v22 = vadd.f32 %v534_v16, %v1730_v52  ;;  %v1862_v52 = vpop.f32.mrf.mxu2 }
 0x13d   :  { %v536_v23 = vadd.f32 %v535_v22, %v1736_v55 }
 0x13f   :  { %v537_v28 = vadd.f32 %v536_v23, %v1744_v59  ;;  %v1865_v23 = vpop.f32.mrf.mxu3 }
 0x141   :  { %v538_v31 = vadd.f32 %v537_v28, %v1752_v63 }
 0x143   :  { %v539_v38 = vadd.f32 %v538_v31, %v1760_v3 }
 0x145   :  { %v540_v48 = vadd.f32 %v539_v38, %v1770_v8  ;;  %v460_v8 = vpop.f32.mrf.mxu2 }
 0x147   :  { %v541_v9 = vadd.f32 %v540_v48, %v1785_v18  ;;  %v1871_v18 = vpop.f32.mrf.mxu3 }
 0x148   :  { %2758 = vst [vmem:[#allocation18_spill] sm:$0xff] %v1871_v18 }
 0x149   :  { %v542_v49 = vadd.f32 %v541_v9, %v1798_v27 }
 0x14b   :  { %v543_v16 = vadd.f32 %v542_v49, %v1811_v37 }
 0x14d   :  { %v544_v22 = vadd.f32 %v543_v16, %v1822_v14 }
 0x14f   :  { %v545_v28 = vadd.f32 %v544_v22, %v1833_v30  ;;  %v1878_v30 = vpop.f32.mrf.mxu3 }
 0x151   :  { %v546_v31 = vadd.f32 %v545_v28, %v1844_v13 }
 0x153   :  { %v547_v3 = vadd.f32 %v546_v31, %v1853_v35 }
 0x155   :  { %v548_v38 = vadd.f32 %v547_v3, %v1862_v52 }
 0x157   :  { %v549_v48 = vadd.f32 %v548_v38, %v460_v8 }
 0x159   :  { %v550_v49 = vadd.f32 %v549_v48, %v1746_v60  ;;  %v1885_v60 = vpop.f32.mrf.mxu3 }
 0x15b   :  { %v551_v9 = vadd.f32 %v550_v49, %v1754_v0 }
 0x15d   :  { %v552_v16 = vadd.f32 %v551_v9, %v1762_v4 }
 0x15f   :  { %v553_v14 = vadd.f32 %v552_v16, %v1775_v11  ;;  %v1565_v16 = vmov 512.0  }
 0x160   :  { %1561 = vrcp.f32 %v1565_v16 }
 0x161   :  { %v554_v22 = vadd.f32 %v553_v14, %v1788_v20 }
 0x163   :  { %v555_v28 = vadd.f32 %v554_v22, %v1801_v29 }
 0x165   :  { %v556_v3 = vadd.f32 %v555_v28, %v1814_v43  ;;  %v500_v43 = vpop.f32.mrf.mxu3 }
 0x167   :  { %v557_v31 = vadd.f32 %v556_v3, %v1825_v19  ;;  %v1562_v19 = vpop.eup %1561 }
 0x168   :  { %vm577_vm0 = vweird.f32 %v1562_v19 }
 0x169   :  { %v558_v38 = vadd.f32 %v557_v31, %v1836_v33 }
 0x16b   :  { %v559_v48 = vadd.f32 %v558_v38, %v1847_v21  ;;  %v573_v38 = vmul.f32 512.0, %v1562_v19 }
 0x16d   :  { %v560_v49 = vadd.f32 %v559_v48, %v1856_v26  ;;  %v574_v29 = vsub.f32 1.0, %v573_v38 }
 0x16f   :  { %v561_v9 = vadd.f32 %v560_v49, %v1865_v23  ;;  %v575_v48 = vmul.f32 %v1562_v19, %v574_v29 }
 0x171   :  { %v562_v14 = vadd.f32 %v561_v9, %v1871_v18  ;;  %v576_v49 = vadd.f32 %v1562_v19, %v575_v48 }
 0x173   :  { %v563_v22 = vadd.f32 %v562_v14, %v1878_v30  ;;  %v1892_v18 = vsel %vm577_vm0, %v1562_v19, %v576_v49 }
 0x175   :  { %v564_v28 = vadd.f32 %v563_v22, %v1885_v60 }
 0x177   :  { %v565_v3 = vadd.f32 %v564_v28, %v500_v43 }
 0x179   :  { %v566_v31 = vrot.slane %v565_v3, 4 }
 0x17b   :  { %v567_v33 = vadd.f32 %v566_v31, %v565_v3 }
 0x17d   :  { %v568_v21 = vrot.slane %v567_v33, 2 }
 0x17f   :  { %v569_v20 = vadd.f32 %v568_v21, %v567_v33 }
 0x181   :  { %v570_v26 = vrot.slane %v569_v20, 1 }
 0x183   :  { %v571_v9 = vadd.f32 %v570_v26, %v569_v20 }
 0x185   :  { %v1895_v14 = vmul.f32 %v1892_v18, %v571_v9 }
 0x187   :  { %v1898_v16 = vsub.f32 %v460_v8, %v1895_v14  ;;  %v1901_v22 = vsub.f32 %v500_v43, %v1895_v14  ;;  %v1905_v28 = vsub.f32 %v1694_v36, %v1895_v14  ;;  %v1909_v29 = vsub.f32 %v1704_v40, %v1895_v14 }
 0x188   :  { %v1913_v20 = vsub.f32 %v1708_v42, %v1895_v14  ;;  %v1921_v43 = vsub.f32 %v1715_v45, %v1895_v14  ;;  %v1925_v36 = vsub.f32 %v1717_v46, %v1895_v14  ;;  %v1931_v42 = vsub.f32 %v1726_v50, %v1895_v14 }
 0x189   :  { %2759 = vst [vmem:[#allocation19_spill] sm:$0xff] %v1898_v16  ;;  %v644_v19 = vmul.f32 %v1905_v28, %v1905_v28  ;;  %v645_v8 = vmul.f32 %v1909_v29, %v1909_v29  ;;  %v1937_v45 = vsub.f32 %v1732_v53, %v1895_v14  ;;  %v1943_v31 = vsub.f32 %v1738_v56, %v1895_v14 }
 0x18a   :  { %2760 = vst [vmem:[#allocation20_spill] sm:$0xff] %v1901_v22  ;;  %v646_v40 = vmul.f32 %v1913_v20, %v1913_v20  ;;  %v647_v33 = vmul.f32 %v1921_v43, %v1921_v43  ;;  %v648_v46 = vmul.f32 %v1925_v36, %v1925_v36  ;;  %v649_v50 = vmul.f32 %v1931_v42, %v1931_v42 }
 0x18b   :  { %v708_v26 = vadd.f32 %v645_v8, %v644_v19  ;;  %v1949_v48 = vsub.f32 %v1742_v58, %v1895_v14  ;;  %v650_v53 = vmul.f32 %v1937_v45, %v1937_v45  ;;  %v1955_v9 = vsub.f32 %v1748_v61, %v1895_v14 }
 0x18c   :  { %v651_v56 = vmul.f32 %v1943_v31, %v1943_v31  ;;  %v1961_v8 = vsub.f32 %v1756_v1, %v1895_v14 }
 0x18d   :  { %v709_v21 = vadd.f32 %v708_v26, %v646_v40  ;;  %v652_v58 = vmul.f32 %v1949_v48, %v1949_v48  ;;  %v1967_v26 = vsub.f32 %v1764_v5, %v1895_v14  ;;  %v653_v61 = vmul.f32 %v1955_v9, %v1955_v9 }
 0x18e   :  { %v654_v1 = vmul.f32 %v1961_v8, %v1961_v8 }
 0x18f   :  { %v710_v3 = vadd.f32 %v709_v21, %v647_v33  ;;  %v1973_v21 = vsub.f32 %v1773_v10, %v1895_v14  ;;  %v655_v5 = vmul.f32 %v1967_v26, %v1967_v26 }
 0x191   :  { %v711_v38 = vadd.f32 %v710_v3, %v648_v46  ;;  %v1979_v3 = vsub.f32 %v1783_v17, %v1895_v14  ;;  %v656_v10 = vmul.f32 %v1973_v21, %v1973_v21 }
 0x193   :  { %v712_v49 = vadd.f32 %v711_v38, %v649_v50  ;;  %v1985_v38 = vsub.f32 %v1793_v24, %v1895_v14  ;;  %v657_v17 = vmul.f32 %v1979_v3, %v1979_v3 }
 0x195   :  { %v713_v19 = vadd.f32 %v712_v49, %v650_v53  ;;  %v1991_v49 = vsub.f32 %v1805_v32, %v1895_v14  ;;  %v658_v24 = vmul.f32 %v1985_v38, %v1985_v38 }
 0x197   :  { %v714_v40 = vadd.f32 %v713_v19, %v651_v56  ;;  %v1997_v19 = vsub.f32 %v1702_v39, %v1895_v14  ;;  %v659_v32 = vmul.f32 %v1991_v49, %v1991_v49 }
 0x199   :  { %v715_v33 = vadd.f32 %v714_v40, %v652_v58  ;;  %v2003_v40 = vsub.f32 %v1706_v41, %v1895_v14  ;;  %v660_v39 = vmul.f32 %v1997_v19, %v1997_v19 }
 0x19b   :  { %v716_v46 = vadd.f32 %v715_v33, %v653_v61  ;;  %v2009_v33 = vsub.f32 %v1713_v44, %v1895_v14  ;;  %v661_v41 = vmul.f32 %v2003_v40, %v2003_v40 }
 0x19d   :  { %v717_v50 = vadd.f32 %v716_v46, %v654_v1  ;;  %v2015_v46 = vsub.f32 %v1719_v47, %v1895_v14  ;;  %v662_v44 = vmul.f32 %v2009_v33, %v2009_v33 }
 0x19f   :  { %v718_v53 = vadd.f32 %v717_v50, %v655_v5  ;;  %v2021_v50 = vsub.f32 %v1728_v51, %v1895_v14  ;;  %v663_v47 = vmul.f32 %v2015_v46, %v2015_v46 }
 0x1a1   :  { %v719_v56 = vadd.f32 %v718_v53, %v656_v10  ;;  %v2027_v53 = vsub.f32 %v1734_v54, %v1895_v14  ;;  %v664_v51 = vmul.f32 %v2021_v50, %v2021_v50 }
 0x1a3   :  { %v720_v58 = vadd.f32 %v719_v56, %v657_v17  ;;  %v2033_v56 = vsub.f32 %v1740_v57, %v1895_v14  ;;  %v665_v54 = vmul.f32 %v2027_v53, %v2027_v53 }
 0x1a5   :  { %v721_v61 = vadd.f32 %v720_v58, %v658_v24  ;;  %v2039_v58 = vsub.f32 %v1750_v62, %v1895_v14  ;;  %v666_v57 = vmul.f32 %v2033_v56, %v2033_v56 }
 0x1a7   :  { %v722_v1 = vadd.f32 %v721_v61, %v659_v32  ;;  %v2045_v61 = vsub.f32 %v1758_v2, %v1895_v14  ;;  %v667_v62 = vmul.f32 %v2039_v58, %v2039_v58 }
 0x1a9   :  { %v723_v5 = vadd.f32 %v722_v1, %v660_v39  ;;  %v2051_v1 = vsub.f32 %v1766_v6, %v1895_v14  ;;  %v668_v2 = vmul.f32 %v2045_v61, %v2045_v61 }
 0x1ab   :  { %v724_v10 = vadd.f32 %v723_v5, %v661_v41  ;;  %v2057_v5 = vsub.f32 %v1780_v15, %v1895_v14  ;;  %v669_v6 = vmul.f32 %v2051_v1, %v2051_v1 }
 0x1ad   :  { %v725_v17 = vadd.f32 %v724_v10, %v662_v44  ;;  %v2063_v10 = vsub.f32 %v1795_v25, %v1895_v14  ;;  %v670_v15 = vmul.f32 %v2057_v5, %v2057_v5 }
 0x1af   :  { %v726_v24 = vadd.f32 %v725_v17, %v663_v47  ;;  %v2069_v17 = vsub.f32 %v1808_v34, %v1895_v14  ;;  %v671_v25 = vmul.f32 %v2063_v10, %v2063_v10 }
 0x1b1   :  { %v727_v32 = vadd.f32 %v726_v24, %v664_v51  ;;  %v2075_v24 = vsub.f32 %v1819_v12, %v1895_v14  ;;  %v672_v34 = vmul.f32 %v2069_v17, %v2069_v17 }
 0x1b3   :  { %v728_v39 = vadd.f32 %v727_v32, %v665_v54  ;;  %v2761_v32 = vld [vmem:[#allocation13_spill] sm:$0xff]  ;;  %v673_v12 = vmul.f32 %v2075_v24, %v2075_v24 }
 0x1b5   :  { %v729_v41 = vadd.f32 %v728_v39, %v666_v57  ;;  %v2081_v57 = vsub.f32 %v2761_v32, %v1895_v14 }
 0x1b7   :  { %v730_v44 = vadd.f32 %v729_v41, %v667_v62  ;;  %v2087_v62 = vsub.f32 %v1841_v7, %v1895_v14 }
 0x1b9   :  { %v731_v47 = vadd.f32 %v730_v44, %v668_v2  ;;  %v2762_v2 = vld [vmem:[#allocation2_spill] sm:$0xff]  ;;  %v675_v7 = vmul.f32 %v2087_v62, %v2087_v62 }
 0x1ba   :  { %v2093_v44 = vsub.f32 %v2762_v2, %v1895_v14  ;;  %v2117_v2 = vsub.f32 %v1752_v63, %v1895_v14 }
 0x1bb   :  { %v732_v51 = vadd.f32 %v731_v47, %v669_v6  ;;  %v674_v6 = vmul.f32 %v2081_v57, %v2081_v57 }
 0x1bc   :  { %v676_v32 = vmul.f32 %v2093_v44, %v2093_v44  ;;  %v680_v63 = vmul.f32 %v2117_v2, %v2117_v2 }
 0x1bd   :  { %v733_v54 = vadd.f32 %v732_v51, %v670_v15  ;;  %v2763_v15 = vld [vmem:[#allocation3_spill] sm:$0xff] }
 0x1be   :  { %v2099_v51 = vsub.f32 %v2763_v15, %v1895_v14 }
 0x1bf   :  { %v734_v39 = vadd.f32 %v733_v54, %v671_v25  ;;  %v2105_v54 = vsub.f32 %v1736_v55, %v1895_v14 }
 0x1c0   :  { %2764 = vst [vmem:[#allocation13_spill] sm:$0xff] %v2099_v51 }
 0x1c1   :  { %v735_v41 = vadd.f32 %v734_v39, %v672_v34  ;;  %2765 = vst [vmem:[#allocation2_spill] sm:$0xff] %v2105_v54  ;;  %v2111_v39 = vsub.f32 %v1744_v59, %v1895_v14  ;;  %v678_v55 = vmul.f32 %v2105_v54, %v2105_v54 }
 0x1c3   :  { %v736_v47 = vadd.f32 %v735_v41, %v673_v12  ;;  %v677_v12 = vmul.f32 %v2099_v51, %v2099_v51  ;;  %v679_v59 = vmul.f32 %v2111_v39, %v2111_v39 }
 0x1c5   :  { %v737_v25 = vadd.f32 %v736_v47, %v674_v6  ;;  %v2766_v47 = vld [vmem:[#allocation5_spill] sm:$0xff] }
 0x1c6   :  { %v2123_v15 = vsub.f32 %v2766_v47, %v1895_v14  ;;  %v2141_v47 = vsub.f32 %v1798_v27, %v1895_v14 }
 0x1c7   :  { %v738_v34 = vadd.f32 %v737_v25, %v675_v7  ;;  %v2768_v25 = vld [vmem:[#allocation6_spill] sm:$0xff] }
 0x1c8   :  { %2767 = vst [vmem:[#allocation3_spill] sm:$0xff] %v2123_v15  ;;  %v2129_v51 = vsub.f32 %v2768_v25, %v1895_v14  ;;  %v2147_v25 = vsub.f32 %v1811_v37, %v1895_v14  ;;  %v684_v27 = vmul.f32 %v2141_v47, %v2141_v47 }
 0x1c9   :  { %v739_v41 = vadd.f32 %v738_v34, %v676_v32  ;;  %v2770_v34 = vld [vmem:[#allocation7_spill] sm:$0xff] }
 0x1ca   :  { %2769 = vst [vmem:[#allocation5_spill] sm:$0xff] %v2129_v51  ;;  %v2135_v54 = vsub.f32 %v2770_v34, %v1895_v14  ;;  %v2771_v34 = vld [vmem:[#allocation11_spill] sm:$0xff]  ;;  %v685_v37 = vmul.f32 %v2147_v25, %v2147_v25 }
 0x1cb   :  { %v740_v6 = vadd.f32 %v739_v41, %v677_v12  ;;  %v681_v12 = vmul.f32 %v2123_v15, %v2123_v15  ;;  %v2153_v15 = vsub.f32 %v2771_v34, %v1895_v14  ;;  %v2171_v34 = vsub.f32 %v1853_v35, %v1895_v14 }
 0x1cd   :  { %v741_v7 = vadd.f32 %v740_v6, %v678_v55  ;;  %v682_v55 = vmul.f32 %v2129_v51, %v2129_v51 }
 0x1cf   :  { %v742_v32 = vadd.f32 %v741_v7, %v679_v59  ;;  %v683_v59 = vmul.f32 %v2135_v54, %v2135_v54 }
 0x1d1   :  { %v743_v41 = vadd.f32 %v742_v32, %v680_v63  ;;  %v2772_v32 = vld [vmem:[#allocation14_spill] sm:$0xff] }
 0x1d2   :  { %v2159_v51 = vsub.f32 %v2772_v32, %v1895_v14  ;;  %v2177_v32 = vsub.f32 %v1862_v52, %v1895_v14  ;;  %v2191_v52 = vsub.f32 %v1754_v0, %v1895_v14 }
 0x1d3   :  { %v744_v6 = vadd.f32 %v743_v41, %v681_v12  ;;  %v2165_v41 = vsub.f32 %v1844_v13, %v1895_v14 }
 0x1d4   :  { %2773 = vst [vmem:[#allocation6_spill] sm:$0xff] %v2159_v51  ;;  %v693_v0 = vmul.f32 %v2191_v52, %v2191_v52 }
 0x1d5   :  { %v745_v7 = vadd.f32 %v744_v6, %v682_v55  ;;  %v686_v55 = vmul.f32 %v2153_v15, %v2153_v15  ;;  %2774 = vst [vmem:[#allocation7_spill] sm:$0xff] %v2177_v32  ;;  %v688_v13 = vmul.f32 %v2165_v41, %v2165_v41 }
 0x1d6   :  { %2777 = vst [vmem:[#allocation14_spill] sm:$0xff] %v2191_v52 }
 0x1d7   :  { %v746_v63 = vadd.f32 %v745_v7, %v683_v59  ;;  %v687_v59 = vmul.f32 %v2159_v51, %v2159_v51  ;;  %v690_v51 = vmul.f32 %v2177_v32, %v2177_v32 }
 0x1d9   :  { %v747_v12 = vadd.f32 %v746_v63, %v684_v27  ;;  %v689_v63 = vmul.f32 %v2171_v34, %v2171_v34 }
 0x1db   :  { %v748_v6 = vadd.f32 %v747_v12, %v685_v37  ;;  %v2775_v12 = vld [vmem:[#allocation4_spill] sm:$0xff] }
 0x1dc   :  { %v2185_v35 = vsub.f32 %v2775_v12, %v1895_v14  ;;  %v2203_v12 = vsub.f32 %v1775_v11, %v1895_v14 }
 0x1dd   :  { %v749_v7 = vadd.f32 %v748_v6, %v686_v55  ;;  %v691_v6 = vmul.f32 %v1898_v16, %v1898_v16 }
 0x1de   :  { %2776 = vst [vmem:[#allocation11_spill] sm:$0xff] %v2185_v35  ;;  %v695_v11 = vmul.f32 %v2203_v12, %v2203_v12 }
 0x1df   :  { %v750_v27 = vadd.f32 %v749_v7, %v687_v59  ;;  %v2197_v7 = vsub.f32 %v1762_v4, %v1895_v14  ;;  %2779 = vst [vmem:[#allocation21_spill] sm:$0xff] %v2203_v12 }
 0x1e1   :  { %v751_v37 = vadd.f32 %v750_v27, %v688_v13  ;;  %2778 = vst [vmem:[#allocation4_spill] sm:$0xff] %v2197_v7  ;;  %v692_v13 = vmul.f32 %v2185_v35, %v2185_v35  ;;  %v694_v4 = vmul.f32 %v2197_v7, %v2197_v7 }
 0x1e3   :  { %v752_v55 = vadd.f32 %v751_v37, %v689_v63  ;;  %v2780_v37 = vld [vmem:[#allocation8_spill] sm:$0xff] }
 0x1e4   :  { %v2209_v16 = vsub.f32 %v2780_v37, %v1895_v14  ;;  %v2786_v37 = vld [vmem:[#allocation12_spill] sm:$0xff] }
 0x1e5   :  { %v753_v59 = vadd.f32 %v752_v55, %v690_v51  ;;  %v2782_v55 = vld [vmem:[#allocation9_spill] sm:$0xff]  ;;  %v2227_v7 = vsub.f32 %v2786_v37, %v1895_v14 }
 0x1e6   :  { %2781 = vst [vmem:[#allocation8_spill] sm:$0xff] %v2209_v16  ;;  %v2215_v35 = vsub.f32 %v2782_v55, %v1895_v14  ;;  %v2788_v55 = vld [vmem:[#allocation15_spill] sm:$0xff]  ;;  %v2792_v37 = vld [vmem:[#allocation17_spill] sm:$0xff] }
 0x1e7   :  { %v754_v27 = vadd.f32 %v753_v59, %v691_v6  ;;  %v2784_v59 = vld [vmem:[#allocation10_spill] sm:$0xff]  ;;  %2787 = vst [vmem:[#allocation12_spill] sm:$0xff] %v2227_v7  ;;  %v2233_v12 = vsub.f32 %v2788_v55, %v1895_v14  ;;  %v2251_v55 = vsub.f32 %v1865_v23, %v1895_v14 }
 0x1e8   :  { %2783 = vst [vmem:[#allocation9_spill] sm:$0xff] %v2215_v35  ;;  %v2221_v52 = vsub.f32 %v2784_v59, %v1895_v14  ;;  %v2790_v59 = vld [vmem:[#allocation16_spill] sm:$0xff] }
 0x1e9   :  { %v755_v63 = vadd.f32 %v754_v27, %v692_v13  ;;  %v696_v13 = vmul.f32 %v2209_v16, %v2209_v16  ;;  %2789 = vst [vmem:[#allocation15_spill] sm:$0xff] %v2233_v12  ;;  %v2239_v16 = vsub.f32 %v2790_v59, %v1895_v14  ;;  %v2795_v59 = vld [vmem:[#allocation18_spill] sm:$0xff]  ;;  %v703_v23 = vmul.f32 %v2251_v55, %v2251_v55 }
 0x1ea   :  { %2785 = vst [vmem:[#allocation10_spill] sm:$0xff] %v2221_v52 }
 0x1eb   :  { %v756_v51 = vadd.f32 %v755_v63, %v693_v0  ;;  %v697_v0 = vmul.f32 %v2215_v35, %v2215_v35  ;;  %2791 = vst [vmem:[#allocation16_spill] sm:$0xff] %v2239_v16  ;;  %v2245_v35 = vsub.f32 %v2792_v37, %v1895_v14  ;;  %v2263_v37 = vsub.f32 %v1878_v30, %v1895_v14 }
 0x1ec   :  { %2794 = vst [vmem:[#allocation22_spill] sm:$0xff] %v2251_v55  ;;  %v707_v55 = vmul.f32 %v1901_v22, %v1901_v22 }
 0x1ed   :  { %v757_v6 = vadd.f32 %v756_v51, %v694_v4  ;;  %v698_v4 = vmul.f32 %v2221_v52, %v2221_v52  ;;  %2793 = vst [vmem:[#allocation17_spill] sm:$0xff] %v2245_v35 }
 0x1ee   :  { %2797 = vst [vmem:[#allocation23_spill] sm:$0xff] %v2263_v37 }
 0x1ef   :  { %v758_v27 = vadd.f32 %v757_v6, %v695_v11  ;;  %v699_v11 = vmul.f32 %v2227_v7, %v2227_v7  ;;  %v2257_v7 = vsub.f32 %v2795_v59, %v1895_v14  ;;  %v705_v59 = vmul.f32 %v2263_v37, %v2263_v37 }
 0x1f1   :  { %v759_v63 = vadd.f32 %v758_v27, %v696_v13  ;;  %v700_v13 = vmul.f32 %v2233_v12, %v2233_v12  ;;  %2796 = vst [vmem:[#allocation18_spill] sm:$0xff] %v2257_v7 }
 0x1f3   :  { %v760_v51 = vadd.f32 %v759_v63, %v697_v0  ;;  %v701_v0 = vmul.f32 %v2239_v16, %v2239_v16 }
 0x1f5   :  { %v761_v6 = vadd.f32 %v760_v51, %v698_v4  ;;  %v702_v4 = vmul.f32 %v2245_v35, %v2245_v35 }
 0x1f7   :  { %v762_v27 = vadd.f32 %v761_v6, %v699_v11  ;;  %v2269_v6 = vsub.f32 %v1885_v60, %v1895_v14 }
 0x1f9   :  { %v763_v63 = vadd.f32 %v762_v27, %v700_v13  ;;  %2798 = vst [vmem:[#allocation24_spill] sm:$0xff] %v2269_v6  ;;  %v704_v13 = vmul.f32 %v2257_v7, %v2257_v7  ;;  %v706_v30 = vmul.f32 %v2269_v6, %v2269_v6 }
 0x1fb   :  { %v764_v51 = vadd.f32 %v763_v63, %v701_v0 }
 0x1fd   :  { %v765_v11 = vadd.f32 %v764_v51, %v702_v4 }
 0x1ff   :  { %v766_v27 = vadd.f32 %v765_v11, %v703_v23 }
 0x201   :  { %v767_v0 = vadd.f32 %v766_v27, %v704_v13 }
 0x203   :  { %v768_v63 = vadd.f32 %v767_v0, %v705_v59 }
 0x205   :  { %v769_v4 = vadd.f32 %v768_v63, %v706_v30 }
 0x207   :  { %v770_v51 = vadd.f32 %v769_v4, %v707_v55 }
 0x209   :  { %v771_v35 = vrot.slane %v770_v51, 4 }
 0x20b   :  { %v772_v60 = vadd.f32 %v771_v35, %v770_v51  ;;  %v1378_v35 = vld [vmem:[%s2700_s2] sm:$0xff]  }
 0x20d   :  { %v773_v14 = vrot.slane %v772_v60, 2 }
 0x20f   :  { %v774_v16 = vadd.f32 %v773_v14, %v772_v60  ;;  %v1507_v60 = vld [vmem:[%s2700_s2 + $0x18] sm:$0xff]  }
 0x211   :  { %v775_v12 = vrot.slane %v774_v16, 1 }
 0x213   :  { %v776_v7 = vadd.f32 %v775_v12, %v774_v16  ;;  %v1506_v16 = vld [vmem:[%s2700_s2 + $0x10] sm:$0xff]   ;;  %v1379_v12 = vunpack.c.l.bf16 %v1378_v35 }
 0x214   :  { %v1387_v14 = vunpack.c.l.bf16 %v1506_v16 }
 0x215   :  { %v777_v23 = vmul.f32 %v776_v7, %v1892_v18  ;;  %v1505_v18 = vld [vmem:[%s2700_s2 + $0x8] sm:$0xff]  }
 0x216   :  { %v1384_v51 = vunpack.c.h.bf16 %v1505_v18 }
 0x217   :  { %v778_v11 = vadd.f32 1e-05, %v777_v23 }
 0x219   :  { %1563 = vrsqrt.f32 %v778_v11  ;;  %vm785_vm2 = vweird.f32 %v778_v11 }
 0x21f   :  { %v1564_v13 = vpop.eup %1563 }
 0x220   :  { %v780_v27 = vmul.f32 %v1564_v13, %v778_v11  ;;  %vm786_vm1 = vweird.f32 %v1564_v13  ;;  %v1388_v11 = vunpack.c.h.bf16 %v1506_v16 }
 0x221   :  { %vm787_vm3 = vmor %vm785_vm2, %vm786_vm1 }
 0x222   :  { %v781_v37 = vmul.f32 %v1564_v13, %v780_v27  ;;  %v1509_v27 = vld [vmem:[%s2700_s2 + $0x28] sm:$0xff]  }
 0x223   :  { %v1400_v32 = vunpack.c.h.bf16 %v1509_v27 }
 0x224   :  { %v782_v6 = vmul.f32 0.5, %v781_v37  ;;  %v1380_v37 = vunpack.c.h.bf16 %v1378_v35 }
 0x226   :  { %v783_v59 = vsub.f32 1.5, %v782_v6  ;;  %v1383_v6 = vunpack.c.l.bf16 %v1505_v18 }
 0x228   :  { %v784_v0 = vmul.f32 %v1564_v13, %v783_v59 }
 0x22a   :  { %v2280_v55 = vsel %vm787_vm3, %v1564_v13, %v784_v0  ;;  %v1392_v13 = vunpack.c.h.bf16 %v1507_v60 }
 0x22b   :  { %v789_v7 = vmul.f32 %v2280_v55, %v1905_v28  ;;  %v790_v30 = vmul.f32 %v2280_v55, %v1909_v29  ;;  %v791_v63 = vmul.f32 %v2280_v55, %v1913_v20  ;;  %v792_v4 = vmul.f32 %v2280_v55, %v1921_v43  ;;  %v1508_v29 = vld [vmem:[%s2700_s2 + $0x20] sm:$0xff]  }
 0x22c   :  { %v793_v28 = vmul.f32 %v2280_v55, %v1925_v36  ;;  %v794_v23 = vmul.f32 %v2280_v55, %v1931_v42  ;;  %v795_v20 = vmul.f32 %v2280_v55, %v1937_v45  ;;  %v1391_v43 = vunpack.c.l.bf16 %v1507_v60 }
 0x22d   :  { %v981_v59 = vadd.f32 %v1379_v12, %v789_v7  ;;  %v796_v36 = vmul.f32 %v2280_v55, %v1943_v31  ;;  %v982_v0 = vadd.f32 %v1380_v37, %v790_v30  ;;  %v983_v42 = vadd.f32 %v1383_v6, %v791_v63  ;;  %v1510_v7 = vld [vmem:[%s2700_s2 + $0x30] sm:$0xff]   ;;  %v1511_v30 = vld [vmem:[%s2700_s2 + $0x38] sm:$0xff]  }
 0x22e   :  { %v984_v35 = vadd.f32 %v1384_v51, %v792_v4  ;;  %v797_v18 = vmul.f32 %v2280_v55, %v1949_v48  ;;  %v1395_v16 = vunpack.c.l.bf16 %v1508_v29  ;;  %v1396_v22 = vunpack.c.h.bf16 %v1508_v29  ;;  %v1512_v29 = vld [vmem:[%s2700_s2 + $0x40] sm:$0xff]  }
 0x22f   :  { %v985_v52 = vadd.f32 %v1387_v14, %v793_v28  ;;  %v798_v45 = vmul.f32 %v2280_v55, %v1955_v9  ;;  %v1399_v60 = vunpack.c.l.bf16 %v1509_v27  ;;  %v986_v12 = vadd.f32 %v1388_v11, %v794_v23 }
 0x230   :  { %v799_v31 = vmul.f32 %v2280_v55, %v1961_v8  ;;  %v800_v37 = vmul.f32 %v2280_v55, %v1967_v26  ;;  %v987_v48 = vadd.f32 %v1391_v43, %v795_v20  ;;  %v1045_v6 = vmax.f32 %v981_v59, 0.0 }
 0x231   :  { %v988_v9 = vadd.f32 %v1392_v13, %v796_v36  ;;  %v1046_v63 = vmax.f32 %v982_v0, 0.0  ;;  %v1047_v4 = vmax.f32 %v983_v42, 0.0  ;;  %v1048_v51 = vmax.f32 %v984_v35, 0.0 }
 0x232   :  { %v801_v28 = vmul.f32 %v2280_v55, %v1973_v21  ;;  %v1403_v14 = vunpack.c.l.bf16 %v1510_v7  ;;  %v989_v23 = vadd.f32 %v1395_v16, %v797_v18  ;;  %v1049_v11 = vmax.f32 %v985_v52, 0.0  ;;  %1109 = vst [vmem:[%s2701_s3] sm:$0xff] %v1045_v6 }
 0x233   :  { %v802_v8 = vmul.f32 %v2280_v55, %v1979_v3  ;;  %v1404_v26 = vunpack.c.h.bf16 %v1510_v7  ;;  %v990_v20 = vadd.f32 %v1396_v22, %v798_v45  ;;  %v1050_v43 = vmax.f32 %v986_v12, 0.0  ;;  %1110 = vst [vmem:[%s2701_s3 + $0x8] sm:$0xff] %v1046_v63  ;;  %v1513_v22 = vld [vmem:[%s2700_s2 + $0x48] sm:$0xff]  }
 0x234   :  { %v803_v21 = vmul.f32 %v2280_v55, %v1985_v38  ;;  %v1407_v52 = vunpack.c.l.bf16 %v1511_v30  ;;  %v991_v13 = vadd.f32 %v1399_v60, %v799_v31  ;;  %v1051_v27 = vmax.f32 %v987_v48, 0.0  ;;  %1111 = vst [vmem:[%s2701_s3 + $0x10] sm:$0xff] %v1047_v4  ;;  %v1515_v48 = vld [vmem:[%s2700_s2 + $0x58] sm:$0xff]  }
 0x235   :  { %v804_v3 = vmul.f32 %v2280_v55, %v1991_v49  ;;  %v1408_v59 = vunpack.c.h.bf16 %v1511_v30  ;;  %v992_v36 = vadd.f32 %v1400_v32, %v800_v37  ;;  %v1052_v0 = vmax.f32 %v988_v9, 0.0  ;;  %1112 = vst [vmem:[%s2701_s3 + $0x18] sm:$0xff] %v1048_v51  ;;  %v1514_v32 = vld [vmem:[%s2700_s2 + $0x50] sm:$0xff]  }
 0x236   :  { %v805_v38 = vmul.f32 %v2280_v55, %v1997_v19  ;;  %v1411_v42 = vunpack.c.l.bf16 %v1512_v29  ;;  %v993_v35 = vadd.f32 %v1403_v14, %v801_v28  ;;  %v1053_v18 = vmax.f32 %v989_v23, 0.0  ;;  %1113 = vst [vmem:[%s2701_s3 + $0x20] sm:$0xff] %v1049_v11  ;;  %v1516_v28 = vld [vmem:[%s2700_s2 + $0x60] sm:$0xff]  }
 0x237   :  { %v806_v49 = vmul.f32 %v2280_v55, %v2003_v40  ;;  %v1412_v16 = vunpack.c.h.bf16 %v1512_v29  ;;  %v994_v45 = vadd.f32 %v1404_v26, %v802_v8  ;;  %v1054_v60 = vmax.f32 %v990_v20, 0.0  ;;  %1114 = vst [vmem:[%s2701_s3 + $0x28] sm:$0xff] %v1050_v43  ;;  %v1517_v20 = vld [vmem:[%s2700_s2 + $0x68] sm:$0xff]  }
 0x238   :  { %v807_v19 = vmul.f32 %v2280_v55, %v2009_v33  ;;  %v1415_v7 = vunpack.c.l.bf16 %v1513_v22  ;;  %v995_v12 = vadd.f32 %v1407_v52, %v803_v21  ;;  %v1055_v31 = vmax.f32 %v991_v13, 0.0  ;;  %1115 = vst [vmem:[%s2701_s3 + $0x30] sm:$0xff] %v1051_v27 }
 0x239   :  { %v808_v40 = vmul.f32 %v2280_v55, %v2015_v46  ;;  %v1416_v37 = vunpack.c.h.bf16 %v1513_v22  ;;  %v996_v6 = vadd.f32 %v1408_v59, %v804_v3  ;;  %v1056_v30 = vmax.f32 %v992_v36, 0.0  ;;  %1116 = vst [vmem:[%s2701_s3 + $0x38] sm:$0xff] %v1052_v0  ;;  %v1518_v59 = vld [vmem:[%s2700_s2 + $0x70] sm:$0xff]  }
 0x23a   :  { %v809_v33 = vmul.f32 %v2280_v55, %v2021_v50  ;;  %v1419_v9 = vunpack.c.l.bf16 %v1514_v32  ;;  %v997_v63 = vadd.f32 %v1411_v42, %v805_v38  ;;  %v1057_v4 = vmax.f32 %v993_v35, 0.0  ;;  %1117 = vst [vmem:[%s2701_s3 + $0x40] sm:$0xff] %v1053_v18  ;;  %v1519_v18 = vld [vmem:[%s2700_s2 + $0x78] sm:$0xff]  }
 0x23b   :  { %v810_v46 = vmul.f32 %v2280_v55, %v2027_v53  ;;  %v1420_v51 = vunpack.c.h.bf16 %v1514_v32  ;;  %v998_v14 = vadd.f32 %v1412_v16, %v806_v49  ;;  %v1058_v23 = vmax.f32 %v994_v45, 0.0  ;;  %1118 = vst [vmem:[%s2701_s3 + $0x48] sm:$0xff] %v1054_v60 }
 0x23c   :  { %v811_v50 = vmul.f32 %v2280_v55, %v2033_v56  ;;  %v1423_v11 = vunpack.c.l.bf16 %v1515_v48  ;;  %v999_v8 = vadd.f32 %v1415_v7, %v807_v19  ;;  %v1059_v26 = vmax.f32 %v995_v12, 0.0  ;;  %1119 = vst [vmem:[%s2701_s3 + $0x50] sm:$0xff] %v1055_v31  ;;  %v1520_v7 = vld [vmem:[%s2700_s2 + $0x80] sm:$0xff]  }
 0x23d   :  { %v812_v53 = vmul.f32 %v2280_v55, %v2039_v58  ;;  %v1424_v29 = vunpack.c.h.bf16 %v1515_v48  ;;  %v1000_v43 = vadd.f32 %v1416_v37, %v808_v40  ;;  %v1060_v21 = vmax.f32 %v996_v6, 0.0  ;;  %1120 = vst [vmem:[%s2701_s3 + $0x58] sm:$0xff] %v1056_v30  ;;  %v1521_v30 = vld [vmem:[%s2700_s2 + $0x88] sm:$0xff]  }
 0x23e   :  { %v813_v56 = vmul.f32 %v2280_v55, %v2045_v61  ;;  %v1427_v52 = vunpack.c.l.bf16 %v1516_v28  ;;  %v1001_v13 = vadd.f32 %v1419_v9, %v809_v33  ;;  %v1061_v27 = vmax.f32 %v997_v63, 0.0  ;;  %1121 = vst [vmem:[%s2701_s3 + $0x60] sm:$0xff] %v1057_v4 }
 0x23f   :  { %v814_v58 = vmul.f32 %v2280_v55, %v2051_v1  ;;  %v1428_v3 = vunpack.c.h.bf16 %v1516_v28  ;;  %v1002_v22 = vadd.f32 %v1420_v51, %v810_v46  ;;  %v1062_v36 = vmax.f32 %v998_v14, 0.0  ;;  %1122 = vst [vmem:[%s2701_s3 + $0x68] sm:$0xff] %v1058_v23  ;;  %v1522_v14 = vld [vmem:[%s2700_s2 + $0x90] sm:$0xff]  }
 0x240   :  { %v815_v61 = vmul.f32 %v2280_v55, %v2057_v5  ;;  %v1431_v0 = vunpack.c.l.bf16 %v1517_v20  ;;  %v1003_v38 = vadd.f32 %v1423_v11, %v811_v50  ;;  %v1063_v42 = vmax.f32 %v999_v8, 0.0  ;;  %1123 = vst [vmem:[%s2701_s3 + $0x70] sm:$0xff] %v1059_v26 }
 0x241   :  { %v816_v1 = vmul.f32 %v2280_v55, %v2063_v10  ;;  %v1432_v35 = vunpack.c.h.bf16 %v1517_v20  ;;  %v1004_v49 = vadd.f32 %v1424_v29, %v812_v53  ;;  %v1064_v16 = vmax.f32 %v1000_v43, 0.0  ;;  %1124 = vst [vmem:[%s2701_s3 + $0x78] sm:$0xff] %v1060_v21  ;;  %v1523_v43 = vld [vmem:[%s2700_s2 + $0x98] sm:$0xff]  }
 0x242   :  { %v817_v5 = vmul.f32 %v2280_v55, %v2069_v17  ;;  %v1435_v32 = vunpack.c.l.bf16 %v1518_v59  ;;  %v1005_v45 = vadd.f32 %v1427_v52, %v813_v56  ;;  %v1065_v60 = vmax.f32 %v1001_v13, 0.0  ;;  %1125 = vst [vmem:[%s2701_s3 + $0x80] sm:$0xff] %v1061_v27 }
 0x243   :  { %v818_v10 = vmul.f32 %v2280_v55, %v2075_v24  ;;  %v1436_v19 = vunpack.c.h.bf16 %v1518_v59  ;;  %v1006_v12 = vadd.f32 %v1428_v3, %v814_v58  ;;  %v1066_v31 = vmax.f32 %v1002_v22, 0.0  ;;  %1126 = vst [vmem:[%s2701_s3 + $0x88] sm:$0xff] %v1062_v36  ;;  %v1524_v22 = vld [vmem:[%s2700_s2 + $0xa0] sm:$0xff]  }
 0x244   :  { %v819_v17 = vmul.f32 %v2280_v55, %v2081_v57  ;;  %v1439_v40 = vunpack.c.l.bf16 %v1519_v18  ;;  %v1007_v37 = vadd.f32 %v1431_v0, %v815_v61  ;;  %v1067_v48 = vmax.f32 %v1003_v38, 0.0  ;;  %1127 = vst [vmem:[%s2701_s3 + $0x90] sm:$0xff] %v1063_v42 }
 0x245   :  { %v820_v24 = vmul.f32 %v2280_v55, %v2087_v62  ;;  %v1440_v6 = vunpack.c.h.bf16 %v1519_v18  ;;  %v1008_v33 = vadd.f32 %v1432_v35, %v816_v1  ;;  %v1068_v9 = vmax.f32 %v1004_v49, 0.0  ;;  %1128 = vst [vmem:[%s2701_s3 + $0x98] sm:$0xff] %v1064_v16  ;;  %v2799_v62 = vld [vmem:[#allocation13_spill] sm:$0xff]  ;;  %v1525_v49 = vld [vmem:[%s2700_s2 + $0xa8] sm:$0xff]  }
 0x246   :  { %v821_v57 = vmul.f32 %v2280_v55, %v2093_v44  ;;  %v1443_v63 = vunpack.c.l.bf16 %v1520_v7  ;;  %v1009_v4 = vadd.f32 %v1435_v32, %v817_v5  ;;  %v1069_v46 = vmax.f32 %v1005_v45, 0.0  ;;  %1129 = vst [vmem:[%s2701_s3 + $0xa0] sm:$0xff] %v1065_v60  ;;  %v2800_v44 = vld [vmem:[#allocation2_spill] sm:$0xff] }
 0x247   :  { %v822_v51 = vmul.f32 %v2280_v55, %v2799_v62  ;;  %v1444_v28 = vunpack.c.h.bf16 %v1520_v7  ;;  %v1010_v23 = vadd.f32 %v1436_v19, %v818_v10  ;;  %v1070_v50 = vmax.f32 %v1006_v12, 0.0  ;;  %1130 = vst [vmem:[%s2701_s3 + $0xa8] sm:$0xff] %v1066_v31  ;;  %v1526_v7 = vld [vmem:[%s2700_s2 + $0xb0] sm:$0xff]   ;;  %v1528_v62 = vld [vmem:[%s2700_s2 + $0xc0] sm:$0xff]  }
 0x248   :  { %v823_v11 = vmul.f32 %v2280_v55, %v2800_v44  ;;  %v1447_v8 = vunpack.c.l.bf16 %v1521_v30  ;;  %v1011_v26 = vadd.f32 %v1439_v40, %v819_v17  ;;  %v1071_v53 = vmax.f32 %v1007_v37, 0.0  ;;  %1131 = vst [vmem:[%s2701_s3 + $0xb0] sm:$0xff] %v1067_v48 }
 0x249   :  { %v824_v29 = vmul.f32 %v2280_v55, %v2111_v39  ;;  %v1448_v20 = vunpack.c.h.bf16 %v1521_v30  ;;  %v1012_v21 = vadd.f32 %v1440_v6, %v820_v24  ;;  %v1072_v56 = vmax.f32 %v1008_v33, 0.0  ;;  %1132 = vst [vmem:[%s2701_s3 + $0xb8] sm:$0xff] %v1068_v9  ;;  %v2801_v39 = vld [vmem:[#allocation3_spill] sm:$0xff]  ;;  %v1527_v6 = vld [vmem:[%s2700_s2 + $0xb8] sm:$0xff]  }
 0x24a   :  { %v825_v52 = vmul.f32 %v2280_v55, %v2117_v2  ;;  %v1451_v13 = vunpack.c.l.bf16 %v1522_v14  ;;  %v1013_v27 = vadd.f32 %v1443_v63, %v821_v57  ;;  %v1073_v58 = vmax.f32 %v1009_v4, 0.0  ;;  %1133 = vst [vmem:[%s2701_s3 + $0xc0] sm:$0xff] %v1069_v46  ;;  %v2802_v2 = vld [vmem:[#allocation5_spill] sm:$0xff] }
 0x24b   :  { %v826_v3 = vmul.f32 %v2280_v55, %v2801_v39  ;;  %v1452_v59 = vunpack.c.h.bf16 %v1522_v14  ;;  %v1014_v36 = vadd.f32 %v1444_v28, %v822_v51  ;;  %v1074_v61 = vmax.f32 %v1010_v23, 0.0  ;;  %1134 = vst [vmem:[%s2701_s3 + $0xc8] sm:$0xff] %v1070_v50  ;;  %v1530_v39 = vld [vmem:[%s2700_s2 + $0xd0] sm:$0xff]  }
 0x24c   :  { %v827_v0 = vmul.f32 %v2280_v55, %v2802_v2  ;;  %v1455_v38 = vunpack.c.l.bf16 %v1523_v43  ;;  %v1015_v42 = vadd.f32 %v1447_v8, %v823_v11  ;;  %v1075_v1 = vmax.f32 %v1011_v26, 0.0  ;;  %1135 = vst [vmem:[%s2701_s3 + $0xd0] sm:$0xff] %v1071_v53  ;;  %v1529_v26 = vld [vmem:[%s2700_s2 + $0xc8] sm:$0xff]  }
 0x24d   :  { %v828_v35 = vmul.f32 %v2280_v55, %v2135_v54  ;;  %v1456_v18 = vunpack.c.h.bf16 %v1523_v43  ;;  %v1016_v16 = vadd.f32 %v1448_v20, %v824_v29  ;;  %v1076_v5 = vmax.f32 %v1012_v21, 0.0  ;;  %1136 = vst [vmem:[%s2701_s3 + $0xd8] sm:$0xff] %v1072_v56  ;;  %v2806_v20 = vld [vmem:[#allocation11_spill] sm:$0xff] }
 0x24e   :  { %v829_v32 = vmul.f32 %v2280_v55, %v2141_v47  ;;  %v1459_v45 = vunpack.c.l.bf16 %v1524_v22  ;;  %v1017_v60 = vadd.f32 %v1451_v13, %v825_v52  ;;  %v1077_v10 = vmax.f32 %v1013_v27, 0.0  ;;  %1137 = vst [vmem:[%s2701_s3 + $0xe0] sm:$0xff] %v1073_v58  ;;  %v2807_v13 = vld [vmem:[#allocation14_spill] sm:$0xff] }
 0x24f   :  { %v830_v54 = vmul.f32 %v2280_v55, %v2147_v25  ;;  %v1460_v19 = vunpack.c.h.bf16 %v1524_v22  ;;  %v1018_v12 = vadd.f32 %v1452_v59, %v826_v3  ;;  %v1078_v31 = vmax.f32 %v1014_v36, 0.0  ;;  %1138 = vst [vmem:[%s2701_s3 + $0xe8] sm:$0xff] %v1074_v61  ;;  %v2803_v25 = vld [vmem:[#allocation6_spill] sm:$0xff]  ;;  %v2808_v22 = vld [vmem:[#allocation4_spill] sm:$0xff] }
 0x250   :  { %v831_v47 = vmul.f32 %v2280_v55, %v2153_v15  ;;  %v1463_v17 = vunpack.c.l.bf16 %v1525_v49  ;;  %v1019_v40 = vadd.f32 %v1455_v38, %v827_v0  ;;  %v1079_v37 = vmax.f32 %v1015_v42, 0.0  ;;  %1139 = vst [vmem:[%s2701_s3 + $0xf0] sm:$0xff] %v1075_v1  ;;  %v2809_v38 = vld [vmem:[#allocation21_spill] sm:$0xff] }
 0x251   :  { %v832_v48 = vmul.f32 %v2280_v55, %v2803_v25  ;;  %v1464_v24 = vunpack.c.h.bf16 %v1525_v49  ;;  %v1020_v30 = vadd.f32 %v1456_v18, %v828_v35  ;;  %v1080_v33 = vmax.f32 %v1016_v16, 0.0  ;;  %1140 = vst [vmem:[%s2701_s3 + $0xf8] sm:$0xff] %v1076_v5  ;;  %v1531_v35 = vld [vmem:[%s2700_s2 + $0xd8] sm:$0xff]   ;;  %v2810_v16 = vld [vmem:[#allocation8_spill] sm:$0xff] }
 0x252   :  { %v833_v15 = vmul.f32 %v2280_v55, %v2165_v41  ;;  %v1467_v9 = vunpack.c.l.bf16 %v1526_v7  ;;  %v1021_v57 = vadd.f32 %v1459_v45, %v829_v32  ;;  %v1081_v63 = vmax.f32 %v1017_v60, 0.0  ;;  %1141 = vst [vmem:[%s2701_s3 + $0x100] sm:$0xff] %v1077_v10  ;;  %v2804_v41 = vld [vmem:[#allocation7_spill] sm:$0xff]  ;;  %v2811_v10 = vld [vmem:[#allocation9_spill] sm:$0xff] }
 0x253   :  { %v834_v4 = vmul.f32 %v2280_v55, %v2171_v34  ;;  %v1468_v46 = vunpack.c.h.bf16 %v1526_v7  ;;  %v1022_v51 = vadd.f32 %v1460_v19, %v830_v54  ;;  %v1082_v28 = vmax.f32 %v1018_v12, 0.0  ;;  %1142 = vst [vmem:[%s2701_s3 + $0x108] sm:$0xff] %v1078_v31  ;;  %v2805_v34 = vld [vmem:[#allocation19_spill] sm:$0xff]  ;;  %v1532_v7 = vld [vmem:[%s2700_s2 + $0xe0] sm:$0xff]  }
 0x254   :  { %v835_v14 = vmul.f32 %v2280_v55, %v2804_v41  ;;  %v1471_v23 = vunpack.c.l.bf16 %v1527_v6  ;;  %v1023_v50 = vadd.f32 %v1463_v17, %v831_v47  ;;  %v1083_v44 = vmax.f32 %v1019_v40, 0.0  ;;  %1143 = vst [vmem:[%s2701_s3 + $0x110] sm:$0xff] %v1079_v37  ;;  %v2812_v47 = vld [vmem:[#allocation10_spill] sm:$0xff]  ;;  %v1534_v41 = vld [vmem:[%s2700_s2 + $0xf0] sm:$0xff]  }
 0x255   :  { %v836_v11 = vmul.f32 %v2280_v55, %v2805_v34  ;;  %v1472_v8 = vunpack.c.h.bf16 %v1527_v6  ;;  %v1024_v53 = vadd.f32 %v1464_v24, %v832_v48  ;;  %v1084_v29 = vmax.f32 %v1020_v30, 0.0  ;;  %1144 = vst [vmem:[%s2701_s3 + $0x118] sm:$0xff] %v1080_v33  ;;  %v2813_v48 = vld [vmem:[#allocation12_spill] sm:$0xff]  ;;  %v1533_v30 = vld [vmem:[%s2700_s2 + $0xe8] sm:$0xff]  }
 0x256   :  { %v837_v43 = vmul.f32 %v2280_v55, %v2806_v20  ;;  %v1475_v21 = vunpack.c.l.bf16 %v1528_v62  ;;  %v1025_v56 = vadd.f32 %v1467_v9, %v833_v15  ;;  %v1085_v52 = vmax.f32 %v1021_v57, 0.0  ;;  %1145 = vst [vmem:[%s2701_s3 + $0x120] sm:$0xff] %v1081_v63  ;;  %v2814_v9 = vld [vmem:[#allocation15_spill] sm:$0xff]  ;;  %v1535_v20 = vld [vmem:[%s2700_s2 + $0xf8] sm:$0xff]  }
 0x257   :  { %v838_v27 = vmul.f32 %v2280_v55, %v2807_v13  ;;  %v1476_v58 = vunpack.c.h.bf16 %v1528_v62  ;;  %v1026_v3 = vadd.f32 %v1468_v46, %v834_v4  ;;  %v1086_v59 = vmax.f32 %v1022_v51, 0.0  ;;  %1146 = vst [vmem:[%s2701_s3 + $0x128] sm:$0xff] %v1082_v28  ;;  %v2815_v62 = vld [vmem:[#allocation16_spill] sm:$0xff] }
 0x258   :  { %v839_v36 = vmul.f32 %v2280_v55, %v2808_v22  ;;  %v1479_v61 = vunpack.c.l.bf16 %v1529_v26  ;;  %v1027_v2 = vadd.f32 %v1471_v23, %v835_v14  ;;  %v1087_v0 = vmax.f32 %v1023_v50, 0.0  ;;  %1147 = vst [vmem:[%s2701_s3 + $0x130] sm:$0xff] %v1083_v44  ;;  %v2816_v50 = vld [vmem:[#allocation17_spill] sm:$0xff] }
 0x259   :  { %v840_v42 = vmul.f32 %v2280_v55, %v2809_v38  ;;  %v1480_v1 = vunpack.c.h.bf16 %v1529_v26  ;;  %v1028_v18 = vadd.f32 %v1472_v8, %v836_v11  ;;  %v1088_v49 = vmax.f32 %v1024_v53, 0.0  ;;  %1148 = vst [vmem:[%s2701_s3 + $0x138] sm:$0xff] %v1084_v29  ;;  %v2817_v26 = vld [vmem:[#allocation22_spill] sm:$0xff] }
 0x25a   :  { %v841_v5 = vmul.f32 %v2280_v55, %v2810_v16  ;;  %v1483_v32 = vunpack.c.l.bf16 %v1530_v39  ;;  %v1029_v45 = vadd.f32 %v1475_v21, %v837_v43  ;;  %v1089_v60 = vmax.f32 %v1025_v56, 0.0  ;;  %1149 = vst [vmem:[%s2701_s3 + $0x140] sm:$0xff] %v1085_v52  ;;  %v2818_v56 = vld [vmem:[#allocation18_spill] sm:$0xff] }
 0x25b   :  { %v842_v54 = vmul.f32 %v2280_v55, %v2811_v10  ;;  %v1484_v19 = vunpack.c.h.bf16 %v1530_v39  ;;  %v1030_v12 = vadd.f32 %v1476_v58, %v838_v27  ;;  %v1090_v31 = vmax.f32 %v1026_v3, 0.0  ;;  %1150 = vst [vmem:[%s2701_s3 + $0x148] sm:$0xff] %v1086_v59  ;;  %v2819_v39 = vld [vmem:[#allocation23_spill] sm:$0xff] }
 0x25c   :  { %v843_v17 = vmul.f32 %v2280_v55, %v2812_v47  ;;  %v1487_v40 = vunpack.c.l.bf16 %v1531_v35  ;;  %v1031_v37 = vadd.f32 %v1479_v61, %v839_v36  ;;  %v1091_v25 = vmax.f32 %v1027_v2, 0.0  ;;  %1151 = vst [vmem:[%s2701_s3 + $0x150] sm:$0xff] %v1087_v0  ;;  %v2820_v61 = vld [vmem:[#allocation24_spill] sm:$0xff] }
 0x25d   :  { %v844_v24 = vmul.f32 %v2280_v55, %v2813_v48  ;;  %v1488_v6 = vunpack.c.h.bf16 %v1531_v35  ;;  %v1032_v33 = vadd.f32 %v1480_v1, %v840_v42  ;;  %v1092_v15 = vmax.f32 %v1028_v18, 0.0  ;;  %1152 = vst [vmem:[%s2701_s3 + $0x158] sm:$0xff] %v1088_v49  ;;  %v2821_v1 = vld [vmem:[#allocation20_spill] sm:$0xff] }
 0x25e   :  { %v845_v57 = vmul.f32 %v2280_v55, %v2814_v9  ;;  %v1491_v63 = vunpack.c.l.bf16 %v1532_v7  ;;  %v1033_v4 = vadd.f32 %v1483_v32, %v841_v5  ;;  %v1093_v46 = vmax.f32 %v1029_v45, 0.0  ;;  %1153 = vst [vmem:[%s2701_s3 + $0x160] sm:$0xff] %v1089_v60 }
 0x25f   :  { %v846_v51 = vmul.f32 %v2280_v55, %v2815_v62  ;;  %v1492_v28 = vunpack.c.h.bf16 %v1532_v7  ;;  %v1034_v14 = vadd.f32 %v1484_v19, %v842_v54  ;;  %v1094_v23 = vmax.f32 %v1030_v12, 0.0  ;;  %1154 = vst [vmem:[%s2701_s3 + $0x168] sm:$0xff] %v1090_v31 }
 0x260   :  { %v847_v44 = vmul.f32 %v2280_v55, %v2816_v50  ;;  %v1495_v34 = vunpack.c.l.bf16 %v1533_v30  ;;  %v1035_v11 = vadd.f32 %v1487_v40, %v843_v17  ;;  %v1095_v8 = vmax.f32 %v1031_v37, 0.0  ;;  %1155 = vst [vmem:[%s2701_s3 + $0x170] sm:$0xff] %v1091_v25 }
 0x261   :  { %v848_v53 = vmul.f32 %v2280_v55, %v2817_v26  ;;  %v1496_v29 = vunpack.c.h.bf16 %v1533_v30  ;;  %v1036_v43 = vadd.f32 %v1488_v6, %v844_v24  ;;  %v1096_v21 = vmax.f32 %v1032_v33, 0.0  ;;  %1156 = vst [vmem:[%s2701_s3 + $0x178] sm:$0xff] %v1092_v15 }
 0x262   :  { %v849_v52 = vmul.f32 %v2280_v55, %v2818_v56  ;;  %v1499_v13 = vunpack.c.l.bf16 %v1534_v41  ;;  %v1037_v27 = vadd.f32 %v1491_v63, %v845_v57  ;;  %v1097_v58 = vmax.f32 %v1033_v4, 0.0  ;;  %1157 = vst [vmem:[%s2701_s3 + $0x180] sm:$0xff] %v1093_v46 }
 0x263   :  { %v850_v3 = vmul.f32 %v2280_v55, %v2819_v39  ;;  %v1500_v59 = vunpack.c.h.bf16 %v1534_v41  ;;  %v1038_v22 = vadd.f32 %v1492_v28, %v846_v51  ;;  %v1098_v36 = vmax.f32 %v1034_v14, 0.0  ;;  %1158 = vst [vmem:[%s2701_s3 + $0x188] sm:$0xff] %v1094_v23 }
 0x264   :  { %v851_v2 = vmul.f32 %v2280_v55, %v2820_v61  ;;  %v1503_v0 = vunpack.c.l.bf16 %v1535_v20  ;;  %v1039_v38 = vadd.f32 %v1495_v34, %v847_v44  ;;  %v1099_v42 = vmax.f32 %v1035_v11, 0.0  ;;  %1159 = vst [vmem:[%s2701_s3 + $0x190] sm:$0xff] %v1095_v8 }
 0x265   :  { %v852_v35 = vmul.f32 %v2280_v55, %v2821_v1  ;;  %v1504_v18 = vunpack.c.h.bf16 %v1535_v20  ;;  %v1040_v49 = vadd.f32 %v1496_v29, %v848_v53  ;;  %v1100_v16 = vmax.f32 %v1036_v43, 0.0  ;;  %1160 = vst [vmem:[%s2701_s3 + $0x198] sm:$0xff] %v1096_v21 }
 0x266   :  { %v1041_v5 = vadd.f32 %v1499_v13, %v849_v52  ;;  %v1101_v32 = vmax.f32 %v1037_v27, 0.0  ;;  %1161 = vst [vmem:[%s2701_s3 + $0x1a0] sm:$0xff] %v1097_v58  ;;  %v1042_v45 = vadd.f32 %v1500_v59, %v850_v3  ;;  %v1102_v60 = vmax.f32 %v1038_v22, 0.0 }
 0x267   :  { %1162 = vst [vmem:[%s2701_s3 + $0x1a8] sm:$0xff] %v1098_v36  ;;  %v1043_v55 = vadd.f32 %v1503_v0, %v851_v2  ;;  %v1103_v10 = vmax.f32 %v1039_v38, 0.0  ;;  %v1044_v54 = vadd.f32 %v1504_v18, %v852_v35  ;;  %v1104_v19 = vmax.f32 %v1040_v49, 0.0 }
 0x268   :  { %1163 = vst [vmem:[%s2701_s3 + $0x1b0] sm:$0xff] %v1099_v42  ;;  %v1105_v7 = vmax.f32 %v1041_v5, 0.0  ;;  %v1106_v12 = vmax.f32 %v1042_v45, 0.0 }
 0x269   :  { %1164 = vst [vmem:[%s2701_s3 + $0x1b8] sm:$0xff] %v1100_v16  ;;  %v1107_v31 = vmax.f32 %v1043_v55, 0.0  ;;  %v1108_v47 = vmax.f32 %v1044_v54, 0.0 }
 0x26a   :  { %1165 = vst [vmem:[%s2701_s3 + $0x1c0] sm:$0xff] %v1101_v32 }
 0x26b   :  { %1166 = vst [vmem:[%s2701_s3 + $0x1c8] sm:$0xff] %v1102_v60 }
 0x26c   :  { %1167 = vst [vmem:[%s2701_s3 + $0x1d0] sm:$0xff] %v1103_v10 }
 0x26d   :  { %1168 = vst [vmem:[%s2701_s3 + $0x1d8] sm:$0xff] %v1104_v19 }
 0x26e   :  { %1169 = vst [vmem:[%s2701_s3 + $0x1e0] sm:$0xff] %v1105_v7 }
 0x26f   :  { %1170 = vst [vmem:[%s2701_s3 + $0x1e8] sm:$0xff] %v1106_v12 }
 0x270   :  { %1171 = vst [vmem:[%s2701_s3 + $0x1f0] sm:$0xff] %v1107_v31 }
 0x271   :  { %1172 = vst [vmem:[%s2701_s3 + $0x1f8] sm:$0xff] %v1108_v47 }

</bundles_post_ra>
